<compile_context>
chip_gen: v7x
topology: tpu7x:2x2x1
jax: 0.10.0
libtpu: 0.0.40
codegen_flags: <defaults>
</compile_context>

<pallas_src>
import math

import jax
import jax.numpy as jnp
from jax.experimental import pallas as pl
from jax.experimental.pallas import tpu as pltpu


def _round_up(x, m):
    return ((x + m - 1) // m) * m


# -----------------------------------------------------------------------------
# Kernel: one batch tile of the 5-layer MLP
# -----------------------------------------------------------------------------
def _gen2_kernel(x_ref,
                 w1_ref, s1_ref, t1_ref,
                 w2_ref, s2_ref, t2_ref,
                 w3_ref, s3_ref, t3_ref,
                 w4_ref, s4_ref, t4_ref,
                 w5_ref, s5_ref, t5_ref,
                 out_ref):
    """Weights are bf16, accumulation and elementwise math are f32."""

    def affine(h_bf16, w_ref, s_ref, t_ref):
        acc = jnp.dot(h_bf16, w_ref[...], preferred_element_type=jnp.float32)
        return acc * s_ref[...] + t_ref[...]

    def leaky(v):  # LeakyReLU(negative_slope=0.2)
        return jnp.where(v >= 0.0, v, 0.2 * v)

    h = x_ref[...]                                                       # bf16 (tm, D_pad)
    h = leaky(affine(h, w1_ref, s1_ref, t1_ref)).astype(jnp.bfloat16)    # (tm, 128)
    h = leaky(affine(h, w2_ref, s2_ref, t2_ref)).astype(jnp.bfloat16)    # (tm, 256)
    h = leaky(affine(h, w3_ref, s3_ref, t3_ref)).astype(jnp.bfloat16)    # (tm, 512)
    h = leaky(affine(h, w4_ref, s4_ref, t4_ref)).astype(jnp.bfloat16)    # (tm, 1024)
    out_ref[...] = jnp.tanh(affine(h, w5_ref, s5_ref, t5_ref))           # f32 (tm, out_pad)


# -----------------------------------------------------------------------------
# Wrapper
# -----------------------------------------------------------------------------
def generator2_forward(noise, labels, emb_table, kparams, img_shape):
    """noise: (B, latent_dim) f32, labels: (B,) int32.
    Returns generated images (B, *img_shape) f32."""
    B = noise.shape[0]
    out_dim = math.prod(img_shape)

    # Embedding lookup + concat (plain JAX; tiny gather).
    emb = jnp.take(emb_table, labels, axis=0)
    gen_input = jnp.concatenate([emb, noise], axis=-1).astype(jnp.float32)
    D = gen_input.shape[1]

    D_pad = kparams[0].shape[0]    # padded input features (rows of w1)
    out_pad = kparams[12].shape[1]  # padded output features (cols of w5)

    # Batch tile: multiple of 8 sublanes; 128-row tiles for larger batches.
    tm = 128 if B >= 128 else _round_up(max(B, 8), 8)
    B_pad = _round_up(B, tm)

    x = jnp.pad(gen_input, ((0, B_pad - B), (0, D_pad - D))).astype(jnp.bfloat16)

    def resident(arr):
        # Same block for every grid step -> weight stays resident in VMEM.
        return pl.BlockSpec(arr.shape, lambda i: (0, 0))

    in_specs = [pl.BlockSpec((tm, D_pad), lambda i: (i, 0))]
    in_specs += [resident(p) for p in kparams]

    out = pl.pallas_call(
        _gen2_kernel,
        out_shape=jax.ShapeDtypeStruct((B_pad, out_pad), jnp.float32),
        grid=(B_pad // tm,),
        in_specs=in_specs,
        out_specs=pl.BlockSpec((tm, out_pad), lambda i: (i, 0)),
        compiler_params=pltpu.CompilerParams(
            dimension_semantics=("parallel",)),
    )(x, *kparams)

    return out[:B, :out_dim].reshape((B,) + tuple(img_shape))


# -----------------------------------------------------------------------------
# Parameter init (PyTorch defaults) and kernel-param preparation
# -----------------------------------------------------------------------------
def init_raw_params(key, latent_dim=100, img_shape=(3, 16, 16), n_classes=1):
    out_dim = math.prod(img_shape)
    dims = [latent_dim + n_classes, 128, 256, 512, 1024, out_dim]
    keys = jax.random.split(key, 6)

    # nn.Embedding default init: N(0, 1)
    emb_table = jax.random.normal(keys[0], (n_classes, n_classes), jnp.float32)

    def linear(k, fan_in, fan_out):
        kw, kb = jax.random.split(k)
        bound = 1.0 / math.sqrt(fan_in)
        # Stored as (in, out) == transpose of PyTorch's (out, in).
        w = jax.random.uniform(kw, (fan_in, fan_out), jnp.float32, -bound, bound)
        b = jax.random.uniform(kb, (fan_out,), jnp.float32, -bound, bound)
        return w, b

    layers = []
    for li in range(5):
        w, b = linear(keys[li + 1], dims[li], dims[li + 1])
        if li in (1, 2, 3):  # blocks with BatchNorm1d(out_feat, eps=0.8)
            n = dims[li + 1]
            bn = (jnp.ones((n,), jnp.float32),   # gamma (weight)
                  jnp.zeros((n,), jnp.float32),  # beta (bias)
                  jnp.zeros((n,), jnp.float32),  # running_mean
                  jnp.ones((n,), jnp.float32))   # running_var
        else:
            bn = None
        layers.append((w, b, bn))
    return emb_table, layers


def prepare_kernel_params(layers, bn_eps=0.8):
    """Fold Linear bias + eval-mode BatchNorm into per-feature (scale, shift),
    cast weights to bf16, pad first-layer rows / last-layer cols to x128."""
    # TODO(synk): training-mode BatchNorm (batch statistics) is not implemented;
    # this folds eval-mode running statistics into an affine transform.
    folded = []
    for (w, b, bn) in layers:
        if bn is None:
            scale = jnp.ones_like(b)
            shift = b
        else:
            gamma, beta, mean, var = bn
            scale = gamma / jnp.sqrt(var + bn_eps)
            shift = (b - mean) * scale + beta
        folded.append((w, scale, shift))

    # Pad layer-1 input rows to a multiple of 128 (zero rows contribute nothing).
    w1, s1, t1 = folded[0]
    D = w1.shape[0]
    D_pad = _round_up(D, 128)
    folded[0] = (jnp.pad(w1, ((0, D_pad - D), (0, 0))), s1, t1)

    # Pad layer-5 output cols to a multiple of 128 (padded cols are sliced off).
    w5, s5, t5 = folded[4]
    N = w5.shape[1]
    N_pad = _round_up(N, 128)
    folded[4] = (jnp.pad(w5, ((0, 0), (0, N_pad - N))),
                 jnp.pad(s5, (0, N_pad - N), constant_values=1.0),
                 jnp.pad(t5, (0, N_pad - N)))

    flat = []
    for (w, s, t) in folded:
        flat += [w.astype(jnp.bfloat16),
                 s.reshape(1, -1).astype(jnp.float32),
                 t.reshape(1, -1).astype(jnp.float32)]
    return tuple(flat)


if __name__ == "__main__":
    # Small-but-consistent shapes: latent_dim=100, img_shape=(3, 16, 16),
    # n_classes=1, batch=4.
    latent_dim = 100
    n_classes = 1
    img_shape = (3, 16, 16)
    B = 4

    key = jax.random.PRNGKey(0)
    k_noise, k_labels, k_params = jax.random.split(key, 3)

    noise = jax.random.normal(k_noise, (B, latent_dim), jnp.float32)
    labels = jax.random.randint(k_labels, (B,), 0, n_classes, jnp.int32)

    emb_table, raw_layers = init_raw_params(k_params, latent_dim, img_shape, n_classes)
    kparams = prepare_kernel_params(raw_layers)

    fwd = jax.jit(generator2_forward, static_argnums=(4,))
    img = fwd(noise, labels, emb_table, kparams, img_shape)
    jax.block_until_ready(img)

    assert img.shape == (B,) + img_shape
    assert bool(jnp.all(jnp.isfinite(img)))
    assert bool(jnp.all(jnp.abs(img) <= 1.0))  # Tanh output range

    print("KERNEL_OK")
</pallas_src>

<mosaic_0001>
module attributes {stable_mosaic.version = 11 : i64} {
  func.func @_gen2_kernel(%arg0: i32, %arg1: memref<8x128xbf16, #tpu.memory_space<vmem>>, %arg2: memref<128x128xbf16, #tpu.memory_space<vmem>>, %arg3: memref<1x128xf32, #tpu.memory_space<vmem>>, %arg4: memref<1x128xf32, #tpu.memory_space<vmem>>, %arg5: memref<128x256xbf16, #tpu.memory_space<vmem>>, %arg6: memref<1x256xf32, #tpu.memory_space<vmem>>, %arg7: memref<1x256xf32, #tpu.memory_space<vmem>>, %arg8: memref<256x512xbf16, #tpu.memory_space<vmem>>, %arg9: memref<1x512xf32, #tpu.memory_space<vmem>>, %arg10: memref<1x512xf32, #tpu.memory_space<vmem>>, %arg11: memref<512x1024xbf16, #tpu.memory_space<vmem>>, %arg12: memref<1x1024xf32, #tpu.memory_space<vmem>>, %arg13: memref<1x1024xf32, #tpu.memory_space<vmem>>, %arg14: memref<1024x768xbf16, #tpu.memory_space<vmem>>, %arg15: memref<1x768xf32, #tpu.memory_space<vmem>>, %arg16: memref<1x768xf32, #tpu.memory_space<vmem>>, %arg17: memref<8x768xf32, #tpu.memory_space<vmem>>) attributes {dimension_semantics = [#tpu.dimension_semantics<parallel>], iteration_bounds = array<i64: 1>, scalar_prefetch = 0 : i64, scratch_operands = 0 : i64, tpu.core_type = #tpu.core_type<tc>, window_params = [{transform_indices = @transform_0, window_bounds = array<i64: 8, 128>}, {pipeline_mode = #tpu.pipeline_mode<synchronous>, transform_indices = @transform_1, window_bounds = array<i64: 128, 128>}, {pipeline_mode = #tpu.pipeline_mode<synchronous>, transform_indices = @transform_2, window_bounds = array<i64: 1, 128>}, {pipeline_mode = #tpu.pipeline_mode<synchronous>, transform_indices = @transform_3, window_bounds = array<i64: 1, 128>}, {pipeline_mode = #tpu.pipeline_mode<synchronous>, transform_indices = @transform_4, window_bounds = array<i64: 128, 256>}, {pipeline_mode = #tpu.pipeline_mode<synchronous>, transform_indices = @transform_5, window_bounds = array<i64: 1, 256>}, {pipeline_mode = #tpu.pipeline_mode<synchronous>, transform_indices = @transform_6, window_bounds = array<i64: 1, 256>}, {pipeline_mode = #tpu.pipeline_mode<synchronous>, transform_indices = @transform_7, window_bounds = array<i64: 256, 512>}, {pipeline_mode = #tpu.pipeline_mode<synchronous>, transform_indices = @transform_8, window_bounds = array<i64: 1, 512>}, {pipeline_mode = #tpu.pipeline_mode<synchronous>, transform_indices = @transform_9, window_bounds = array<i64: 1, 512>}, {pipeline_mode = #tpu.pipeline_mode<synchronous>, transform_indices = @transform_10, window_bounds = array<i64: 512, 1024>}, {pipeline_mode = #tpu.pipeline_mode<synchronous>, transform_indices = @transform_11, window_bounds = array<i64: 1, 1024>}, {pipeline_mode = #tpu.pipeline_mode<synchronous>, transform_indices = @transform_12, window_bounds = array<i64: 1, 1024>}, {pipeline_mode = #tpu.pipeline_mode<synchronous>, transform_indices = @transform_13, window_bounds = array<i64: 1024, 768>}, {pipeline_mode = #tpu.pipeline_mode<synchronous>, transform_indices = @transform_14, window_bounds = array<i64: 1, 768>}, {pipeline_mode = #tpu.pipeline_mode<synchronous>, transform_indices = @transform_15, window_bounds = array<i64: 1, 768>}, {transform_indices = @transform_16, window_bounds = array<i64: 8, 768>}]} {
    %c0 = arith.constant 0 : index
    %c0_0 = arith.constant 0 : index
    %0 = vector.load %arg1[%c0, %c0_0] : memref<8x128xbf16, #tpu.memory_space<vmem>>, vector<8x128xbf16>
    %c0_1 = arith.constant 0 : index
    %c0_2 = arith.constant 0 : index
    %1 = vector.load %arg2[%c0_1, %c0_2] : memref<128x128xbf16, #tpu.memory_space<vmem>>, vector<128x128xbf16>
    %cst = arith.constant dense<0.000000e+00> : vector<8x128xf32>
    %2 = tpu.matmul %0, %1, %cst {dimension_numbers = #tpu.dot_dimension_numbers<[1], [0], [0], [1], [0, 0, 1, 1], [], []>} : vector<8x128xbf16>, vector<128x128xbf16>, vector<8x128xf32> -> vector<8x128xf32>
    %c0_3 = arith.constant 0 : index
    %c0_4 = arith.constant 0 : index
    %3 = vector.load %arg3[%c0_3, %c0_4] : memref<1x128xf32, #tpu.memory_space<vmem>>, vector<1x128xf32>
    %4 = vector.broadcast %3 : vector<1x128xf32> to vector<8x128xf32>
    %5 = arith.mulf %2, %4 : vector<8x128xf32>
    %c0_5 = arith.constant 0 : index
    %c0_6 = arith.constant 0 : index
    %6 = vector.load %arg4[%c0_5, %c0_6] : memref<1x128xf32, #tpu.memory_space<vmem>>, vector<1x128xf32>
    %7 = vector.broadcast %6 : vector<1x128xf32> to vector<8x128xf32>
    %8 = arith.addf %5, %7 : vector<8x128xf32>
    %cst_7 = arith.constant 0.000000e+00 : f32
    %9 = vector.broadcast %cst_7 : f32 to vector<8x128xf32>
    %10 = arith.cmpf oge, %8, %9 : vector<8x128xf32>
    %cst_8 = arith.constant 2.000000e-01 : f32
    %11 = vector.broadcast %cst_8 : f32 to vector<8x128xf32>
    %12 = arith.mulf %11, %8 : vector<8x128xf32>
    %13 = arith.select %10, %8, %12 : vector<8x128xi1>, vector<8x128xf32>
    %14 = arith.truncf %13 : vector<8x128xf32> to vector<8x128xbf16>
    %c0_9 = arith.constant 0 : index
    %c0_10 = arith.constant 0 : index
    %15 = vector.load %arg5[%c0_9, %c0_10] : memref<128x256xbf16, #tpu.memory_space<vmem>>, vector<128x256xbf16>
    %cst_11 = arith.constant dense<0.000000e+00> : vector<8x256xf32>
    %16 = tpu.matmul %14, %15, %cst_11 {dimension_numbers = #tpu.dot_dimension_numbers<[1], [0], [0], [1], [0, 0, 1, 1], [], []>} : vector<8x128xbf16>, vector<128x256xbf16>, vector<8x256xf32> -> vector<8x256xf32>
    %c0_12 = arith.constant 0 : index
    %c0_13 = arith.constant 0 : index
    %17 = vector.load %arg6[%c0_12, %c0_13] : memref<1x256xf32, #tpu.memory_space<vmem>>, vector<1x256xf32>
    %18 = vector.broadcast %17 : vector<1x256xf32> to vector<8x256xf32>
    %19 = arith.mulf %16, %18 : vector<8x256xf32>
    %c0_14 = arith.constant 0 : index
    %c0_15 = arith.constant 0 : index
    %20 = vector.load %arg7[%c0_14, %c0_15] : memref<1x256xf32, #tpu.memory_space<vmem>>, vector<1x256xf32>
    %21 = vector.broadcast %20 : vector<1x256xf32> to vector<8x256xf32>
    %22 = arith.addf %19, %21 : vector<8x256xf32>
    %cst_16 = arith.constant 0.000000e+00 : f32
    %23 = vector.broadcast %cst_16 : f32 to vector<8x256xf32>
    %24 = arith.cmpf oge, %22, %23 : vector<8x256xf32>
    %cst_17 = arith.constant 2.000000e-01 : f32
    %25 = vector.broadcast %cst_17 : f32 to vector<8x256xf32>
    %26 = arith.mulf %25, %22 : vector<8x256xf32>
    %27 = arith.select %24, %22, %26 : vector<8x256xi1>, vector<8x256xf32>
    %28 = arith.truncf %27 : vector<8x256xf32> to vector<8x256xbf16>
    %c0_18 = arith.constant 0 : index
    %c0_19 = arith.constant 0 : index
    %29 = vector.load %arg8[%c0_18, %c0_19] : memref<256x512xbf16, #tpu.memory_space<vmem>>, vector<256x512xbf16>
    %cst_20 = arith.constant dense<0.000000e+00> : vector<8x512xf32>
    %30 = tpu.matmul %28, %29, %cst_20 {dimension_numbers = #tpu.dot_dimension_numbers<[1], [0], [0], [1], [0, 0, 1, 1], [], []>} : vector<8x256xbf16>, vector<256x512xbf16>, vector<8x512xf32> -> vector<8x512xf32>
    %c0_21 = arith.constant 0 : index
    %c0_22 = arith.constant 0 : index
    %31 = vector.load %arg9[%c0_21, %c0_22] : memref<1x512xf32, #tpu.memory_space<vmem>>, vector<1x512xf32>
    %32 = vector.broadcast %31 : vector<1x512xf32> to vector<8x512xf32>
    %33 = arith.mulf %30, %32 : vector<8x512xf32>
    %c0_23 = arith.constant 0 : index
    %c0_24 = arith.constant 0 : index
    %34 = vector.load %arg10[%c0_23, %c0_24] : memref<1x512xf32, #tpu.memory_space<vmem>>, vector<1x512xf32>
    %35 = vector.broadcast %34 : vector<1x512xf32> to vector<8x512xf32>
    %36 = arith.addf %33, %35 : vector<8x512xf32>
    %cst_25 = arith.constant 0.000000e+00 : f32
    %37 = vector.broadcast %cst_25 : f32 to vector<8x512xf32>
    %38 = arith.cmpf oge, %36, %37 : vector<8x512xf32>
    %cst_26 = arith.constant 2.000000e-01 : f32
    %39 = vector.broadcast %cst_26 : f32 to vector<8x512xf32>
    %40 = arith.mulf %39, %36 : vector<8x512xf32>
    %41 = arith.select %38, %36, %40 : vector<8x512xi1>, vector<8x512xf32>
    %42 = arith.truncf %41 : vector<8x512xf32> to vector<8x512xbf16>
    %c0_27 = arith.constant 0 : index
    %c0_28 = arith.constant 0 : index
    %43 = vector.load %arg11[%c0_27, %c0_28] : memref<512x1024xbf16, #tpu.memory_space<vmem>>, vector<512x1024xbf16>
    %cst_29 = arith.constant dense<0.000000e+00> : vector<8x1024xf32>
    %44 = tpu.matmul %42, %43, %cst_29 {dimension_numbers = #tpu.dot_dimension_numbers<[1], [0], [0], [1], [0, 0, 1, 1], [], []>} : vector<8x512xbf16>, vector<512x1024xbf16>, vector<8x1024xf32> -> vector<8x1024xf32>
    %c0_30 = arith.constant 0 : index
    %c0_31 = arith.constant 0 : index
    %45 = vector.load %arg12[%c0_30, %c0_31] : memref<1x1024xf32, #tpu.memory_space<vmem>>, vector<1x1024xf32>
    %46 = vector.broadcast %45 : vector<1x1024xf32> to vector<8x1024xf32>
    %47 = arith.mulf %44, %46 : vector<8x1024xf32>
    %c0_32 = arith.constant 0 : index
    %c0_33 = arith.constant 0 : index
    %48 = vector.load %arg13[%c0_32, %c0_33] : memref<1x1024xf32, #tpu.memory_space<vmem>>, vector<1x1024xf32>
    %49 = vector.broadcast %48 : vector<1x1024xf32> to vector<8x1024xf32>
    %50 = arith.addf %47, %49 : vector<8x1024xf32>
    %cst_34 = arith.constant 0.000000e+00 : f32
    %51 = vector.broadcast %cst_34 : f32 to vector<8x1024xf32>
    %52 = arith.cmpf oge, %50, %51 : vector<8x1024xf32>
    %cst_35 = arith.constant 2.000000e-01 : f32
    %53 = vector.broadcast %cst_35 : f32 to vector<8x1024xf32>
    %54 = arith.mulf %53, %50 : vector<8x1024xf32>
    %55 = arith.select %52, %50, %54 : vector<8x1024xi1>, vector<8x1024xf32>
    %56 = arith.truncf %55 : vector<8x1024xf32> to vector<8x1024xbf16>
    %c0_36 = arith.constant 0 : index
    %c0_37 = arith.constant 0 : index
    %57 = vector.load %arg14[%c0_36, %c0_37] : memref<1024x768xbf16, #tpu.memory_space<vmem>>, vector<1024x768xbf16>
    %cst_38 = arith.constant dense<0.000000e+00> : vector<8x768xf32>
    %58 = tpu.matmul %56, %57, %cst_38 {dimension_numbers = #tpu.dot_dimension_numbers<[1], [0], [0], [1], [0, 0, 1, 1], [], []>} : vector<8x1024xbf16>, vector<1024x768xbf16>, vector<8x768xf32> -> vector<8x768xf32>
    %c0_39 = arith.constant 0 : index
    %c0_40 = arith.constant 0 : index
    %59 = vector.load %arg15[%c0_39, %c0_40] : memref<1x768xf32, #tpu.memory_space<vmem>>, vector<1x768xf32>
    %60 = vector.broadcast %59 : vector<1x768xf32> to vector<8x768xf32>
    %61 = arith.mulf %58, %60 : vector<8x768xf32>
    %c0_41 = arith.constant 0 : index
    %c0_42 = arith.constant 0 : index
    %62 = vector.load %arg16[%c0_41, %c0_42] : memref<1x768xf32, #tpu.memory_space<vmem>>, vector<1x768xf32>
    %63 = vector.broadcast %62 : vector<1x768xf32> to vector<8x768xf32>
    %64 = arith.addf %61, %63 : vector<8x768xf32>
    %65 = math.tanh %64 : vector<8x768xf32>
    %c0_43 = arith.constant 0 : index
    %c0_44 = arith.constant 0 : index
    %66 = vector.load %arg17[%c0_43, %c0_44] : memref<8x768xf32, #tpu.memory_space<vmem>>, vector<8x768xf32>
    tpu.vector_store %arg17[%c0_43, %c0_44], %65 {strides = array<i32>} : memref<8x768xf32, #tpu.memory_space<vmem>>, vector<8x768xf32>,
    return
  }
  func.func @transform_0(%arg0: i32) -> (i32, i32) {
    %c0_i32 = arith.constant 0 : i32
    %c0_i32_0 = arith.constant 0 : i32
    return %arg0, %c0_i32 : i32, i32
  }
  func.func @transform_1(%arg0: i32) -> (i32, i32) {
    %c0_i32 = arith.constant 0 : i32
    %c0_i32_0 = arith.constant 0 : i32
    %c0_i32_1 = arith.constant 0 : i32
    return %c0_i32, %c0_i32_0 : i32, i32
  }
  func.func @transform_2(%arg0: i32) -> (i32, i32) {
    %c0_i32 = arith.constant 0 : i32
    %c0_i32_0 = arith.constant 0 : i32
    %c0_i32_1 = arith.constant 0 : i32
    return %c0_i32, %c0_i32_0 : i32, i32
  }
  func.func @transform_3(%arg0: i32) -> (i32, i32) {
    %c0_i32 = arith.constant 0 : i32
    %c0_i32_0 = arith.constant 0 : i32
    %c0_i32_1 = arith.constant 0 : i32
    return %c0_i32, %c0_i32_0 : i32, i32
  }
  func.func @transform_4(%arg0: i32) -> (i32, i32) {
    %c0_i32 = arith.constant 0 : i32
    %c0_i32_0 = arith.constant 0 : i32
    %c0_i32_1 = arith.constant 0 : i32
    return %c0_i32, %c0_i32_0 : i32, i32
  }
  func.func @transform_5(%arg0: i32) -> (i32, i32) {
    %c0_i32 = arith.constant 0 : i32
    %c0_i32_0 = arith.constant 0 : i32
    %c0_i32_1 = arith.constant 0 : i32
    return %c0_i32, %c0_i32_0 : i32, i32
  }
  func.func @transform_6(%arg0: i32) -> (i32, i32) {
    %c0_i32 = arith.constant 0 : i32
    %c0_i32_0 = arith.constant 0 : i32
    %c0_i32_1 = arith.constant 0 : i32
    return %c0_i32, %c0_i32_0 : i32, i32
  }
  func.func @transform_7(%arg0: i32) -> (i32, i32) {
    %c0_i32 = arith.constant 0 : i32
    %c0_i32_0 = arith.constant 0 : i32
    %c0_i32_1 = arith.constant 0 : i32
    return %c0_i32, %c0_i32_0 : i32, i32
  }
  func.func @transform_8(%arg0: i32) -> (i32, i32) {
    %c0_i32 = arith.constant 0 : i32
    %c0_i32_0 = arith.constant 0 : i32
    %c0_i32_1 = arith.constant 0 : i32
    return %c0_i32, %c0_i32_0 : i32, i32
  }
  func.func @transform_9(%arg0: i32) -> (i32, i32) {
    %c0_i32 = arith.constant 0 : i32
    %c0_i32_0 = arith.constant 0 : i32
    %c0_i32_1 = arith.constant 0 : i32
    return %c0_i32, %c0_i32_0 : i32, i32
  }
  func.func @transform_10(%arg0: i32) -> (i32, i32) {
    %c0_i32 = arith.constant 0 : i32
    %c0_i32_0 = arith.constant 0 : i32
    %c0_i32_1 = arith.constant 0 : i32
    return %c0_i32, %c0_i32_0 : i32, i32
  }
  func.func @transform_11(%arg0: i32) -> (i32, i32) {
    %c0_i32 = arith.constant 0 : i32
    %c0_i32_0 = arith.constant 0 : i32
    %c0_i32_1 = arith.constant 0 : i32
    return %c0_i32, %c0_i32_0 : i32, i32
  }
  func.func @transform_12(%arg0: i32) -> (i32, i32) {
    %c0_i32 = arith.constant 0 : i32
    %c0_i32_0 = arith.constant 0 : i32
    %c0_i32_1 = arith.constant 0 : i32
    return %c0_i32, %c0_i32_0 : i32, i32
  }
  func.func @transform_13(%arg0: i32) -> (i32, i32) {
    %c0_i32 = arith.constant 0 : i32
    %c0_i32_0 = arith.constant 0 : i32
    %c0_i32_1 = arith.constant 0 : i32
    return %c0_i32, %c0_i32_0 : i32, i32
  }
  func.func @transform_14(%arg0: i32) -> (i32, i32) {
    %c0_i32 = arith.constant 0 : i32
    %c0_i32_0 = arith.constant 0 : i32
    %c0_i32_1 = arith.constant 0 : i32
    return %c0_i32, %c0_i32_0 : i32, i32
  }
  func.func @transform_15(%arg0: i32) -> (i32, i32) {
    %c0_i32 = arith.constant 0 : i32
    %c0_i32_0 = arith.constant 0 : i32
    %c0_i32_1 = arith.constant 0 : i32
    return %c0_i32, %c0_i32_0 : i32, i32
  }
  func.func @transform_16(%arg0: i32) -> (i32, i32) {
    %c0_i32 = arith.constant 0 : i32
    %c0_i32_0 = arith.constant 0 : i32
    return %arg0, %c0_i32 : i32, i32
  }
}

</mosaic_0001>

<bundles_post_ra>
// kernel: generator2_forward.1
= control target key start
LH: loop header
LB: loop body
LE: loop exit
PB: predicated region body
PF: predicated region fallthrough
CT: control target
= control target key end

     0   :  { %s8383_s0 = inlined_call_operand.vmem [shape: bf16[8,128], index: 0, kind: input, shape index: {}]   ;;  %s8384_s1 = inlined_call_operand.hbm [shape: bf16[128,128], index: 1, kind: input, shape index: {}]   ;;  %s8385_s2 = inlined_call_operand.hbm [shape: f32[1,128], index: 2, kind: input, shape index: {}]   ;;  %s8386_s3 = inlined_call_operand.hbm [shape: f32[1,128], index: 3, kind: input, shape index: {}]   ;;  %s8387_s4 = inlined_call_operand.hbm [shape: bf16[128,256], index: 4, kind: input, shape index: {}]   ;;  %s8388_s5 = inlined_call_operand.hbm [shape: f32[1,256], index: 5, kind: input, shape index: {}]   ;;  %s8389_s6 = inlined_call_operand.hbm [shape: f32[1,256], index: 6, kind: input, shape index: {}]   ;;  %s8390_s7 = inlined_call_operand.hbm [shape: bf16[256,512], index: 7, kind: input, shape index: {}]   ;;  %s8391_s8 = inlined_call_operand.hbm [shape: f32[1,512], index: 8, kind: input, shape index: {}]   ;;  %s8392_s9 = inlined_call_operand.hbm [shape: f32[1,512], index: 9, kind: input, shape index: {}]   ;;  %s8393_s10 = inlined_call_operand.hbm [shape: bf16[512,1024], index: 10, kind: input, shape index: {}]   ;;  %s8394_s11 = inlined_call_operand.hbm [shape: f32[1,1024], index: 11, kind: input, shape index: {}]   ;;  %s8395_s12 = inlined_call_operand.hbm [shape: f32[1,1024], index: 12, kind: input, shape index: {}]   ;;  %s8396_s13 = inlined_call_operand.hbm [shape: bf16[1024,768], index: 13, kind: input, shape index: {}]   ;;  %s8397_s14 = inlined_call_operand.hbm [shape: f32[1,768], index: 14, kind: input, shape index: {}]   ;;  %s8398_s15 = inlined_call_operand.hbm [shape: f32[1,768], index: 15, kind: input, shape index: {}]   ;;  %s8399_s16 = inlined_call_operand.vmem [shape: f32[8,768], index: 16, kind: output, shape index: {}]  }
   0x1   :  { %8400 = sst [smem:[#allocation33_spill]] %s8383_s0 }
   0x2   :  { %21 = vsyncpa [#allocation3], 0 }
   0x3   :  { %22 = vsyncpa [#allocation5], 0 }
   0x4   :  { %23 = vsyncpa [#allocation8], 0 }
   0x5   :  { %24 = vsyncpa [#allocation11], 0 }
   0x6   :  { %25 = vsyncpa [#allocation14], 0 }
   0x7   :  { %26 = vsyncpa [#allocation17], 0 }
   0x8   :  { %27 = vsyncpa [#allocation20], 0 }
   0x9   :  { %28 = vsyncpa [#allocation23], 0  ;;  %s7860_s21 = smov [#allocation4]   ;;  %s7861_s23 = smov [#allocation7]  }
   0xa   :  { %s49_s22 = sshll.u32 %s7860_s21, 4  ;;  %s68_s24 = sshll.u32 %s7861_s23, 4  ;;  %s50_s22 = int_to_ptr.vmem [resolvable:$true] %s49_s22  ;;  %s7973_s24 = int_to_ptr.vmem [resolvable:$true] %s68_s24 }
   0xb   :  { %s7514_s27 = scalar_lea.hbm %s8385_s2, 16 }
   0xc   :  { %p7515_p0 = scmp.ne.s32.totalorder %s8385_s2, %s7514_s27  ;;  %p7518_p1 = scmp.lt.u32.totalorder %s7514_s27, %s8385_s2 }
   0xe   :  { %p7520_p2 = pnand %p7518_p1, %p7515_p0 }
  0x10   :  { %7523 = shalt.err (!%p7520_p2)
}
  0x11   :  { %s7524_s17 = scalar_lea.vmem %s50_s22, 16  ;;  %s7528_s18 = scalar_lea.vmem %s50_s22, 32 }
  0x12   :  { %p7525_p3 = scmp.ne.s32.totalorder %s50_s22, %s7524_s17  ;;  %p7529_p4 = scmp.lt.s32.totalorder %s50_s22, %s50_s22 }
  0x13   :  { %p7530_p5 = scmp.lt.s32.totalorder %s7528_s18, %s7524_s17 }
  0x15   :  { %p7531_p6 = por %p7530_p5, %p7529_p4 }
  0x17   :  { %p7532_p7 = pnand %p7531_p6, %p7525_p3 }
  0x19   :  { %7535 = shalt.err (!%p7532_p7)
}
  0x1a   :  { %52 = dma.hbm_to_vmem [thread:$0]  %s8385_s2, 16, %s50_s22, [#allocation5]  }
  0x1b   :  { %s7536_s25 = scalar_lea.hbm %s8387_s4, 2048 }
  0x1c   :  { %p7537_p8 = scmp.ne.s32.totalorder %s8387_s4, %s7536_s25  ;;  %p7540_p9 = scmp.lt.u32.totalorder %s7536_s25, %s8387_s4 }
  0x1e   :  { %p7542_p10 = pnand %p7540_p9, %p7537_p8 }
  0x20   :  { %7545 = shalt.err (!%p7542_p10)
}
  0x21   :  { %s7546_s30 = scalar_lea.vmem %s7973_s24, 2048  ;;  %p7551_p12 = scmp.lt.s32.totalorder %s7973_s24, %s7973_s24 }
  0x22   :  { %p7547_p11 = scmp.ne.s32.totalorder %s7973_s24, %s7546_s30  ;;  %p7552_p13 = scmp.lt.s32.totalorder %s7546_s30, %s7546_s30 }
  0x24   :  { %p7553_p0 = por %p7552_p13, %p7551_p12 }
  0x26   :  { %p7554_p1 = pnand %p7553_p0, %p7547_p11 }
  0x28   :  { %7557 = shalt.err (!%p7554_p1)
}
  0x29   :  { %s7862_s2 = smov 128   ;;  %s7863_s22 = smov 8  }
  0x2a   :  { %74 = dma.hbm_to_vmem [thread:$0]  %s8387_s4, 2048, %s7973_s24, [#allocation8], %s7862_s2, %s7862_s2, %s7863_s22  }
  0x2b   :  { %s7864_s18 = smov [#allocation10]   ;;  %s7865_s20 = smov [#allocation13]  }
  0x2c   :  { %s91_s19 = sshll.u32 %s7864_s18, 4  ;;  %s113_s21 = sshll.u32 %s7865_s20, 4  ;;  %s92_s19 = int_to_ptr.vmem [resolvable:$true] %s91_s19  ;;  %s114_s21 = int_to_ptr.vmem [resolvable:$true] %s113_s21 }
  0x2d   :  { %s7558_s26 = scalar_lea.hbm %s8389_s6, 32 }
  0x2e   :  { %p7559_p2 = scmp.ne.s32.totalorder %s8389_s6, %s7558_s26  ;;  %p7562_p3 = scmp.lt.u32.totalorder %s7558_s26, %s8389_s6 }
  0x30   :  { %p7564_p4 = pnand %p7562_p3, %p7559_p2 }
  0x32   :  { %7567 = shalt.err (!%p7564_p4)
}
  0x33   :  { %s7568_s4 = scalar_lea.vmem %s92_s19, 32  ;;  %p7573_p6 = scmp.lt.s32.totalorder %s92_s19, %s92_s19 }
  0x34   :  { %p7569_p5 = scmp.ne.s32.totalorder %s92_s19, %s7568_s4  ;;  %p7574_p7 = scmp.lt.s32.totalorder %s7568_s4, %s7568_s4 }
  0x36   :  { %p7575_p8 = por %p7574_p7, %p7573_p6 }
  0x38   :  { %p7576_p9 = pnand %p7575_p8, %p7569_p5 }
  0x3a   :  { %7579 = shalt.err (!%p7576_p9)
}
  0x3b   :  { %94 = dma.hbm_to_vmem [thread:$0]  %s8389_s6, 32, %s92_s19, [#allocation11]  }
  0x3c   :  { %s7580_s17 = scalar_lea.hbm %s8391_s8, 64 }
  0x3d   :  { %p7581_p10 = scmp.ne.s32.totalorder %s8391_s8, %s7580_s17  ;;  %p7584_p11 = scmp.lt.u32.totalorder %s7580_s17, %s8391_s8 }
  0x3f   :  { %p7586_p12 = pnand %p7584_p11, %p7581_p10 }
  0x41   :  { %7589 = shalt.err (!%p7586_p12)
}
  0x42   :  { %s7590_s26 = scalar_lea.vmem %s114_s21, 64  ;;  %p7595_p0 = scmp.lt.s32.totalorder %s114_s21, %s114_s21 }
  0x43   :  { %p7591_p13 = scmp.ne.s32.totalorder %s114_s21, %s7590_s26  ;;  %p7596_p1 = scmp.lt.s32.totalorder %s7590_s26, %s7590_s26 }
  0x45   :  { %p7597_p2 = por %p7596_p1, %p7595_p0 }
  0x47   :  { %p7598_p3 = pnand %p7597_p2, %p7591_p13 }
  0x49   :  { %7601 = shalt.err (!%p7598_p3)
}
  0x4a   :  { %116 = dma.hbm_to_vmem [thread:$0]  %s8391_s8, 64, %s114_s21, [#allocation14]  }
  0x4b   :  { %s7866_s27 = smov [#allocation16]   ;;  %s7602_s4 = scalar_lea.hbm %s8393_s10, 32768 }
  0x4c   :  { %s132_s28 = sshll.u32 %s7866_s27, 4  ;;  %p7603_p4 = scmp.ne.s32.totalorder %s8393_s10, %s7602_s4  ;;  %s133_s28 = int_to_ptr.vmem [resolvable:$true] %s132_s28 }
  0x4d   :  { %p7606_p5 = scmp.lt.u32.totalorder %s7602_s4, %s8393_s10 }
  0x4f   :  { %p7608_p6 = pnand %p7606_p5, %p7603_p4 }
  0x51   :  { %7611 = shalt.err (!%p7608_p6)
}
  0x52   :  { %s7612_s17 = scalar_lea.vmem %s133_s28, 32768  ;;  %p7617_p8 = scmp.lt.s32.totalorder %s133_s28, %s133_s28 }
  0x53   :  { %p7613_p7 = scmp.ne.s32.totalorder %s133_s28, %s7612_s17  ;;  %p7618_p9 = scmp.lt.s32.totalorder %s7612_s17, %s7612_s17 }
  0x55   :  { %p7619_p10 = por %p7618_p9, %p7617_p8 }
  0x57   :  { %p7620_p11 = pnand %p7619_p10, %p7613_p7 }
  0x59   :  { %7623 = shalt.err (!%p7620_p11)
}
  0x5a   :  { %s7867_s8 = smov 512   ;;  %s7868_s21 = smov 32  }
  0x5b   :  { %138 = dma.hbm_to_vmem [thread:$0]  %s8393_s10, 32768, %s133_s28, [#allocation17], %s7867_s8, %s7867_s8, %s7868_s21  }
  0x5c   :  { %s7869_s23 = smov [#allocation19]   ;;  %s7870_s26 = smov [#allocation22]  }
  0x5d   :  { %s155_s25 = sshll.u32 %s7869_s23, 4  ;;  %s177_s6 = sshll.u32 %s7870_s26, 4  ;;  %s156_s25 = int_to_ptr.vmem [resolvable:$true] %s155_s25  ;;  %s178_s6 = int_to_ptr.vmem [resolvable:$true] %s177_s6 }
  0x5e   :  { %s7624_s29 = scalar_lea.hbm %s8395_s12, 128 }
  0x5f   :  { %p7625_p12 = scmp.ne.s32.totalorder %s8395_s12, %s7624_s29  ;;  %p7628_p13 = scmp.lt.u32.totalorder %s7624_s29, %s8395_s12 }
  0x61   :  { %p7630_p0 = pnand %p7628_p13, %p7625_p12 }
  0x63   :  { %7633 = shalt.err (!%p7630_p0)
}
  0x64   :  { %s7634_s10 = scalar_lea.vmem %s156_s25, 128  ;;  %p7639_p2 = scmp.lt.s32.totalorder %s156_s25, %s156_s25 }
  0x65   :  { %p7635_p1 = scmp.ne.s32.totalorder %s156_s25, %s7634_s10  ;;  %p7640_p3 = scmp.lt.s32.totalorder %s7634_s10, %s7634_s10 }
  0x67   :  { %p7641_p4 = por %p7640_p3, %p7639_p2 }
  0x69   :  { %p7642_p5 = pnand %p7641_p4, %p7635_p1 }
  0x6b   :  { %7645 = shalt.err (!%p7642_p5)
}
  0x6c   :  { %158 = dma.hbm_to_vmem [thread:$0]  %s8395_s12, 128, %s156_s25, [#allocation20]  }
  0x6d   :  { %s7646_s8 = scalar_lea.hbm %s8397_s14, 96 }
  0x6e   :  { %p7647_p6 = scmp.ne.s32.totalorder %s8397_s14, %s7646_s8  ;;  %p7650_p7 = scmp.lt.u32.totalorder %s7646_s8, %s8397_s14 }
  0x70   :  { %p7652_p8 = pnand %p7650_p7, %p7647_p6 }
  0x72   :  { %7655 = shalt.err (!%p7652_p8)
}
  0x73   :  { %s7656_s26 = scalar_lea.vmem %s178_s6, 96  ;;  %p7661_p10 = scmp.lt.s32.totalorder %s178_s6, %s178_s6 }
  0x74   :  { %p7657_p9 = scmp.ne.s32.totalorder %s178_s6, %s7656_s26  ;;  %p7662_p11 = scmp.lt.s32.totalorder %s7656_s26, %s7656_s26 }
  0x76   :  { %p7663_p12 = por %p7662_p11, %p7661_p10 }
  0x78   :  { %p7664_p13 = pnand %p7663_p12, %p7657_p9 }
  0x7a   :  { %7667 = shalt.err (!%p7664_p13)
}
  0x7b   :  { %180 = dma.hbm_to_vmem [thread:$0]  %s8397_s14, 96, %s178_s6, [#allocation23]  }
  0x7c   :  { %s7871_s19 = smov [#allocation2]   ;;  %s7668_s4 = scalar_lea.hbm %s8384_s1, 1024 }
  0x7d   :  { %s36_s27 = sshll.u32 %s7871_s19, 4  ;;  %p7669_p0 = scmp.ne.s32.totalorder %s8384_s1, %s7668_s4  ;;  %s37_s27 = int_to_ptr.vmem [resolvable:$true] %s36_s27 }
  0x7e   :  { %p7672_p1 = scmp.lt.u32.totalorder %s7668_s4, %s8384_s1 }
  0x80   :  { %p7674_p2 = pnand %p7672_p1, %p7669_p0 }
  0x82   :  { %7677 = shalt.err (!%p7674_p2)
}
  0x83   :  { %s7678_s22 = scalar_lea.vmem %s37_s27, 1024  ;;  %p7683_p4 = scmp.lt.s32.totalorder %s37_s27, %s37_s27 }
  0x84   :  { %p7679_p3 = scmp.ne.s32.totalorder %s37_s27, %s7678_s22  ;;  %p7684_p5 = scmp.lt.s32.totalorder %s7678_s22, %s7678_s22 }
  0x86   :  { %p7685_p6 = por %p7684_p5, %p7683_p4 }
  0x88   :  { %p7686_p7 = pnand %p7685_p6, %p7679_p3 }
  0x8a   :  { %7689 = shalt.err (!%p7686_p7)
}
  0x8b   :  { %s7872_s14 = smov 64   ;;  %s7873_s6 = smov 4  }
  0x8c   :  { %42 = dma.hbm_to_vmem [thread:$0]  %s8384_s1, 1024, %s37_s27, [#allocation3], %s7872_s14, %s7872_s14, %s7873_s6  }
  0x8d   :  { %s7874_s8 = smov [#allocation6]   ;;  %s7875_s18 = smov [#allocation9]  }
  0x8e   :  { %s59_s21 = sshll.u32 %s7874_s8, 4  ;;  %s81_s20 = sshll.u32 %s7875_s18, 4  ;;  %s60_s21 = int_to_ptr.vmem [resolvable:$true] %s59_s21  ;;  %s82_s20 = int_to_ptr.vmem [resolvable:$true] %s81_s20 }
  0x8f   :  { %s7690_s12 = scalar_lea.hbm %s8386_s3, 16 }
  0x90   :  { %p7691_p8 = scmp.ne.s32.totalorder %s8386_s3, %s7690_s12  ;;  %p7694_p9 = scmp.lt.u32.totalorder %s7690_s12, %s8386_s3 }
  0x92   :  { %p7696_p10 = pnand %p7694_p9, %p7691_p8 }
  0x94   :  { %7699 = shalt.err (!%p7696_p10)
}
  0x95   :  { %s7700_s1 = scalar_lea.vmem %s60_s21, 16  ;;  %s7704_s27 = scalar_lea.vmem %s60_s21, 32 }
  0x96   :  { %p7701_p11 = scmp.ne.s32.totalorder %s60_s21, %s7700_s1  ;;  %p7705_p12 = scmp.lt.s32.totalorder %s60_s21, %s60_s21 }
  0x97   :  { %p7706_p13 = scmp.lt.s32.totalorder %s7704_s27, %s7700_s1 }
  0x99   :  { %p7707_p0 = por %p7706_p13, %p7705_p12 }
  0x9b   :  { %p7708_p1 = pnand %p7707_p0, %p7701_p11 }
  0x9d   :  { %7711 = shalt.err (!%p7708_p1)
}
  0x9e   :  { %62 = dma.hbm_to_vmem [thread:$0]  %s8386_s3, 16, %s60_s21, [#allocation5]  }
  0x9f   :  { %s7712_s28 = scalar_lea.hbm %s8388_s5, 32 }
  0xa0   :  { %p7713_p2 = scmp.ne.s32.totalorder %s8388_s5, %s7712_s28  ;;  %p7716_p3 = scmp.lt.u32.totalorder %s7712_s28, %s8388_s5 }
  0xa2   :  { %p7718_p4 = pnand %p7716_p3, %p7713_p2 }
  0xa4   :  { %7721 = shalt.err (!%p7718_p4)
}
  0xa5   :  { %s7722_s17 = scalar_lea.vmem %s82_s20, 32  ;;  %p7727_p6 = scmp.lt.s32.totalorder %s82_s20, %s82_s20 }
  0xa6   :  { %p7723_p5 = scmp.ne.s32.totalorder %s82_s20, %s7722_s17  ;;  %p7728_p7 = scmp.lt.s32.totalorder %s7722_s17, %s7722_s17 }
  0xa8   :  { %p7729_p8 = por %p7728_p7, %p7727_p6 }
  0xaa   :  { %p7730_p9 = pnand %p7729_p8, %p7723_p5 }
  0xac   :  { %7733 = shalt.err (!%p7730_p9)
}
  0xad   :  { %84 = dma.hbm_to_vmem [thread:$0]  %s8388_s5, 32, %s82_s20, [#allocation8]  }
  0xae   :  { %s7876_s21 = smov [#allocation12]   ;;  %s7734_s12 = scalar_lea.hbm %s8390_s7, 8192 }
  0xaf   :  { %s100_s18 = sshll.u32 %s7876_s21, 4  ;;  %p7735_p10 = scmp.ne.s32.totalorder %s8390_s7, %s7734_s12  ;;  %s101_s18 = int_to_ptr.vmem [resolvable:$true] %s100_s18 }
  0xb0   :  { %p7738_p11 = scmp.lt.u32.totalorder %s7734_s12, %s8390_s7 }
  0xb2   :  { %p7740_p12 = pnand %p7738_p11, %p7735_p10 }
  0xb4   :  { %7743 = shalt.err (!%p7740_p12)
}
  0xb5   :  { %s7744_s1 = scalar_lea.vmem %s101_s18, 8192  ;;  %p7749_p0 = scmp.lt.s32.totalorder %s101_s18, %s101_s18 }
  0xb6   :  { %p7745_p13 = scmp.ne.s32.totalorder %s101_s18, %s7744_s1  ;;  %p7750_p1 = scmp.lt.s32.totalorder %s7744_s1, %s7744_s1 }
  0xb8   :  { %p7751_p2 = por %p7750_p1, %p7749_p0 }
  0xba   :  { %p7752_p3 = pnand %p7751_p2, %p7745_p13 }
  0xbc   :  { %7755 = shalt.err (!%p7752_p3)
}
  0xbd   :  { %s7877_s5 = smov 256   ;;  %s7878_s20 = smov 16  }
  0xbe   :  { %106 = dma.hbm_to_vmem [thread:$0]  %s8390_s7, 8192, %s101_s18, [#allocation11], %s7877_s5, %s7877_s5, %s7878_s20  }
  0xbf   :  { %s7879_s24 = smov [#allocation15]   ;;  %s7880_s10 = smov [#allocation18]  }
  0xc0   :  { %s123_s2 = sshll.u32 %s7879_s24, 4  ;;  %s145_s28 = sshll.u32 %s7880_s10, 4  ;;  %s124_s2 = int_to_ptr.vmem [resolvable:$true] %s123_s2  ;;  %s146_s28 = int_to_ptr.vmem [resolvable:$true] %s145_s28 }
  0xc1   :  { %s7756_s6 = scalar_lea.hbm %s8392_s9, 64 }
  0xc2   :  { %p7757_p4 = scmp.ne.s32.totalorder %s8392_s9, %s7756_s6  ;;  %p7760_p5 = scmp.lt.u32.totalorder %s7756_s6, %s8392_s9 }
  0xc4   :  { %p7762_p6 = pnand %p7760_p5, %p7757_p4 }
  0xc6   :  { %7765 = shalt.err (!%p7762_p6)
}
  0xc7   :  { %s7766_s7 = scalar_lea.vmem %s124_s2, 64  ;;  %p7771_p8 = scmp.lt.s32.totalorder %s124_s2, %s124_s2 }
  0xc8   :  { %p7767_p7 = scmp.ne.s32.totalorder %s124_s2, %s7766_s7  ;;  %p7772_p9 = scmp.lt.s32.totalorder %s7766_s7, %s7766_s7 }
  0xca   :  { %p7773_p10 = por %p7772_p9, %p7771_p8 }
  0xcc   :  { %p7774_p11 = pnand %p7773_p10, %p7767_p7 }
  0xce   :  { %7777 = shalt.err (!%p7774_p11)
}
  0xcf   :  { %126 = dma.hbm_to_vmem [thread:$0]  %s8392_s9, 64, %s124_s2, [#allocation14]  }
  0xd0   :  { %s7778_s12 = scalar_lea.hbm %s8394_s11, 128 }
  0xd1   :  { %p7779_p12 = scmp.ne.s32.totalorder %s8394_s11, %s7778_s12  ;;  %p7782_p13 = scmp.lt.u32.totalorder %s7778_s12, %s8394_s11 }
  0xd3   :  { %p7784_p0 = pnand %p7782_p13, %p7779_p12 }
  0xd5   :  { %7787 = shalt.err (!%p7784_p0)
}
  0xd6   :  { %s7788_s1 = scalar_lea.vmem %s146_s28, 128  ;;  %p7793_p2 = scmp.lt.s32.totalorder %s146_s28, %s146_s28 }
  0xd7   :  { %p7789_p1 = scmp.ne.s32.totalorder %s146_s28, %s7788_s1  ;;  %p7794_p3 = scmp.lt.s32.totalorder %s7788_s1, %s7788_s1 }
  0xd9   :  { %p7795_p4 = por %p7794_p3, %p7793_p2 }
  0xdb   :  { %p7796_p5 = pnand %p7795_p4, %p7789_p1 }
  0xdd   :  { %7799 = shalt.err (!%p7796_p5)
}
  0xde   :  { %148 = dma.hbm_to_vmem [thread:$0]  %s8394_s11, 128, %s146_s28, [#allocation17]  }
  0xdf   :  { %s7881_s20 = smov [#allocation21]   ;;  %s7800_s2 = scalar_lea.hbm %s8396_s13, 49152 }
  0xe0   :  { %s164_s27 = sshll.u32 %s7881_s20, 4  ;;  %p7801_p6 = scmp.ne.s32.totalorder %s8396_s13, %s7800_s2  ;;  %s165_s27 = int_to_ptr.vmem [resolvable:$true] %s164_s27 }
  0xe1   :  { %p7804_p7 = scmp.lt.u32.totalorder %s7800_s2, %s8396_s13 }
  0xe3   :  { %p7806_p8 = pnand %p7804_p7, %p7801_p6 }
  0xe5   :  { %7809 = shalt.err (!%p7806_p8)
}
  0xe6   :  { %s7810_s0 = scalar_lea.vmem %s165_s27, 49152  ;;  %p7815_p10 = scmp.lt.s32.totalorder %s165_s27, %s165_s27 }
  0xe7   :  { %p7811_p9 = scmp.ne.s32.totalorder %s165_s27, %s7810_s0  ;;  %p7816_p11 = scmp.lt.s32.totalorder %s7810_s0, %s7810_s0 }
  0xe9   :  { %p7817_p12 = por %p7816_p11, %p7815_p10 }
  0xeb   :  { %p7818_p13 = pnand %p7817_p12, %p7811_p9 }
  0xed   :  { %7821 = shalt.err (!%p7818_p13)
}
  0xee   :  { %s7882_s11 = smov 384   ;;  %s7883_s28 = smov 24  }
  0xef   :  { %170 = dma.hbm_to_vmem [thread:$0]  %s8396_s13, 49152, %s165_s27, [#allocation20], %s7882_s11, %s7882_s11, %s7883_s28  }
  0xf0   :  { %s7884_s8 = smov [#allocation24]   ;;  %s7822_s23 = scalar_lea.hbm %s8398_s15, 96 }
  0xf1   :  { %s187_s7 = sshll.u32 %s7884_s8, 4  ;;  %p7823_p0 = scmp.ne.s32.totalorder %s8398_s15, %s7822_s23  ;;  %s188_s7 = int_to_ptr.vmem [resolvable:$true] %s187_s7 }
  0xf2   :  { %p7826_p1 = scmp.lt.u32.totalorder %s7822_s23, %s8398_s15 }
  0xf4   :  { %p7828_p2 = pnand %p7826_p1, %p7823_p0 }
  0xf6   :  { %7831 = shalt.err (!%p7828_p2)
}
  0xf7   :  { %s7832_s29 = scalar_lea.vmem %s188_s7, 96  ;;  %p7837_p4 = scmp.lt.s32.totalorder %s188_s7, %s188_s7 }
  0xf8   :  { %p7833_p3 = scmp.ne.s32.totalorder %s188_s7, %s7832_s29  ;;  %p7838_p5 = scmp.lt.s32.totalorder %s7832_s29, %s7832_s29 }
  0xfa   :  { %p7839_p6 = por %p7838_p5, %p7837_p4 }
  0xfc   :  { %p7840_p7 = pnand %p7839_p6, %p7833_p3 }
  0xfe   :  { %7843 = shalt.err (!%p7840_p7)
}
  0xff   :  { %190 = dma.hbm_to_vmem [thread:$0]  %s8398_s15, 96, %s188_s7, [#allocation23]  }
 0x100   :  { %7844 = dma.done.wait [#allocation3], 1024  }
 0x101   :  { %7845 = vsyncadd [#allocation3], 4294966272 }
 0x102   :  { %7846 = dma.done.wait [#allocation5], 32  }
 0x103   :  { %7847 = vsyncadd [#allocation5], 4294967264 }
 0x104   :  { %7848 = dma.done.wait [#allocation8], 2080  }
 0x105   :  { %7849 = vsyncadd [#allocation8], 4294965216 }
 0x106   :  { %7850 = dma.done.wait [#allocation11], 8224  }
 0x107   :  { %7851 = vsyncadd [#allocation11], 4294959072 }
 0x108   :  { %7852 = dma.done.wait [#allocation14], 128  }
 0x109   :  { %7853 = vsyncadd [#allocation14], 4294967168 }
 0x10a   :  { %7854 = dma.done.wait [#allocation17], 32896  }
 0x10b   :  { %7855 = vsyncadd [#allocation17], 4294934400 }
 0x10c   :  { %7856 = dma.done.wait [#allocation20], 49280  }
 0x10d   :  { %7857 = vsyncadd [#allocation20], 4294918016 }
 0x10e   :  { %7858 = dma.done.wait [#allocation23], 192  }
 0x10f   :  { %7859 = vsyncadd [#allocation23], 4294967104  ;;  %v7885_v0 = vmov 0.0   ;;  %vm7886_vm0 = vmmov 0   ;;  %v6798_v1 = vld [vmem:[#allocation2] sm:$0xff]   ;;  %v6799_v2 = vld [vmem:[#allocation2 + $0x8] sm:$0xff]  }
 0x110   :  { %6700 = vmatprep.subr.bf16.mxu0 %v7885_v0  ;;  %6716 = vmatprep.mubr.msk.bf16.mxu0 %vm7886_vm0, %v7885_v0  ;;  %v6800_v3 = vld [vmem:[#allocation2 + $0x10] sm:$0xff]   ;;  %v6808_v5 = vld [vmem:[#allocation7] ss:$8 sps:$4 sm:$0xff]   ;;  %v6801_v6 = vld [vmem:[#allocation2 + $0x18] sm:$0xff]   ;;  %s8401_s9 = sld [smem:[#allocation33_spill]]  ;;  %v7887_v26 = vmov 0  }
 0x111   :  { %6701 = vmatpush3.bf16.msra.mxu0 %v6798_v1  ;;  %v6806_v4 = vld [vmem:[#allocation7 + $0x4] ss:$8 sps:$4 sm:$0xff]   ;;  %v6809_v7 = vld [vmem:[#allocation7 + $0x14] ss:$8 sps:$4 sm:$0xff]   ;;  %v6811_v8 = vld [vmem:[#allocation7 + $0x10] ss:$8 sps:$4 sm:$0xff]   ;;  %490 = vmatprep.mubr.bf16.mxu1 %v7887_v26 }
 0x112   :  { %6702 = vmatprep.subr.bf16.mxu0 %v7885_v0  ;;  %458 = vmatprep.subr.bf16.mxu1 %v6806_v4  ;;  %v6812_v9 = vld [vmem:[#allocation7 + $0x24] ss:$8 sps:$4 sm:$0xff]   ;;  %v6802_v10 = vld [vmem:[#allocation2 + $0x20] sm:$0xff]   ;;  %v6817_v14 = vld [vmem:[#allocation7 + $0x30] ss:$8 sps:$4 sm:$0xff]  }
 0x113   :  { %459 = vmatpush1.bf16.msra.mxu1 %v6808_v5  ;;  %v6814_v11 = vld [vmem:[#allocation7 + $0x20] ss:$8 sps:$4 sm:$0xff]   ;;  %v6815_v13 = vld [vmem:[#allocation7 + $0x34] ss:$8 sps:$4 sm:$0xff]   ;;  %v6818_v15 = vld [vmem:[#allocation7 + $0x44] ss:$8 sps:$4 sm:$0xff]  }
 0x114   :  { %460 = vmatprep.subr.bf16.mxu1 %v6809_v7  ;;  %v6803_v12 = vld [vmem:[#allocation2 + $0x28] sm:$0xff]   ;;  %v6804_v16 = vld [vmem:[#allocation2 + $0x30] sm:$0xff]   ;;  %v6821_v18 = vld [vmem:[#allocation7 + $0x54] ss:$8 sps:$4 sm:$0xff]   ;;  %v501_v7 = vlaneseq }
 0x115   :  { %6703 = vmatpush3.bf16.msra.mxu0 %v6799_v2  ;;  %v6820_v17 = vld [vmem:[#allocation7 + $0x40] ss:$8 sps:$4 sm:$0xff]   ;;  %v6805_v19 = vld [vmem:[#allocation2 + $0x38] sm:$0xff]   ;;  %v6824_v22 = vld [vmem:[#allocation7 + $0x64] ss:$8 sps:$4 sm:$0xff]  }
 0x116   :  { %6704 = vmatprep.subr.bf16.mxu0 %v7885_v0  ;;  %v6823_v20 = vld [vmem:[#allocation7 + $0x50] ss:$8 sps:$4 sm:$0xff]   ;;  %v237_v21 = vld [vmem:[%s8401_s9] sm:$0xf]  ;;  %v6826_v23 = vld [vmem:[#allocation7 + $0x60] ss:$8 sps:$4 sm:$0xff]  }
 0x117   :  { %461 = vmatpush1.bf16.msra.mxu1 %v6811_v8  ;;  %v6827_v24 = vld [vmem:[#allocation7 + $0x74] ss:$8 sps:$4 sm:$0xff]   ;;  %v6829_v25 = vld [vmem:[#allocation7 + $0x70] ss:$8 sps:$4 sm:$0xff]   ;;  %v8163_v8 = vshrl.u32 %v501_v7, 7 }
 0x118   :  { %462 = vmatprep.subr.bf16.mxu1 %v6812_v9  ;;  %v6832_v27 = vld [vmem:[#allocation12 + $0x4] ss:$16 sps:$4 sm:$0xff]   ;;  %v5969_v28 = vld [vmem:[#allocation4] ss:$0 sm:$0xff]  ;;  %v5970_v30 = vld [vmem:[#allocation6] ss:$0 sm:$0xff] }
 0x119   :  { %6705 = vmatpush3.bf16.msra.mxu0 %v6800_v3  ;;  %v6830_v38 = vld [vmem:[#allocation12] ss:$16 sps:$4 sm:$0xff]   ;;  %v6835_v40 = vld [vmem:[#allocation12 + $0x24] ss:$16 sps:$4 sm:$0xff]   ;;  %v8166_v9 = vsub.s32 0, %v8163_v8 }
 0x11a   :  { %6706 = vmatprep.subr.bf16.mxu0 %v7885_v0  ;;  %v6833_v41 = vld [vmem:[#allocation12 + $0x20] ss:$16 sps:$4 sm:$0xff]   ;;  %v6838_v42 = vld [vmem:[#allocation12 + $0x44] ss:$16 sps:$4 sm:$0xff]  }
 0x11b   :  { %463 = vmatpush1.bf16.msra.mxu1 %v6814_v11  ;;  %v6836_v43 = vld [vmem:[#allocation12 + $0x40] ss:$16 sps:$4 sm:$0xff]   ;;  %v6841_v44 = vld [vmem:[#allocation12 + $0x64] ss:$16 sps:$4 sm:$0xff]   ;;  %v8169_v11 = vsub.s32 1, %v8163_v8 }
 0x11c   :  { %464 = vmatprep.subr.bf16.mxu1 %v6815_v13  ;;  %v6839_v45 = vld [vmem:[#allocation12 + $0x60] ss:$16 sps:$4 sm:$0xff]   ;;  %v6844_v46 = vld [vmem:[#allocation12 + $0x84] ss:$16 sps:$4 sm:$0xff]  }
 0x11d   :  { %6707 = vmatpush3.bf16.msra.mxu0 %v6801_v6  ;;  %v6842_v47 = vld [vmem:[#allocation12 + $0x80] ss:$16 sps:$4 sm:$0xff]   ;;  %v6847_v48 = vld [vmem:[#allocation12 + $0xa4] ss:$16 sps:$4 sm:$0xff]   ;;  %v6880_v6 = vld [vmem:[#allocation12 + $0xc] ss:$16 sps:$4 sm:$0xff]  }
 0x11e   :  { %6708 = vmatprep.subr.bf16.mxu0 %v7885_v0  ;;  %v6845_v49 = vld [vmem:[#allocation12 + $0xa0] ss:$16 sps:$4 sm:$0xff]   ;;  %v6850_v50 = vld [vmem:[#allocation12 + $0xc4] ss:$16 sps:$4 sm:$0xff]  }
 0x11f   :  { %465 = vmatpush1.bf16.msra.mxu1 %v6817_v14  ;;  %v6848_v51 = vld [vmem:[#allocation12 + $0xc0] ss:$16 sps:$4 sm:$0xff]   ;;  %v6853_v52 = vld [vmem:[#allocation12 + $0xe4] ss:$16 sps:$4 sm:$0xff]  }
 0x120   :  { %466 = vmatprep.subr.bf16.mxu1 %v6818_v15  ;;  %v6851_v53 = vld [vmem:[#allocation12 + $0xe0] ss:$16 sps:$4 sm:$0xff]   ;;  %v6856_v54 = vld [vmem:[#allocation12 + $0x104] ss:$16 sps:$4 sm:$0xff]  }
 0x121   :  { %6709 = vmatpush3.bf16.msra.mxu0 %v6802_v10  ;;  %v6854_v55 = vld [vmem:[#allocation12 + $0x100] ss:$16 sps:$4 sm:$0xff]   ;;  %v6859_v56 = vld [vmem:[#allocation12 + $0x124] ss:$16 sps:$4 sm:$0xff]   ;;  %v499_v10 = vld [vmem:[#allocation9] sm:$0x3] }
 0x122   :  { %6710 = vmatprep.subr.bf16.mxu0 %v7885_v0  ;;  %v6857_v57 = vld [vmem:[#allocation12 + $0x120] ss:$16 sps:$4 sm:$0xff]   ;;  %v6862_v58 = vld [vmem:[#allocation12 + $0x144] ss:$16 sps:$4 sm:$0xff]   ;;  %v504_v13 = vrot.slane %v499_v10, %v8166_v9  ;;  %v508_v14 = vrot.slane %v499_v10, %v8169_v11 }
 0x123   :  { %467 = vmatpush1.bf16.msra.mxu1 %v6820_v17  ;;  %v6860_v59 = vld [vmem:[#allocation12 + $0x140] ss:$16 sps:$4 sm:$0xff]   ;;  %v6865_v60 = vld [vmem:[#allocation12 + $0x164] ss:$16 sps:$4 sm:$0xff]  }
 0x124   :  { %468 = vmatprep.subr.bf16.mxu1 %v6821_v18  ;;  %v6863_v61 = vld [vmem:[#allocation12 + $0x160] ss:$16 sps:$4 sm:$0xff]   ;;  %v6868_v62 = vld [vmem:[#allocation12 + $0x184] ss:$16 sps:$4 sm:$0xff]  }
 0x125   :  { %6711 = vmatpush3.bf16.msra.mxu0 %v6803_v12  ;;  %v6866_v63 = vld [vmem:[#allocation12 + $0x180] ss:$16 sps:$4 sm:$0xff]   ;;  %v6874_v2 = vld [vmem:[#allocation12 + $0x1c4] ss:$16 sps:$4 sm:$0xff]   ;;  %v513_v12 = vld [vmem:[#allocation10] sm:$0x3] }
 0x126   :  { %6712 = vmatprep.subr.bf16.mxu0 %v7885_v0  ;;  %v6869_v1 = vld [vmem:[#allocation12 + $0x1a0] ss:$16 sps:$4 sm:$0xff]   ;;  %v6877_v4 = vld [vmem:[#allocation12 + $0x1e4] ss:$16 sps:$4 sm:$0xff]   ;;  %v518_v15 = vrot.slane %v513_v12, %v8166_v9  ;;  %v522_v17 = vrot.slane %v513_v12, %v8169_v11  ;;  %v1093_v12 = vld [vmem:[#allocation16 + $0xc0] sm:$0xff] }
 0x127   :  { %469 = vmatpush1.bf16.msra.mxu1 %v6823_v20  ;;  %v6872_v3 = vld [vmem:[#allocation12 + $0x1c0] ss:$16 sps:$4 sm:$0xff]  }
 0x128   :  { %470 = vmatprep.subr.bf16.mxu1 %v6824_v22  ;;  %v6875_v5 = vld [vmem:[#allocation12 + $0x1e0] ss:$16 sps:$4 sm:$0xff]  }
 0x129   :  { %6713 = vmatpush3.bf16.msra.mxu0 %v6804_v16 }
 0x12a   :  { %6714 = vmatprep.subr.bf16.mxu0 %v7885_v0  ;;  %v6871_v0 = vld [vmem:[#allocation12 + $0x1a4] ss:$16 sps:$4 sm:$0xff]  }
 0x12b   :  { %471 = vmatpush1.bf16.msra.mxu1 %v6826_v23 }
 0x12c   :  { %472 = vmatprep.subr.bf16.mxu1 %v6827_v24 }
 0x12d   :  { %6715 = vmatpush3.bf16.msra.mxu0 %v6805_v19 }
 0x12f   :  { %473 = vmatpush1.bf16.msra.mxu1 %v6829_v25 }
 0x130   :  { %6717 = vmatmul.mubr.bf16.vlgmr.msra.gmra.mrb[0].mxu0 %v237_v21  ;;  %919 = vmatprep.subr.bf16.mxu1 %v6832_v27 }
 0x203   :  { %v336_v29 = vpop.f32.mrb[0].mxu0 }
 0x204   :  { %v349_v31 = vmul.f32 %v5969_v28, %v336_v29  ;;  %v6718_v32 = vpop.f32.mrb[1].mxu0 }
 0x205   :  { %v339_v33 = vpop.f32.mrb[2].mxu0  ;;  %v6883_v32 = vld [vmem:[#allocation12 + $0x2c] ss:$16 sps:$4 sm:$0xff]  }
 0x206   :  { %v357_v34 = vadd.f32 %v5970_v30, %v349_v31  ;;  %v6719_v35 = vpop.f32.mrb[3].mxu0  ;;  %v6878_v30 = vld [vmem:[#allocation12 + $0x8] ss:$16 sps:$4 sm:$0xff]  }
 0x207   :  { %v6881_v33 = vld [vmem:[#allocation12 + $0x28] ss:$16 sps:$4 sm:$0xff]  }
 0x208   :  { %v359_v36 = vmul.f32 0.2, %v357_v34  ;;  %vm358_vm1 = vcmp.ge.f32.partialorder %v357_v34, 0.0  ;;  %v6884_v35 = vld [vmem:[#allocation12 + $0x48] ss:$16 sps:$4 sm:$0xff]  }
 0x20a   :  { %v360_v37 = vsel %vm358_vm1, %v357_v34, %v359_v36  ;;  %v6886_v34 = vld [vmem:[#allocation12 + $0x4c] ss:$16 sps:$4 sm:$0xff]  }
 0x20b   :  { %v361_v39 = vpack.c.bf16 %v360_v37, %v360_v37  ;;  %v6889_v36 = vld [vmem:[#allocation12 + $0x6c] ss:$16 sps:$4 sm:$0xff]   ;;  %v6887_v37 = vld [vmem:[#allocation12 + $0x68] ss:$16 sps:$4 sm:$0xff]  }
 0x20d   :  { %491 = vmatmul.mubr.bf16.vlgmr.msra.gmra.mrb[0].mxu1 %v361_v39  ;;  %v6890_v39 = vld [vmem:[#allocation12 + $0x88] ss:$16 sps:$4 sm:$0xff]  }
 0x20e   :  { %920 = vmatpush1.bf16.msra.mxu1 %v6830_v38  ;;  %v6892_v38 = vld [vmem:[#allocation12 + $0x8c] ss:$16 sps:$4 sm:$0xff]  }
 0x20f   :  { %921 = vmatprep.subr.bf16.mxu1 %v6835_v40  ;;  %v6895_v40 = vld [vmem:[#allocation12 + $0xac] ss:$16 sps:$4 sm:$0xff]  }
 0x212   :  { %922 = vmatpush1.bf16.msra.mxu1 %v6833_v41  ;;  %v6893_v41 = vld [vmem:[#allocation12 + $0xa8] ss:$16 sps:$4 sm:$0xff]  }
 0x213   :  { %923 = vmatprep.subr.bf16.mxu1 %v6838_v42  ;;  %v6898_v42 = vld [vmem:[#allocation12 + $0xcc] ss:$16 sps:$4 sm:$0xff]  }
 0x216   :  { %924 = vmatpush1.bf16.msra.mxu1 %v6836_v43  ;;  %v6896_v43 = vld [vmem:[#allocation12 + $0xc8] ss:$16 sps:$4 sm:$0xff]  }
 0x217   :  { %925 = vmatprep.subr.bf16.mxu1 %v6841_v44  ;;  %v6901_v44 = vld [vmem:[#allocation12 + $0xec] ss:$16 sps:$4 sm:$0xff]  }
 0x21a   :  { %926 = vmatpush1.bf16.msra.mxu1 %v6839_v45  ;;  %v6899_v45 = vld [vmem:[#allocation12 + $0xe8] ss:$16 sps:$4 sm:$0xff]  }
 0x21b   :  { %927 = vmatprep.subr.bf16.mxu1 %v6844_v46  ;;  %v6904_v46 = vld [vmem:[#allocation12 + $0x10c] ss:$16 sps:$4 sm:$0xff]  }
 0x21e   :  { %928 = vmatpush1.bf16.msra.mxu1 %v6842_v47  ;;  %v6902_v47 = vld [vmem:[#allocation12 + $0x108] ss:$16 sps:$4 sm:$0xff]  }
 0x21f   :  { %929 = vmatprep.subr.bf16.mxu1 %v6847_v48  ;;  %v6907_v48 = vld [vmem:[#allocation12 + $0x12c] ss:$16 sps:$4 sm:$0xff]  }
 0x222   :  { %930 = vmatpush1.bf16.msra.mxu1 %v6845_v49  ;;  %v6905_v49 = vld [vmem:[#allocation12 + $0x128] ss:$16 sps:$4 sm:$0xff]  }
 0x223   :  { %931 = vmatprep.subr.bf16.mxu1 %v6850_v50  ;;  %v6910_v50 = vld [vmem:[#allocation12 + $0x14c] ss:$16 sps:$4 sm:$0xff]  }
 0x226   :  { %932 = vmatpush1.bf16.msra.mxu1 %v6848_v51  ;;  %v6908_v51 = vld [vmem:[#allocation12 + $0x148] ss:$16 sps:$4 sm:$0xff]  }
 0x227   :  { %933 = vmatprep.subr.bf16.mxu1 %v6853_v52  ;;  %v6913_v52 = vld [vmem:[#allocation12 + $0x16c] ss:$16 sps:$4 sm:$0xff]  }
 0x22a   :  { %934 = vmatpush1.bf16.msra.mxu1 %v6851_v53  ;;  %v6911_v53 = vld [vmem:[#allocation12 + $0x168] ss:$16 sps:$4 sm:$0xff]  }
 0x22b   :  { %935 = vmatprep.subr.bf16.mxu1 %v6856_v54  ;;  %v6916_v54 = vld [vmem:[#allocation12 + $0x18c] ss:$16 sps:$4 sm:$0xff]  }
 0x22e   :  { %936 = vmatpush1.bf16.msra.mxu1 %v6854_v55  ;;  %v6914_v55 = vld [vmem:[#allocation12 + $0x188] ss:$16 sps:$4 sm:$0xff]  }
 0x22f   :  { %937 = vmatprep.subr.bf16.mxu1 %v6859_v56  ;;  %v6919_v56 = vld [vmem:[#allocation12 + $0x1ac] ss:$16 sps:$4 sm:$0xff]  }
 0x232   :  { %938 = vmatpush1.bf16.msra.mxu1 %v6857_v57  ;;  %v6917_v57 = vld [vmem:[#allocation12 + $0x1a8] ss:$16 sps:$4 sm:$0xff]  }
 0x233   :  { %939 = vmatprep.subr.bf16.mxu1 %v6862_v58  ;;  %v6922_v58 = vld [vmem:[#allocation12 + $0x1cc] ss:$16 sps:$4 sm:$0xff]  }
 0x236   :  { %940 = vmatpush1.bf16.msra.mxu1 %v6860_v59  ;;  %v6920_v59 = vld [vmem:[#allocation12 + $0x1c8] ss:$16 sps:$4 sm:$0xff]  }
 0x237   :  { %941 = vmatprep.subr.bf16.mxu1 %v6865_v60  ;;  %v6925_v60 = vld [vmem:[#allocation12 + $0x1ec] ss:$16 sps:$4 sm:$0xff]  }
 0x23a   :  { %942 = vmatpush1.bf16.msra.mxu1 %v6863_v61  ;;  %v1069_v61 = vld [vmem:[#allocation16] sm:$0xff] }
 0x23b   :  { %943 = vmatprep.subr.bf16.mxu1 %v6868_v62  ;;  %v1073_v62 = vld [vmem:[#allocation16 + $0x20] sm:$0xff] }
 0x23e   :  { %944 = vmatpush1.bf16.msra.mxu1 %v6866_v63  ;;  %v6923_v63 = vld [vmem:[#allocation12 + $0x1e8] ss:$16 sps:$4 sm:$0xff]  }
 0x23f   :  { %945 = vmatprep.subr.bf16.mxu1 %v6871_v0  ;;  %v6052_v0 = vcombine.high %v1069_v61, %v1073_v62 }
 0x242   :  { %946 = vmatpush1.bf16.msra.mxu1 %v6869_v1  ;;  %v1077_v1 = vld [vmem:[#allocation16 + $0x40] sm:$0xff] }
 0x243   :  { %947 = vmatprep.subr.bf16.mxu1 %v6874_v2  ;;  %v1081_v2 = vld [vmem:[#allocation16 + $0x60] sm:$0xff] }
 0x244   :  { %v6059_v7 = vcombine.low %v1077_v1, %v1081_v2 }
 0x246   :  { %948 = vmatpush1.bf16.msra.mxu1 %v6872_v3  ;;  %v6051_v3 = vcombine.low %v1069_v61, %v1073_v62 }
 0x247   :  { %949 = vmatprep.subr.bf16.mxu1 %v6877_v4  ;;  %v6060_v4 = vcombine.high %v1077_v1, %v1081_v2  ;;  %v1221_v1 = vld [vmem:[#allocation16 + $0x4c0] sm:$0xff] }
 0x248   :  { %v1225_v2 = vld [vmem:[#allocation16 + $0x4e0] sm:$0xff] }
 0x24a   :  { %950 = vmatpush1.bf16.msra.mxu1 %v6875_v5  ;;  %v1085_v5 = vld [vmem:[#allocation16 + $0x80] sm:$0xff] }
 0x24b   :  { %960 = vmatprep.subr.bf16.mxu1 %v6880_v6  ;;  %v1089_v6 = vld [vmem:[#allocation16 + $0xa0] sm:$0xff] }
 0x24c   :  { %v6068_v10 = vcombine.high %v1085_v5, %v1089_v6 }
 0x2e0   :  { %v492_v16 = vpop.f32.mrb[0].mxu1 }
 0x2e1   :  { %v511_v18 = vmul.f32 %v504_v13, %v492_v16  ;;  %v494_v19 = vpop.f32.mrb[1].mxu1  ;;  %v1097_v13 = vld [vmem:[#allocation16 + $0xe0] sm:$0xff] }
 0x2e2   :  { %v512_v20 = vmul.f32 %v508_v14, %v494_v19  ;;  %v496_v21 = vpop.f32.mrb[2].mxu1  ;;  %v6067_v14 = vcombine.low %v1085_v5, %v1089_v6  ;;  %v1101_v16 = vld [vmem:[#allocation16 + $0x100] sm:$0xff] }
 0x2e3   :  { %v525_v22 = vadd.f32 %v518_v15, %v511_v18  ;;  %v497_v23 = vpop.f32.mrb[3].mxu1  ;;  %v6076_v15 = vcombine.high %v1093_v12, %v1097_v13  ;;  %v6075_v18 = vcombine.low %v1093_v12, %v1097_v13  ;;  %v1113_v21 = vld [vmem:[#allocation16 + $0x160] sm:$0xff] }
 0x2e4   :  { %v526_v24 = vadd.f32 %v522_v17, %v512_v20  ;;  %v1105_v17 = vld [vmem:[#allocation16 + $0x120] sm:$0xff] }
 0x2e5   :  { %vm527_vm2 = vcmp.ge.f32.partialorder %v525_v22, 0.0  ;;  %v529_v25 = vmul.f32 0.2, %v525_v22  ;;  %v6084_v19 = vcombine.high %v1101_v16, %v1105_v17  ;;  %v1109_v20 = vld [vmem:[#allocation16 + $0x140] sm:$0xff] }
 0x2e6   :  { %v530_v26 = vmul.f32 0.2, %v526_v24  ;;  %vm528_vm3 = vcmp.ge.f32.partialorder %v526_v24, 0.0  ;;  %v6092_v23 = vcombine.high %v1109_v20, %v1113_v21  ;;  %v1229_v12 = vld [vmem:[#allocation16 + $0x500] sm:$0xff] }
 0x2e7   :  { %v531_v27 = vsel %vm527_vm2, %v525_v22, %v529_v25  ;;  %v6083_v22 = vcombine.low %v1101_v16, %v1105_v17  ;;  %v1121_v25 = vld [vmem:[#allocation16 + $0x1a0] sm:$0xff] }
 0x2e8   :  { %v532_v28 = vsel %vm528_vm3, %v526_v24, %v530_v26  ;;  %v8175_v31 = vpack.c.bf16 %v531_v27, %v531_v27  ;;  %v1117_v24 = vld [vmem:[#allocation16 + $0x180] sm:$0xff]  ;;  %v6091_v26 = vcombine.low %v1109_v20, %v1113_v21 }
 0x2e9   :  { %v534_v29 = vpack.c.bf16 %v532_v28, %v532_v28  ;;  %v6100_v27 = vcombine.high %v1117_v24, %v1121_v25  ;;  %v1125_v28 = vld [vmem:[#allocation16 + $0x1c0] sm:$0xff] }
 0x2ea   :  { %v1233_v13 = vld [vmem:[#allocation16 + $0x520] sm:$0xff] }
 0x2eb   :  { %951 = vmatprep.mubr.bf16.mxu1 %v534_v29  ;;  %v1237_v20 = vld [vmem:[#allocation16 + $0x540] sm:$0xff] }
 0x2ec   :  { %952 = vmatmul.mubr.bf16.vlgmr.msra.gmra.mrb[4].mxu1 %v8175_v31  ;;  %v1241_v21 = vld [vmem:[#allocation16 + $0x560] sm:$0xff] }
 0x2ed   :  { %961 = vmatpush1.bf16.msra.mxu1 %v6878_v30  ;;  %992 = vmatprep.mubr.bf16.mxu1 %v534_v29  ;;  %v1129_v29 = vld [vmem:[#allocation16 + $0x1e0] sm:$0xff]  ;;  %v6099_v30 = vcombine.low %v1117_v24, %v1121_v25 }
 0x2ee   :  { %962 = vmatprep.subr.bf16.mxu1 %v6883_v32  ;;  %v1133_v32 = vld [vmem:[#allocation16 + $0x200] sm:$0xff] }
 0x2f1   :  { %963 = vmatpush1.bf16.msra.mxu1 %v6881_v33  ;;  %v1137_v33 = vld [vmem:[#allocation16 + $0x220] sm:$0xff] }
 0x2f2   :  { %964 = vmatprep.subr.bf16.mxu1 %v6886_v34  ;;  %v6107_v34 = vcombine.low %v1125_v28, %v1129_v29 }
 0x2f5   :  { %965 = vmatpush1.bf16.msra.mxu1 %v6884_v35  ;;  %v6116_v35 = vcombine.high %v1133_v32, %v1137_v33 }
 0x2f6   :  { %966 = vmatprep.subr.bf16.mxu1 %v6889_v36  ;;  %v1141_v36 = vld [vmem:[#allocation16 + $0x240] sm:$0xff] }
 0x2f9   :  { %967 = vmatpush1.bf16.msra.mxu1 %v6887_v37  ;;  %v1145_v37 = vld [vmem:[#allocation16 + $0x260] sm:$0xff] }
 0x2fa   :  { %968 = vmatprep.subr.bf16.mxu1 %v6892_v38  ;;  %v1197_v38 = vld [vmem:[#allocation16 + $0x400] sm:$0xff] }
 0x2fd   :  { %969 = vmatpush1.bf16.msra.mxu1 %v6890_v39  ;;  %v1201_v39 = vld [vmem:[#allocation16 + $0x420] sm:$0xff] }
 0x2fe   :  { %970 = vmatprep.subr.bf16.mxu1 %v6895_v40  ;;  %v6179_v40 = vcombine.low %v1197_v38, %v1201_v39 }
 0x301   :  { %971 = vmatpush1.bf16.msra.mxu1 %v6893_v41  ;;  %v6180_v41 = vcombine.high %v1197_v38, %v1201_v39 }
 0x302   :  { %972 = vmatprep.subr.bf16.mxu1 %v6898_v42  ;;  %v8179_v42 = vld [vmem:[#allocation16 + $0x8] sm:$0xff] }
 0x303   :  { %2646 = vmatprep.subr.bf16.mxu0 %v6180_v41  ;;  %v1265_v41 = vld [vmem:[#allocation16 + $0x620] sm:$0xff] }
 0x304   :  { %2647 = vmatpush1.bf16.msra.mxu0 %v6179_v40  ;;  %v1261_v40 = vld [vmem:[#allocation16 + $0x600] sm:$0xff] }
 0x305   :  { %973 = vmatpush1.bf16.msra.mxu1 %v6896_v43  ;;  %v8181_v43 = vld [vmem:[#allocation16 + $0x28] sm:$0xff] }
 0x306   :  { %974 = vmatprep.subr.bf16.mxu1 %v6901_v44  ;;  %v6115_v44 = vcombine.low %v1133_v32, %v1137_v33  ;;  %v6054_v39 = vcombine.high %v8179_v42, %v8181_v43 }
 0x309   :  { %975 = vmatpush1.bf16.msra.mxu1 %v6899_v45  ;;  %v6124_v45 = vcombine.high %v1141_v36, %v1145_v37 }
 0x30a   :  { %976 = vmatprep.subr.bf16.mxu1 %v6904_v46  ;;  %v1149_v46 = vld [vmem:[#allocation16 + $0x280] sm:$0xff] }
 0x30d   :  { %977 = vmatpush1.bf16.msra.mxu1 %v6902_v47  ;;  %v6053_v47 = vcombine.low %v8179_v42, %v8181_v43  ;;  %v1114_v42 = vld [vmem:[#allocation16 + $0x168] sm:$0xff] }
 0x30e   :  { %978 = vmatprep.subr.bf16.mxu1 %v6907_v48  ;;  %v1153_v48 = vld [vmem:[#allocation16 + $0x2a0] sm:$0xff] }
 0x30f   :  { %v6131_v61 = vcombine.low %v1149_v46, %v1153_v48 }
 0x311   :  { %979 = vmatpush1.bf16.msra.mxu1 %v6905_v49  ;;  %v1205_v49 = vld [vmem:[#allocation16 + $0x440] sm:$0xff] }
 0x312   :  { %980 = vmatprep.subr.bf16.mxu1 %v6910_v50  ;;  %v1209_v50 = vld [vmem:[#allocation16 + $0x460] sm:$0xff] }
 0x315   :  { %981 = vmatpush1.bf16.msra.mxu1 %v6908_v51  ;;  %v6187_v51 = vcombine.low %v1205_v49, %v1209_v50 }
 0x316   :  { %982 = vmatprep.subr.bf16.mxu1 %v6913_v52  ;;  %v6188_v52 = vcombine.high %v1205_v49, %v1209_v50 }
 0x318   :  { %2648 = vmatprep.subr.bf16.mxu0 %v6188_v52  ;;  %v1281_v52 = vld [vmem:[#allocation16 + $0x6a0] sm:$0xff] }
 0x319   :  { %983 = vmatpush1.bf16.msra.mxu1 %v6911_v53  ;;  %v6123_v53 = vcombine.low %v1141_v36, %v1145_v37  ;;  %2649 = vmatpush1.bf16.msra.mxu0 %v6187_v51  ;;  %v1277_v51 = vld [vmem:[#allocation16 + $0x680] sm:$0xff] }
 0x31a   :  { %984 = vmatprep.subr.bf16.mxu1 %v6916_v54  ;;  %v6132_v54 = vcombine.high %v1149_v46, %v1153_v48  ;;  %v1269_v46 = vld [vmem:[#allocation16 + $0x640] sm:$0xff] }
 0x31b   :  { %v1273_v48 = vld [vmem:[#allocation16 + $0x660] sm:$0xff] }
 0x31c   :  { %v6251_v49 = vcombine.low %v1269_v46, %v1273_v48  ;;  %v6252_v50 = vcombine.high %v1269_v46, %v1273_v48  ;;  %v1094_v48 = vld [vmem:[#allocation16 + $0xc8] sm:$0xff] }
 0x31d   :  { %985 = vmatpush1.bf16.msra.mxu1 %v6914_v55  ;;  %v1157_v55 = vld [vmem:[#allocation16 + $0x2c0] sm:$0xff] }
 0x31e   :  { %986 = vmatprep.subr.bf16.mxu1 %v6919_v56  ;;  %v1161_v56 = vld [vmem:[#allocation16 + $0x2e0] sm:$0xff] }
 0x31f   :  { %v6140_v62 = vcombine.high %v1157_v55, %v1161_v56  ;;  %v6139_v5 = vcombine.low %v1157_v55, %v1161_v56  ;;  %v1285_v55 = vld [vmem:[#allocation16 + $0x6c0] sm:$0xff] }
 0x320   :  { %v1289_v56 = vld [vmem:[#allocation16 + $0x6e0] sm:$0xff] }
 0x321   :  { %987 = vmatpush1.bf16.msra.mxu1 %v6917_v57  ;;  %v1213_v57 = vld [vmem:[#allocation16 + $0x480] sm:$0xff] }
 0x322   :  { %988 = vmatprep.subr.bf16.mxu1 %v6922_v58  ;;  %v1217_v58 = vld [vmem:[#allocation16 + $0x4a0] sm:$0xff] }
 0x325   :  { %989 = vmatpush1.bf16.msra.mxu1 %v6920_v59  ;;  %v6195_v59 = vcombine.low %v1213_v57, %v1217_v58 }
 0x326   :  { %990 = vmatprep.subr.bf16.mxu1 %v6925_v60  ;;  %v6196_v60 = vcombine.high %v1213_v57, %v1217_v58  ;;  %v6267_v57 = vcombine.low %v1285_v55, %v1289_v56  ;;  %v6268_v58 = vcombine.high %v1285_v55, %v1289_v56  ;;  %v1110_v56 = vld [vmem:[#allocation16 + $0x148] sm:$0xff] }
 0x328   :  { %2650 = vmatprep.subr.bf16.mxu0 %v6196_v60  ;;  %v1297_v60 = vld [vmem:[#allocation16 + $0x720] sm:$0xff] }
 0x329   :  { %991 = vmatpush1.bf16.msra.mxu1 %v6923_v63  ;;  %v1165_v63 = vld [vmem:[#allocation16 + $0x300] sm:$0xff]  ;;  %2651 = vmatpush1.bf16.msra.mxu0 %v6195_v59 }
 0x32a   :  { %2605 = vmatprep.subr.bf16.mxu1 %v6052_v0  ;;  %v1169_v0 = vld [vmem:[#allocation16 + $0x320] sm:$0xff] }
 0x32b   :  { %v6148_v6 = vcombine.high %v1165_v63, %v1169_v0  ;;  %v6147_v16 = vcombine.low %v1165_v63, %v1169_v0  ;;  %v1293_v59 = vld [vmem:[#allocation16 + $0x700] sm:$0xff] }
 0x32c   :  { %993 = vmatmul.mubr.bf16.vlgmr.msra.gmra.mrb[8].mxu1 %v8175_v31  ;;  %v6108_v31 = vcombine.high %v1125_v28, %v1129_v29  ;;  %v1245_v28 = vld [vmem:[#allocation16 + $0x580] sm:$0xff] }
 0x32d   :  { %2606 = vmatpush1.bf16.msra.mxu1 %v6051_v3  ;;  %v6203_v3 = vcombine.low %v1221_v1, %v1225_v2  ;;  %v1249_v29 = vld [vmem:[#allocation16 + $0x5a0] sm:$0xff] }
 0x32e   :  { %2607 = vmatprep.subr.bf16.mxu1 %v6060_v4  ;;  %v6204_v4 = vcombine.high %v1221_v1, %v1225_v2  ;;  %v1301_v63 = vld [vmem:[#allocation16 + $0x740] sm:$0xff] }
 0x32f   :  { %v1305_v0 = vld [vmem:[#allocation16 + $0x760] sm:$0xff] }
 0x330   :  { %2652 = vmatprep.subr.bf16.mxu0 %v6204_v4  ;;  %v6283_v1 = vcombine.low %v1301_v63, %v1305_v0  ;;  %v6284_v2 = vcombine.high %v1301_v63, %v1305_v0  ;;  %v1313_v4 = vld [vmem:[#allocation16 + $0x7a0] sm:$0xff] }
 0x331   :  { %2608 = vmatpush1.bf16.msra.mxu1 %v6059_v7  ;;  %v1173_v7 = vld [vmem:[#allocation16 + $0x340] sm:$0xff]  ;;  %2653 = vmatpush1.bf16.msra.mxu0 %v6203_v3 }
 0x332   :  { %2609 = vmatprep.subr.bf16.mxu1 %v6068_v10  ;;  %v1177_v10 = vld [vmem:[#allocation16 + $0x360] sm:$0xff] }
 0x333   :  { %v6156_v17 = vcombine.high %v1173_v7, %v1177_v10  ;;  %v6155_v24 = vcombine.low %v1173_v7, %v1177_v10  ;;  %v1309_v3 = vld [vmem:[#allocation16 + $0x780] sm:$0xff] }
 0x334   :  { %v1317_v7 = vld [vmem:[#allocation16 + $0x7c0] sm:$0xff] }
 0x335   :  { %2610 = vmatpush1.bf16.msra.mxu1 %v6067_v14  ;;  %v6211_v14 = vcombine.low %v1229_v12, %v1233_v13  ;;  %v1321_v10 = vld [vmem:[#allocation16 + $0x7e0] sm:$0xff] }
 0x336   :  { %2611 = vmatprep.subr.bf16.mxu1 %v6076_v15  ;;  %v6212_v15 = vcombine.high %v1229_v12, %v1233_v13  ;;  %v6300_v12 = vcombine.high %v1317_v7, %v1321_v10  ;;  %v6299_v13 = vcombine.low %v1317_v7, %v1321_v10 }
 0x338   :  { %2654 = vmatprep.subr.bf16.mxu0 %v6212_v15  ;;  %v8189_v15 = vld [vmem:[#allocation16 + $0x30] sm:$0xff] }
 0x339   :  { %2612 = vmatpush1.bf16.msra.mxu1 %v6075_v18  ;;  %v1181_v18 = vld [vmem:[#allocation16 + $0x380] sm:$0xff]  ;;  %2655 = vmatpush1.bf16.msra.mxu0 %v6211_v14  ;;  %v8187_v14 = vld [vmem:[#allocation16 + $0x10] sm:$0xff] }
 0x33a   :  { %2613 = vmatprep.subr.bf16.mxu1 %v6084_v19  ;;  %v1185_v19 = vld [vmem:[#allocation16 + $0x3a0] sm:$0xff] }
 0x33b   :  { %v6164_v25 = vcombine.high %v1181_v18, %v1185_v19  ;;  %v6163_v32 = vcombine.low %v1181_v18, %v1185_v19  ;;  %v8195_v18 = vld [vmem:[#allocation13] sm:$0xf]  ;;  %v8197_v19 = vld [vmem:[#allocation15] sm:$0xf] }
 0x33d   :  { %2614 = vmatpush1.bf16.msra.mxu1 %v6083_v22  ;;  %v6219_v22 = vcombine.low %v1237_v20, %v1241_v21 }
 0x33e   :  { %2615 = vmatprep.subr.bf16.mxu1 %v6092_v23  ;;  %v6220_v23 = vcombine.high %v1237_v20, %v1241_v21  ;;  %v1006_v20 = vrot.slane %v8195_v18, %v8166_v9  ;;  %v1010_v21 = vrot.slane %v8195_v18, %v8169_v11 }
 0x340   :  { %2656 = vmatprep.subr.bf16.mxu0 %v6220_v23 }
 0x341   :  { %2616 = vmatpush1.bf16.msra.mxu1 %v6091_v26  ;;  %v1189_v26 = vld [vmem:[#allocation16 + $0x3c0] sm:$0xff]  ;;  %2657 = vmatpush1.bf16.msra.mxu0 %v6219_v22  ;;  %v1032_v22 = vrot.slane %v8197_v19, %v8166_v9 }
 0x342   :  { %2617 = vmatprep.subr.bf16.mxu1 %v6100_v27  ;;  %v1193_v27 = vld [vmem:[#allocation16 + $0x3e0] sm:$0xff] }
 0x343   :  { %v6172_v33 = vcombine.high %v1189_v26, %v1193_v27  ;;  %v6171_v38 = vcombine.low %v1189_v26, %v1193_v27 }
 0x345   :  { %2618 = vmatpush1.bf16.msra.mxu1 %v6099_v30  ;;  %v6227_v30 = vcombine.low %v1245_v28, %v1249_v29 }
 0x346   :  { %2619 = vmatprep.subr.bf16.mxu1 %v6108_v31  ;;  %v6228_v31 = vcombine.high %v1245_v28, %v1249_v29 }
 0x348   :  { %2658 = vmatprep.subr.bf16.mxu0 %v6228_v31 }
 0x349   :  { %2620 = vmatpush1.bf16.msra.mxu1 %v6107_v34  ;;  %2659 = vmatpush1.bf16.msra.mxu0 %v6227_v30  ;;  %v1253_v34 = vld [vmem:[#allocation16 + $0x5c0] sm:$0xff] }
 0x34a   :  { %2621 = vmatprep.subr.bf16.mxu1 %v6116_v35  ;;  %v1257_v35 = vld [vmem:[#allocation16 + $0x5e0] sm:$0xff] }
 0x34b   :  { %v6235_v36 = vcombine.low %v1253_v34, %v1257_v35  ;;  %v6236_v37 = vcombine.high %v1253_v34, %v1257_v35  ;;  %v1078_v35 = vld [vmem:[#allocation16 + $0x48] sm:$0xff] }
 0x34d   :  { %2622 = vmatpush1.bf16.msra.mxu1 %v6115_v44  ;;  %2660 = vmatprep.subr.bf16.mxu0 %v6236_v37  ;;  %v6243_v44 = vcombine.low %v1261_v40, %v1265_v41 }
 0x34e   :  { %2623 = vmatprep.subr.bf16.mxu1 %v6124_v45  ;;  %2661 = vmatpush1.bf16.msra.mxu0 %v6235_v36  ;;  %v6244_v45 = vcombine.high %v1261_v40, %v1265_v41  ;;  %v1082_v36 = vld [vmem:[#allocation16 + $0x68] sm:$0xff] }
 0x34f   :  { %v6062_v40 = vcombine.high %v1078_v35, %v1082_v36  ;;  %v1086_v41 = vld [vmem:[#allocation16 + $0x88] sm:$0xff] }
 0x350   :  { %2662 = vmatprep.subr.bf16.mxu0 %v6244_v45  ;;  %v6061_v45 = vcombine.low %v1078_v35, %v1082_v36  ;;  %v1182_v35 = vld [vmem:[#allocation16 + $0x388] sm:$0xff] }
 0x351   :  { %2624 = vmatpush1.bf16.msra.mxu1 %v6123_v53  ;;  %v6259_v53 = vcombine.low %v1277_v51, %v1281_v52  ;;  %v1186_v36 = vld [vmem:[#allocation16 + $0x3a8] sm:$0xff] }
 0x352   :  { %2625 = vmatprep.subr.bf16.mxu1 %v6132_v54  ;;  %2663 = vmatpush1.bf16.msra.mxu0 %v6243_v44  ;;  %v6260_v54 = vcombine.high %v1277_v51, %v1281_v52  ;;  %v1090_v44 = vld [vmem:[#allocation16 + $0xa8] sm:$0xff] }
 0x353   :  { %2664 = vmatprep.subr.bf16.mxu0 %v6252_v50  ;;  %v6070_v46 = vcombine.high %v1086_v41, %v1090_v44  ;;  %v6069_v50 = vcombine.low %v1086_v41, %v1090_v44  ;;  %v1102_v52 = vld [vmem:[#allocation16 + $0x108] sm:$0xff]  ;;  %v6166_v44 = vcombine.high %v1182_v35, %v1186_v36 }
 0x355   :  { %2626 = vmatpush1.bf16.msra.mxu1 %v6131_v61  ;;  %v6275_v61 = vcombine.low %v1293_v59, %v1297_v60 }
 0x356   :  { %2627 = vmatprep.subr.bf16.mxu1 %v6140_v62  ;;  %2665 = vmatpush1.bf16.msra.mxu0 %v6251_v49  ;;  %v6276_v62 = vcombine.high %v1293_v59, %v1297_v60  ;;  %v1098_v49 = vld [vmem:[#allocation16 + $0xe8] sm:$0xff]  ;;  %v6093_v59 = vcombine.low %v1110_v56, %v1114_v42 }
 0x357   :  { %2666 = vmatprep.subr.bf16.mxu0 %v6260_v54  ;;  %v6078_v51 = vcombine.high %v1094_v48, %v1098_v49  ;;  %v6077_v54 = vcombine.low %v1094_v48, %v1098_v49  ;;  %v1194_v48 = vld [vmem:[#allocation16 + $0x3e8] sm:$0xff] }
 0x359   :  { %2628 = vmatpush1.bf16.msra.mxu1 %v6139_v5  ;;  %v6292_v5 = vcombine.high %v1309_v3, %v1313_v4 }
 0x35a   :  { %2629 = vmatprep.subr.bf16.mxu1 %v6148_v6  ;;  %2667 = vmatpush1.bf16.msra.mxu0 %v6259_v53  ;;  %v6291_v6 = vcombine.low %v1309_v3, %v1313_v4  ;;  %v1106_v53 = vld [vmem:[#allocation16 + $0x128] sm:$0xff] }
 0x35b   :  { %2668 = vmatprep.subr.bf16.mxu0 %v6268_v58  ;;  %v6086_v55 = vcombine.high %v1102_v52, %v1106_v53  ;;  %v6085_v43 = vcombine.low %v1102_v52, %v1106_v53  ;;  %v1122_v58 = vld [vmem:[#allocation16 + $0x1a8] sm:$0xff]  ;;  %v6165_v53 = vcombine.low %v1182_v35, %v1186_v36 }
 0x35d   :  { %2630 = vmatpush1.bf16.msra.mxu1 %v6147_v16  ;;  %v6056_v16 = vcombine.high %v8187_v14, %v8189_v15 }
 0x35e   :  { %2631 = vmatprep.subr.bf16.mxu1 %v6156_v17  ;;  %2669 = vmatpush1.bf16.msra.mxu0 %v6267_v57  ;;  %v6055_v17 = vcombine.low %v8187_v14, %v8189_v15  ;;  %v1118_v57 = vld [vmem:[#allocation16 + $0x188] sm:$0xff] }
 0x35f   :  { %2670 = vmatprep.subr.bf16.mxu0 %v6276_v62  ;;  %v6102_v60 = vcombine.high %v1118_v57, %v1122_v58  ;;  %v1130_v62 = vld [vmem:[#allocation16 + $0x1e8] sm:$0xff]  ;;  %v6101_v63 = vcombine.low %v1118_v57, %v1122_v58 }
 0x361   :  { %2632 = vmatpush1.bf16.msra.mxu1 %v6155_v24  ;;  %v1036_v24 = vrot.slane %v8197_v19, %v8169_v11 }
 0x362   :  { %2633 = vmatprep.subr.bf16.mxu1 %v6164_v25  ;;  %2671 = vmatpush1.bf16.msra.mxu0 %v6275_v61  ;;  %v1126_v61 = vld [vmem:[#allocation16 + $0x1c8] sm:$0xff] }
 0x363   :  { %2672 = vmatprep.subr.bf16.mxu0 %v6284_v2  ;;  %v6110_v0 = vcombine.high %v1126_v61, %v1130_v62  ;;  %v1138_v2 = vld [vmem:[#allocation16 + $0x228] sm:$0xff]  ;;  %v6109_v3 = vcombine.low %v1126_v61, %v1130_v62  ;;  %v1079_v62 = vld [vmem:[#allocation16 + $0x50] sm:$0xff] }
 0x365   :  { %2634 = vmatpush1.bf16.msra.mxu1 %v6163_v32 }
 0x366   :  { %2635 = vmatprep.subr.bf16.mxu1 %v6172_v33  ;;  %2673 = vmatpush1.bf16.msra.mxu0 %v6283_v1  ;;  %v1134_v1 = vld [vmem:[#allocation16 + $0x208] sm:$0xff] }
 0x367   :  { %2674 = vmatprep.subr.bf16.mxu0 %v6292_v5  ;;  %v6118_v4 = vcombine.high %v1134_v1, %v1138_v2  ;;  %v1142_v5 = vld [vmem:[#allocation16 + $0x248] sm:$0xff]  ;;  %v6117_v7 = vcombine.low %v1134_v1, %v1138_v2 }
 0x368   :  { %v1206_v1 = vld [vmem:[#allocation16 + $0x448] sm:$0xff] }
 0x369   :  { %2636 = vmatpush1.bf16.msra.mxu1 %v6171_v38  ;;  %v1210_v2 = vld [vmem:[#allocation16 + $0x468] sm:$0xff] }
 0x36a   :  { %2687 = vmatprep.subr.bf16.mxu1 %v6054_v39  ;;  %2675 = vmatpush1.bf16.msra.mxu0 %v6291_v6  ;;  %v1146_v6 = vld [vmem:[#allocation16 + $0x268] sm:$0xff] }
 0x36b   :  { %2676 = vmatprep.subr.bf16.mxu0 %v6300_v12  ;;  %v6126_v10 = vcombine.high %v1142_v5, %v1146_v6  ;;  %v1150_v12 = vld [vmem:[#allocation16 + $0x288] sm:$0xff] }
 0x36e   :  { %2677 = vmatpush1.bf16.msra.mxu0 %v6299_v13  ;;  %v1154_v13 = vld [vmem:[#allocation16 + $0x2a8] sm:$0xff] }
 0x36f   :  { %2769 = vmatprep.subr.bf16.mxu0 %v6056_v16  ;;  %v6125_v16 = vcombine.low %v1142_v5, %v1146_v6  ;;  %v1087_v6 = vld [vmem:[#allocation16 + $0x90] sm:$0xff] }
 0x3bf   :  { %v953_v23 = vpop.f32.mrb[4].mxu1 }
 0x3c0   :  { %v1023_v25 = vmul.f32 %v1006_v20, %v953_v23  ;;  %v955_v26 = vpop.f32.mrb[5].mxu1  ;;  %v6134_v20 = vcombine.high %v1150_v12, %v1154_v13  ;;  %v6133_v23 = vcombine.low %v1150_v12, %v1154_v13  ;;  %v1091_v12 = vld [vmem:[#allocation16 + $0xb0] sm:$0xff]  ;;  %v1214_v13 = vld [vmem:[#allocation16 + $0x488] sm:$0xff] }
 0x3c1   :  { %v1024_v27 = vmul.f32 %v1010_v21, %v955_v26  ;;  %v957_v28 = vpop.f32.mrb[6].mxu1  ;;  %v1158_v21 = vld [vmem:[#allocation16 + $0x2c8] sm:$0xff] }
 0x3c2   :  { %v1049_v29 = vadd.f32 %v1032_v22, %v1023_v25  ;;  %v958_v30 = vpop.f32.mrb[7].mxu1  ;;  %v1162_v22 = vld [vmem:[#allocation16 + $0x2e8] sm:$0xff] }
 0x3c3   :  { %v1050_v31 = vadd.f32 %v1036_v24, %v1024_v27  ;;  %v6142_v24 = vcombine.high %v1158_v21, %v1162_v22  ;;  %v1166_v25 = vld [vmem:[#allocation16 + $0x308] sm:$0xff]  ;;  %v6141_v27 = vcombine.low %v1158_v21, %v1162_v22  ;;  %v6189_v21 = vcombine.low %v1206_v1, %v1210_v2 }
 0x3c4   :  { %vm1053_vm4 = vcmp.ge.f32.partialorder %v1049_v29, 0.0  ;;  %v1057_v32 = vmul.f32 0.2, %v1049_v29  ;;  %v1170_v26 = vld [vmem:[#allocation16 + $0x328] sm:$0xff]  ;;  %v6072_v22 = vcombine.high %v1087_v6, %v1091_v12 }
 0x3c5   :  { %vm1054_vm5 = vcmp.ge.f32.partialorder %v1050_v31, 0.0  ;;  %v1058_v33 = vmul.f32 0.2, %v1050_v31  ;;  %v6150_v28 = vcombine.high %v1166_v25, %v1170_v26  ;;  %v1178_v30 = vld [vmem:[#allocation16 + $0x368] sm:$0xff] }
 0x3c6   :  { %v1061_v34 = vsel %vm1053_vm4, %v1049_v29, %v1057_v32  ;;  %v1174_v29 = vld [vmem:[#allocation16 + $0x348] sm:$0xff]  ;;  %v8218_v32 = vsub.s32 2, %v8163_v8 }
 0x3c7   :  { %v1062_v37 = vsel %vm1054_vm5, %v1050_v31, %v1058_v33  ;;  %v8209_v39 = vpack.c.bf16 %v1061_v34, %v1061_v34  ;;  %v6149_v31 = vcombine.low %v1166_v25, %v1170_v26  ;;  %v6158_v33 = vcombine.high %v1174_v29, %v1178_v30  ;;  %v1099_v25 = vld [vmem:[#allocation16 + $0xf0] sm:$0xff]  ;;  %v1222_v26 = vld [vmem:[#allocation16 + $0x4c8] sm:$0xff] }
 0x3c8   :  { %v8207_v38 = vpack.c.bf16 %v1062_v37, %v1062_v37  ;;  %v8221_v34 = vsub.s32 3, %v8163_v8  ;;  %v1014_v37 = vrot.slane %v8195_v18, %v8218_v32 }
 0x3ca   :  { %2637 = vmatprep.mubr.bf16.mxu1 %v8207_v38  ;;  %v1018_v41 = vrot.slane %v8195_v18, %v8221_v34 }
 0x3cb   :  { %2638 = vmatmul.mubr.bf16.vlgmr.msra.gmra.mrb[12].mxu1 %v8209_v39 }
 0x3cc   :  { %2688 = vmatpush1.bf16.msra.mxu1 %v6053_v47  ;;  %2719 = vmatprep.mubr.bf16.mxu1 %v8207_v38  ;;  %v6094_v47 = vcombine.high %v1110_v56, %v1114_v42 }
 0x3cd   :  { %2689 = vmatprep.subr.bf16.mxu1 %v6062_v40  ;;  %v6157_v40 = vcombine.low %v1174_v29, %v1178_v30  ;;  %v1103_v29 = vld [vmem:[#allocation16 + $0x110] sm:$0xff] }
 0x3ce   :  { %v1107_v30 = vld [vmem:[#allocation16 + $0x130] sm:$0xff] }
 0x3d0   :  { %2690 = vmatpush1.bf16.msra.mxu1 %v6061_v45  ;;  %v1040_v45 = vrot.slane %v8197_v19, %v8218_v32 }
 0x3d1   :  { %2691 = vmatprep.subr.bf16.mxu1 %v6070_v46  ;;  %v1190_v46 = vld [vmem:[#allocation16 + $0x3c8] sm:$0xff] }
 0x3d2   :  { %v6174_v56 = vcombine.high %v1190_v46, %v1194_v48 }
 0x3d4   :  { %2692 = vmatpush1.bf16.msra.mxu1 %v6069_v50  ;;  %v1044_v50 = vrot.slane %v8197_v19, %v8221_v34 }
 0x3d5   :  { %2693 = vmatprep.subr.bf16.mxu1 %v6078_v51 }
 0x3d8   :  { %2694 = vmatpush1.bf16.msra.mxu1 %v6077_v54 }
 0x3d9   :  { %2695 = vmatprep.subr.bf16.mxu1 %v6086_v55 }
 0x3dc   :  { %2696 = vmatpush1.bf16.msra.mxu1 %v6085_v43  ;;  %v1198_v43 = vld [vmem:[#allocation16 + $0x408] sm:$0xff] }
 0x3dd   :  { %2697 = vmatprep.subr.bf16.mxu1 %v6094_v47  ;;  %v1202_v47 = vld [vmem:[#allocation16 + $0x428] sm:$0xff] }
 0x3de   :  { %v6182_v19 = vcombine.high %v1198_v43, %v1202_v47 }
 0x3e0   :  { %2698 = vmatpush1.bf16.msra.mxu1 %v6093_v59  ;;  %v6173_v59 = vcombine.low %v1190_v46, %v1194_v48  ;;  %v1242_v46 = vld [vmem:[#allocation16 + $0x568] sm:$0xff]  ;;  %v6087_v48 = vcombine.low %v1103_v29, %v1107_v30 }
 0x3e1   :  { %2699 = vmatprep.subr.bf16.mxu1 %v6102_v60 }
 0x3e4   :  { %2700 = vmatpush1.bf16.msra.mxu1 %v6101_v63 }
 0x3e5   :  { %2701 = vmatprep.subr.bf16.mxu1 %v6110_v0  ;;  %v1083_v0 = vld [vmem:[#allocation16 + $0x70] sm:$0xff] }
 0x3e8   :  { %2702 = vmatpush1.bf16.msra.mxu1 %v6109_v3 }
 0x3e9   :  { %2703 = vmatprep.subr.bf16.mxu1 %v6118_v4  ;;  %v6181_v4 = vcombine.low %v1198_v43, %v1202_v47  ;;  %v1127_v47 = vld [vmem:[#allocation16 + $0x1d0] sm:$0xff] }
 0x3ec   :  { %2704 = vmatpush1.bf16.msra.mxu1 %v6117_v7  ;;  %v6064_v7 = vcombine.high %v1079_v62, %v1083_v0 }
 0x3ed   :  { %2705 = vmatprep.subr.bf16.mxu1 %v6126_v10  ;;  %v6190_v10 = vcombine.high %v1206_v1, %v1210_v2  ;;  %v1262_v1 = vld [vmem:[#allocation16 + $0x608] sm:$0xff] }
 0x3ee   :  { %v1266_v2 = vld [vmem:[#allocation16 + $0x628] sm:$0xff] }
 0x3f0   :  { %2706 = vmatpush1.bf16.msra.mxu1 %v6125_v16  ;;  %v1218_v16 = vld [vmem:[#allocation16 + $0x4a8] sm:$0xff] }
 0x3f1   :  { %2707 = vmatprep.subr.bf16.mxu1 %v6134_v20  ;;  %v6063_v20 = vcombine.low %v1079_v62, %v1083_v0  ;;  %v6197_v14 = vcombine.low %v1214_v13, %v1218_v16  ;;  %v1139_v0 = vld [vmem:[#allocation16 + $0x230] sm:$0xff] }
 0x3f4   :  { %2708 = vmatpush1.bf16.msra.mxu1 %v6133_v23  ;;  %v6198_v23 = vcombine.high %v1214_v13, %v1218_v16  ;;  %v1147_v13 = vld [vmem:[#allocation16 + $0x270] sm:$0xff]  ;;  %v1270_v16 = vld [vmem:[#allocation16 + $0x648] sm:$0xff] }
 0x3f5   :  { %2709 = vmatprep.subr.bf16.mxu1 %v6142_v24  ;;  %v1095_v24 = vld [vmem:[#allocation16 + $0xd0] sm:$0xff] }
 0x3f6   :  { %v6080_v15 = vcombine.high %v1095_v24, %v1099_v25  ;;  %v6079_v35 = vcombine.low %v1095_v24, %v1099_v25  ;;  %v1151_v25 = vld [vmem:[#allocation16 + $0x290] sm:$0xff] }
 0x3f8   :  { %2710 = vmatpush1.bf16.msra.mxu1 %v6141_v27  ;;  %v1226_v27 = vld [vmem:[#allocation16 + $0x4e8] sm:$0xff] }
 0x3f9   :  { %2711 = vmatprep.subr.bf16.mxu1 %v6150_v28  ;;  %v6071_v28 = vcombine.low %v1087_v6, %v1091_v12  ;;  %v6205_v36 = vcombine.low %v1222_v26, %v1226_v27  ;;  %v1143_v12 = vld [vmem:[#allocation16 + $0x250] sm:$0xff] }
 0x3fc   :  { %2712 = vmatpush1.bf16.msra.mxu1 %v6149_v31  ;;  %v1230_v31 = vld [vmem:[#allocation16 + $0x508] sm:$0xff] }
 0x3fd   :  { %2713 = vmatprep.subr.bf16.mxu1 %v6158_v33  ;;  %v1234_v33 = vld [vmem:[#allocation16 + $0x528] sm:$0xff] }
 0x3ff   :  { %v994_v49 = vpop.f32.mrb[8].mxu1 }
 0x400   :  { %v1025_v51 = vmul.f32 %v1014_v37, %v994_v49  ;;  %v996_v52 = vpop.f32.mrb[9].mxu1  ;;  %2714 = vmatpush1.bf16.msra.mxu1 %v6157_v40  ;;  %v6088_v37 = vcombine.high %v1103_v29, %v1107_v30  ;;  %v6214_v40 = vcombine.high %v1230_v31, %v1234_v33  ;;  %v6213_v49 = vcombine.low %v1230_v31, %v1234_v33  ;;  %v1159_v30 = vld [vmem:[#allocation16 + $0x2d0] sm:$0xff]  ;;  %v1286_v33 = vld [vmem:[#allocation16 + $0x6c8] sm:$0xff] }
 0x401   :  { %v1026_v54 = vmul.f32 %v1018_v41, %v996_v52  ;;  %v998_v55 = vpop.f32.mrb[10].mxu1  ;;  %2715 = vmatprep.subr.bf16.mxu1 %v6166_v44  ;;  %v1111_v41 = vld [vmem:[#allocation16 + $0x150] sm:$0xff] }
 0x402   :  { %v1051_v42 = vadd.f32 %v1040_v45, %v1025_v51  ;;  %v999_v18 = vpop.f32.mrb[11].mxu1  ;;  %v1115_v44 = vld [vmem:[#allocation16 + $0x170] sm:$0xff]  ;;  %v1238_v45 = vld [vmem:[#allocation16 + $0x548] sm:$0xff] }
 0x403   :  { %v1052_v57 = vadd.f32 %v1044_v50, %v1026_v54  ;;  %v6096_v50 = vcombine.high %v1111_v41, %v1115_v44  ;;  %v6222_v51 = vcombine.high %v1238_v45, %v1242_v46  ;;  %v1119_v52 = vld [vmem:[#allocation16 + $0x190] sm:$0xff]  ;;  %v1246_v54 = vld [vmem:[#allocation16 + $0x588] sm:$0xff] }
 0x404   :  { %vm1055_vm6 = vcmp.ge.f32.partialorder %v1051_v42, 0.0  ;;  %v1059_v58 = vmul.f32 0.2, %v1051_v42  ;;  %2716 = vmatpush1.bf16.msra.mxu1 %v6165_v53  ;;  %v1123_v53 = vld [vmem:[#allocation16 + $0x1b0] sm:$0xff]  ;;  %v1250_v55 = vld [vmem:[#allocation16 + $0x5a8] sm:$0xff] }
 0x405   :  { %vm1056_vm7 = vcmp.ge.f32.partialorder %v1052_v57, 0.0  ;;  %v1060_v60 = vmul.f32 0.2, %v1052_v57  ;;  %2717 = vmatprep.subr.bf16.mxu1 %v6174_v56  ;;  %v6095_v56 = vcombine.low %v1111_v41, %v1115_v44  ;;  %v6104_v18 = vcombine.high %v1119_v52, %v1123_v53  ;;  %v1163_v31 = vld [vmem:[#allocation16 + $0x2f0] sm:$0xff] }
 0x406   :  { %v1063_v61 = vsel %vm1055_vm6, %v1051_v42, %v1059_v58  ;;  %v6221_v42 = vcombine.low %v1238_v45, %v1242_v46  ;;  %v6230_v43 = vcombine.high %v1246_v54, %v1250_v55  ;;  %v1254_v58 = vld [vmem:[#allocation16 + $0x5c8] sm:$0xff]  ;;  %v1167_v44 = vld [vmem:[#allocation16 + $0x310] sm:$0xff] }
 0x407   :  { %v1064_v63 = vsel %vm1056_vm7, %v1052_v57, %v1060_v60  ;;  %v8233_v5 = vpack.c.bf16 %v1063_v61, %v1063_v61  ;;  %v1131_v57 = vld [vmem:[#allocation16 + $0x1f0] sm:$0xff]  ;;  %v6103_v60 = vcombine.low %v1119_v52, %v1123_v53  ;;  %v1294_v46 = vld [vmem:[#allocation16 + $0x708] sm:$0xff] }
 0x408   :  { %v8231_v3 = vpack.c.bf16 %v1064_v63, %v1064_v63  ;;  %2718 = vmatpush1.bf16.msra.mxu1 %v6173_v59  ;;  %v1258_v59 = vld [vmem:[#allocation16 + $0x5e8] sm:$0xff]  ;;  %v6112_v61 = vcombine.high %v1127_v47, %v1131_v57  ;;  %v1135_v63 = vld [vmem:[#allocation16 + $0x210] sm:$0xff] }
 0x409   :  { %2728 = vmatprep.subr.bf16.mxu1 %v6182_v19  ;;  %v6229_v19 = vcombine.low %v1246_v54, %v1250_v55  ;;  %v6238_v62 = vcombine.high %v1254_v58, %v1258_v59  ;;  %v6237_v6 = vcombine.low %v1254_v58, %v1258_v59  ;;  %v1171_v45 = vld [vmem:[#allocation16 + $0x330] sm:$0xff]  ;;  %v1302_v55 = vld [vmem:[#allocation16 + $0x748] sm:$0xff] }
 0x40a   :  { %2678 = vmatprep.mubr.bf16.mxu0 %v8231_v3  ;;  %v1175_v53 = vld [vmem:[#allocation16 + $0x350] sm:$0xff]  ;;  %v1310_v59 = vld [vmem:[#allocation16 + $0x788] sm:$0xff] }
 0x40b   :  { %2679 = vmatmul.mubr.bf16.vlgmr.msra.gmra.mrb[4].mxu0 %v8233_v5  ;;  %2720 = vmatmul.mubr.bf16.vlgmr.msra.gmra.mrb[16].mxu1 %v8209_v39  ;;  %v1179_v54 = vld [vmem:[#allocation16 + $0x370] sm:$0xff] }
 0x40c   :  { %2770 = vmatpush1.bf16.msra.mxu0 %v6055_v17  ;;  %2729 = vmatpush1.bf16.msra.mxu1 %v6181_v4  ;;  %v6206_v17 = vcombine.high %v1222_v26, %v1226_v27  ;;  %v6111_v4 = vcombine.low %v1127_v47, %v1131_v57  ;;  %v1155_v26 = vld [vmem:[#allocation16 + $0x2b0] sm:$0xff]  ;;  %v1278_v27 = vld [vmem:[#allocation16 + $0x688] sm:$0xff] }
 0x40d   :  { %2760 = vmatprep.mubr.bf16.mxu1 %v8231_v3  ;;  %2801 = vmatprep.mubr.bf16.mxu0 %v8207_v38  ;;  %v1183_v57 = vld [vmem:[#allocation16 + $0x390] sm:$0xff] }
 0x40e   :  { %2771 = vmatprep.subr.bf16.mxu0 %v6064_v7  ;;  %2730 = vmatprep.subr.bf16.mxu1 %v6190_v10  ;;  %v6120_v7 = vcombine.high %v1135_v63, %v1139_v0  ;;  %v6246_v10 = vcombine.high %v1262_v1, %v1266_v2  ;;  %v1187_v58 = vld [vmem:[#allocation16 + $0x3b0] sm:$0xff] }
 0x410   :  { %2772 = vmatpush1.bf16.msra.mxu0 %v6063_v20  ;;  %2731 = vmatpush1.bf16.msra.mxu1 %v6189_v21  ;;  %v1274_v20 = vld [vmem:[#allocation16 + $0x668] sm:$0xff]  ;;  %v6119_v21 = vcombine.low %v1135_v63, %v1139_v0  ;;  %v1191_v0 = vld [vmem:[#allocation16 + $0x3d0] sm:$0xff] }
 0x411   :  { %2773 = vmatprep.subr.bf16.mxu0 %v6072_v22  ;;  %2732 = vmatprep.subr.bf16.mxu1 %v6198_v23  ;;  %v6245_v22 = vcombine.low %v1262_v1, %v1266_v2  ;;  %v6128_v23 = vcombine.high %v1143_v12, %v1147_v13  ;;  %v6254_v24 = vcombine.high %v1270_v16, %v1274_v20  ;;  %v1195_v1 = vld [vmem:[#allocation16 + $0x3f0] sm:$0xff]  ;;  %v1318_v2 = vld [vmem:[#allocation16 + $0x7c8] sm:$0xff] }
 0x414   :  { %2774 = vmatpush1.bf16.msra.mxu0 %v6071_v28  ;;  %2733 = vmatpush1.bf16.msra.mxu1 %v6197_v14  ;;  %v1282_v28 = vld [vmem:[#allocation16 + $0x6a8] sm:$0xff]  ;;  %v6127_v14 = vcombine.low %v1143_v12, %v1147_v13  ;;  %v1199_v13 = vld [vmem:[#allocation16 + $0x410] sm:$0xff] }
 0x415   :  { %2775 = vmatprep.subr.bf16.mxu0 %v6080_v15  ;;  %2734 = vmatprep.subr.bf16.mxu1 %v6206_v17  ;;  %v6253_v15 = vcombine.low %v1270_v16, %v1274_v20  ;;  %v6136_v17 = vcombine.high %v1151_v25, %v1155_v26  ;;  %v6262_v29 = vcombine.high %v1278_v27, %v1282_v28  ;;  %v1203_v16 = vld [vmem:[#allocation16 + $0x430] sm:$0xff]  ;;  %v1072_v20 = vld [vmem:[#allocation16 + $0x18] sm:$0xff] }
 0x418   :  { %2776 = vmatpush1.bf16.msra.mxu0 %v6079_v35  ;;  %2735 = vmatpush1.bf16.msra.mxu1 %v6205_v36  ;;  %v1290_v35 = vld [vmem:[#allocation16 + $0x6e8] sm:$0xff]  ;;  %v6135_v36 = vcombine.low %v1151_v25, %v1155_v26  ;;  %v1207_v26 = vld [vmem:[#allocation16 + $0x450] sm:$0xff] }
 0x419   :  { %2777 = vmatprep.subr.bf16.mxu0 %v6088_v37  ;;  %2736 = vmatprep.subr.bf16.mxu1 %v6214_v40  ;;  %v6261_v37 = vcombine.low %v1278_v27, %v1282_v28  ;;  %v6144_v40 = vcombine.high %v1159_v30, %v1163_v31  ;;  %v6270_v41 = vcombine.high %v1286_v33, %v1290_v35  ;;  %v1211_v27 = vld [vmem:[#allocation16 + $0x470] sm:$0xff]  ;;  %v1080_v28 = vld [vmem:[#allocation16 + $0x58] sm:$0xff] }
 0x41c   :  { %2778 = vmatpush1.bf16.msra.mxu0 %v6087_v48  ;;  %2737 = vmatpush1.bf16.msra.mxu1 %v6213_v49  ;;  %v1298_v48 = vld [vmem:[#allocation16 + $0x728] sm:$0xff]  ;;  %v6143_v49 = vcombine.low %v1159_v30, %v1163_v31  ;;  %v1215_v31 = vld [vmem:[#allocation16 + $0x490] sm:$0xff] }
 0x41d   :  { %2779 = vmatprep.subr.bf16.mxu0 %v6096_v50  ;;  %2738 = vmatprep.subr.bf16.mxu1 %v6222_v51  ;;  %v6269_v50 = vcombine.low %v1286_v33, %v1290_v35  ;;  %v6152_v51 = vcombine.high %v1167_v44, %v1171_v45  ;;  %v6278_v52 = vcombine.high %v1294_v46, %v1298_v48  ;;  %v1219_v33 = vld [vmem:[#allocation16 + $0x4b0] sm:$0xff]  ;;  %v1088_v35 = vld [vmem:[#allocation16 + $0x98] sm:$0xff] }
 0x420   :  { %2780 = vmatpush1.bf16.msra.mxu0 %v6095_v56  ;;  %2739 = vmatpush1.bf16.msra.mxu1 %v6221_v42  ;;  %v1306_v56 = vld [vmem:[#allocation16 + $0x768] sm:$0xff]  ;;  %v6151_v42 = vcombine.low %v1167_v44, %v1171_v45  ;;  %v1223_v45 = vld [vmem:[#allocation16 + $0x4d0] sm:$0xff] }
 0x421   :  { %2781 = vmatprep.subr.bf16.mxu0 %v6104_v18  ;;  %2740 = vmatprep.subr.bf16.mxu1 %v6230_v43  ;;  %v6277_v18 = vcombine.low %v1294_v46, %v1298_v48  ;;  %v6160_v43 = vcombine.high %v1175_v53, %v1179_v54  ;;  %v6286_v47 = vcombine.high %v1302_v55, %v1306_v56  ;;  %v1227_v46 = vld [vmem:[#allocation16 + $0x4f0] sm:$0xff]  ;;  %v1096_v48 = vld [vmem:[#allocation16 + $0xd8] sm:$0xff] }
 0x424   :  { %2782 = vmatpush1.bf16.msra.mxu0 %v6103_v60  ;;  %2741 = vmatpush1.bf16.msra.mxu1 %v6229_v19  ;;  %v1314_v60 = vld [vmem:[#allocation16 + $0x7a8] sm:$0xff]  ;;  %v6159_v19 = vcombine.low %v1175_v53, %v1179_v54  ;;  %v1231_v54 = vld [vmem:[#allocation16 + $0x510] sm:$0xff] }
 0x425   :  { %2783 = vmatprep.subr.bf16.mxu0 %v6112_v61  ;;  %2742 = vmatprep.subr.bf16.mxu1 %v6238_v62  ;;  %v6285_v61 = vcombine.low %v1302_v55, %v1306_v56  ;;  %v6168_v62 = vcombine.high %v1183_v57, %v1187_v58  ;;  %v6294_v63 = vcombine.high %v1310_v59, %v1314_v60  ;;  %v1235_v55 = vld [vmem:[#allocation16 + $0x530] sm:$0xff]  ;;  %v1108_v56 = vld [vmem:[#allocation16 + $0x138] sm:$0xff] }
 0x428   :  { %2784 = vmatpush1.bf16.msra.mxu0 %v6111_v4  ;;  %2743 = vmatpush1.bf16.msra.mxu1 %v6237_v6  ;;  %v1322_v4 = vld [vmem:[#allocation16 + $0x7e8] sm:$0xff]  ;;  %v6167_v6 = vcombine.low %v1183_v57, %v1187_v58  ;;  %v1239_v57 = vld [vmem:[#allocation16 + $0x550] sm:$0xff] }
 0x429   :  { %2785 = vmatprep.subr.bf16.mxu0 %v6120_v7  ;;  %2744 = vmatprep.subr.bf16.mxu1 %v6246_v10  ;;  %v6293_v7 = vcombine.low %v1310_v59, %v1314_v60  ;;  %v6176_v10 = vcombine.high %v1191_v0, %v1195_v1  ;;  %v6302_v12 = vcombine.high %v1318_v2, %v1322_v4  ;;  %v1243_v58 = vld [vmem:[#allocation16 + $0x570] sm:$0xff]  ;;  %v1112_v59 = vld [vmem:[#allocation16 + $0x158] sm:$0xff] }
 0x42a   :  { %v1116_v60 = vld [vmem:[#allocation16 + $0x178] sm:$0xff] }
 0x42c   :  { %2786 = vmatpush1.bf16.msra.mxu0 %v6119_v21  ;;  %2745 = vmatpush1.bf16.msra.mxu1 %v6245_v22  ;;  %v1076_v21 = vld [vmem:[#allocation16 + $0x38] sm:$0xff]  ;;  %v6175_v22 = vcombine.low %v1191_v0, %v1195_v1  ;;  %v1247_v0 = vld [vmem:[#allocation16 + $0x590] sm:$0xff] }
 0x42d   :  { %2787 = vmatprep.subr.bf16.mxu0 %v6128_v23  ;;  %2746 = vmatprep.subr.bf16.mxu1 %v6254_v24  ;;  %v6301_v23 = vcombine.low %v1318_v2, %v1322_v4  ;;  %v6184_v24 = vcombine.high %v1199_v13, %v1203_v16  ;;  %v6058_v25 = vcombine.high %v1072_v20, %v1076_v21  ;;  %v1251_v1 = vld [vmem:[#allocation16 + $0x5b0] sm:$0xff]  ;;  %v1120_v2 = vld [vmem:[#allocation16 + $0x198] sm:$0xff] }
 0x42e   :  { %v1124_v4 = vld [vmem:[#allocation16 + $0x1b8] sm:$0xff] }
 0x430   :  { %2788 = vmatpush1.bf16.msra.mxu0 %v6127_v14  ;;  %2747 = vmatpush1.bf16.msra.mxu1 %v6253_v15  ;;  %v1084_v14 = vld [vmem:[#allocation16 + $0x78] sm:$0xff]  ;;  %v6183_v15 = vcombine.low %v1199_v13, %v1203_v16  ;;  %v1255_v13 = vld [vmem:[#allocation16 + $0x5d0] sm:$0xff] }
 0x431   :  { %2789 = vmatprep.subr.bf16.mxu0 %v6136_v17  ;;  %2748 = vmatprep.subr.bf16.mxu1 %v6262_v29  ;;  %v6057_v17 = vcombine.low %v1072_v20, %v1076_v21  ;;  %v6192_v29 = vcombine.high %v1207_v26, %v1211_v27  ;;  %v6066_v30 = vcombine.high %v1080_v28, %v1084_v14  ;;  %v1259_v16 = vld [vmem:[#allocation16 + $0x5f0] sm:$0xff]  ;;  %v1128_v20 = vld [vmem:[#allocation16 + $0x1d8] sm:$0xff] }
 0x432   :  { %v1132_v21 = vld [vmem:[#allocation16 + $0x1f8] sm:$0xff] }
 0x434   :  { %2790 = vmatpush1.bf16.msra.mxu0 %v6135_v36  ;;  %2749 = vmatpush1.bf16.msra.mxu1 %v6261_v37  ;;  %v1092_v36 = vld [vmem:[#allocation16 + $0xb8] sm:$0xff]  ;;  %v6191_v37 = vcombine.low %v1207_v26, %v1211_v27  ;;  %v1263_v26 = vld [vmem:[#allocation16 + $0x610] sm:$0xff] }
 0x435   :  { %2791 = vmatprep.subr.bf16.mxu0 %v6144_v40  ;;  %2750 = vmatprep.subr.bf16.mxu1 %v6270_v41  ;;  %v6065_v40 = vcombine.low %v1080_v28, %v1084_v14  ;;  %v6200_v41 = vcombine.high %v1215_v31, %v1219_v33  ;;  %v6074_v44 = vcombine.high %v1088_v35, %v1092_v36  ;;  %v1267_v27 = vld [vmem:[#allocation16 + $0x630] sm:$0xff]  ;;  %v1136_v28 = vld [vmem:[#allocation16 + $0x218] sm:$0xff] }
 0x436   :  { %v1140_v14 = vld [vmem:[#allocation16 + $0x238] sm:$0xff] }
 0x438   :  { %2792 = vmatpush1.bf16.msra.mxu0 %v6143_v49  ;;  %2751 = vmatpush1.bf16.msra.mxu1 %v6269_v50  ;;  %v1100_v49 = vld [vmem:[#allocation16 + $0xf8] sm:$0xff]  ;;  %v6199_v50 = vcombine.low %v1215_v31, %v1219_v33  ;;  %v1271_v31 = vld [vmem:[#allocation16 + $0x650] sm:$0xff] }
 0x439   :  { %2793 = vmatprep.subr.bf16.mxu0 %v6152_v51  ;;  %2752 = vmatprep.subr.bf16.mxu1 %v6278_v52  ;;  %v6073_v51 = vcombine.low %v1088_v35, %v1092_v36  ;;  %v6208_v52 = vcombine.high %v1223_v45, %v1227_v46  ;;  %v6082_v53 = vcombine.high %v1096_v48, %v1100_v49  ;;  %v1275_v33 = vld [vmem:[#allocation16 + $0x670] sm:$0xff]  ;;  %v1144_v35 = vld [vmem:[#allocation16 + $0x258] sm:$0xff] }
 0x43a   :  { %v1148_v36 = vld [vmem:[#allocation16 + $0x278] sm:$0xff] }
 0x43c   :  { %2794 = vmatpush1.bf16.msra.mxu0 %v6151_v42  ;;  %2753 = vmatpush1.bf16.msra.mxu1 %v6277_v18  ;;  %v6207_v42 = vcombine.low %v1223_v45, %v1227_v46  ;;  %v6081_v18 = vcombine.low %v1096_v48, %v1100_v49  ;;  %v1279_v45 = vld [vmem:[#allocation16 + $0x690] sm:$0xff]  ;;  %v1152_v48 = vld [vmem:[#allocation16 + $0x298] sm:$0xff] }
 0x43d   :  { %2795 = vmatprep.subr.bf16.mxu0 %v6160_v43  ;;  %2754 = vmatprep.subr.bf16.mxu1 %v6286_v47  ;;  %v6216_v43 = vcombine.high %v1231_v54, %v1235_v55  ;;  %v1283_v46 = vld [vmem:[#allocation16 + $0x6b0] sm:$0xff]  ;;  %v1156_v49 = vld [vmem:[#allocation16 + $0x2b8] sm:$0xff] }
 0x440   :  { %2796 = vmatpush1.bf16.msra.mxu0 %v6159_v19  ;;  %2755 = vmatpush1.bf16.msra.mxu1 %v6285_v61  ;;  %v6215_v19 = vcombine.low %v1231_v54, %v1235_v55  ;;  %v1287_v54 = vld [vmem:[#allocation16 + $0x6d0] sm:$0xff] }
 0x441   :  { %2797 = vmatprep.subr.bf16.mxu0 %v6168_v62  ;;  %2756 = vmatprep.subr.bf16.mxu1 %v6294_v63  ;;  %v6224_v62 = vcombine.high %v1239_v57, %v1243_v58  ;;  %v6098_v63 = vcombine.high %v1112_v59, %v1116_v60  ;;  %v1291_v55 = vld [vmem:[#allocation16 + $0x6f0] sm:$0xff] }
 0x444   :  { %2798 = vmatpush1.bf16.msra.mxu0 %v6167_v6  ;;  %2757 = vmatpush1.bf16.msra.mxu1 %v6293_v7  ;;  %v6223_v6 = vcombine.low %v1239_v57, %v1243_v58  ;;  %v6097_v7 = vcombine.low %v1112_v59, %v1116_v60  ;;  %v1295_v57 = vld [vmem:[#allocation16 + $0x710] sm:$0xff]  ;;  %v1168_v59 = vld [vmem:[#allocation16 + $0x318] sm:$0xff] }
 0x445   :  { %2799 = vmatprep.subr.bf16.mxu0 %v6176_v10  ;;  %2758 = vmatprep.subr.bf16.mxu1 %v6302_v12  ;;  %v6232_v10 = vcombine.high %v1247_v0, %v1251_v1  ;;  %v6106_v12 = vcombine.high %v1120_v2, %v1124_v4  ;;  %v1299_v58 = vld [vmem:[#allocation16 + $0x730] sm:$0xff]  ;;  %v1172_v60 = vld [vmem:[#allocation16 + $0x338] sm:$0xff] }
 0x448   :  { %2800 = vmatpush1.bf16.msra.mxu0 %v6175_v22  ;;  %2759 = vmatpush1.bf16.msra.mxu1 %v6301_v23  ;;  %v6231_v22 = vcombine.low %v1247_v0, %v1251_v1  ;;  %v6105_v23 = vcombine.low %v1120_v2, %v1124_v4  ;;  %v1303_v0 = vld [vmem:[#allocation16 + $0x750] sm:$0xff]  ;;  %v1176_v2 = vld [vmem:[#allocation16 + $0x358] sm:$0xff] }
 0x449   :  { %2810 = vmatprep.subr.bf16.mxu0 %v6184_v24  ;;  %2851 = vmatprep.subr.bf16.mxu1 %v6058_v25  ;;  %v6240_v24 = vcombine.high %v1255_v13, %v1259_v16  ;;  %v6114_v25 = vcombine.high %v1128_v20, %v1132_v21  ;;  %v1307_v1 = vld [vmem:[#allocation16 + $0x770] sm:$0xff]  ;;  %v1180_v4 = vld [vmem:[#allocation16 + $0x378] sm:$0xff] }
 0x44b   :  { %2802 = vmatmul.mubr.bf16.vlgmr.msra.gmra.mrb[8].mxu0 %v8209_v39  ;;  %2761 = vmatmul.mubr.bf16.vlgmr.msra.gmra.mrb[16].mxu1 %v8233_v5 }
 0x44c   :  { %2811 = vmatpush1.bf16.msra.mxu0 %v6183_v15  ;;  %2842 = vmatprep.mubr.bf16.mxu0 %v8231_v3  ;;  %v6239_v15 = vcombine.low %v1255_v13, %v1259_v16  ;;  %v1311_v13 = vld [vmem:[#allocation16 + $0x790] sm:$0xff] }
 0x44d   :  { %2852 = vmatpush1.bf16.msra.mxu1 %v6057_v17  ;;  %2883 = vmatprep.mubr.bf16.mxu1 %v8207_v38  ;;  %v1104_v38 = vld [vmem:[#allocation16 + $0x118] sm:$0xff]  ;;  %v6113_v17 = vcombine.low %v1128_v20, %v1132_v21  ;;  %v1315_v16 = vld [vmem:[#allocation16 + $0x7b0] sm:$0xff] }
 0x44e   :  { %2812 = vmatprep.subr.bf16.mxu0 %v6192_v29  ;;  %2853 = vmatprep.subr.bf16.mxu1 %v6066_v30  ;;  %v6090_v47 = vcombine.high %v1104_v38, %v1108_v56  ;;  %v6089_v61 = vcombine.low %v1104_v38, %v1108_v56  ;;  %v6248_v29 = vcombine.high %v1263_v26, %v1267_v27  ;;  %v1160_v38 = vld [vmem:[#allocation16 + $0x2d8] sm:$0xff] }
 0x44f   :  { %v6122_v30 = vcombine.high %v1136_v28, %v1140_v14  ;;  %v1164_v56 = vld [vmem:[#allocation16 + $0x2f8] sm:$0xff] }
 0x450   :  { %2813 = vmatpush1.bf16.msra.mxu0 %v6191_v37  ;;  %v6247_v37 = vcombine.low %v1263_v26, %v1267_v27  ;;  %v1184_v20 = vld [vmem:[#allocation16 + $0x398] sm:$0xff]  ;;  %v1319_v26 = vld [vmem:[#allocation16 + $0x7d0] sm:$0xff] }
 0x451   :  { %2854 = vmatpush1.bf16.msra.mxu1 %v6065_v40  ;;  %2814 = vmatprep.subr.bf16.mxu0 %v6200_v41  ;;  %v6121_v40 = vcombine.low %v1136_v28, %v1140_v14  ;;  %v6256_v41 = vcombine.high %v1271_v31, %v1275_v33  ;;  %v1188_v21 = vld [vmem:[#allocation16 + $0x3b8] sm:$0xff]  ;;  %v1323_v27 = vld [vmem:[#allocation16 + $0x7f0] sm:$0xff] }
 0x452   :  { %2855 = vmatprep.subr.bf16.mxu1 %v6074_v44  ;;  %v6130_v44 = vcombine.high %v1144_v35, %v1148_v36  ;;  %v1192_v28 = vld [vmem:[#allocation16 + $0x3d8] sm:$0xff] }
 0x453   :  { %v1196_v14 = vld [vmem:[#allocation16 + $0x3f8] sm:$0xff] }
 0x454   :  { %2815 = vmatpush1.bf16.msra.mxu0 %v6199_v50  ;;  %v6255_v50 = vcombine.low %v1271_v31, %v1275_v33  ;;  %v1200_v31 = vld [vmem:[#allocation16 + $0x418] sm:$0xff] }
 0x455   :  { %2856 = vmatpush1.bf16.msra.mxu1 %v6073_v51  ;;  %2816 = vmatprep.subr.bf16.mxu0 %v6208_v52  ;;  %v6129_v51 = vcombine.low %v1144_v35, %v1148_v36  ;;  %v6264_v52 = vcombine.high %v1279_v45, %v1283_v46  ;;  %v1204_v33 = vld [vmem:[#allocation16 + $0x438] sm:$0xff]  ;;  %v6303_v35 = vcombine.low %v1319_v26, %v1323_v27 }
 0x456   :  { %2857 = vmatprep.subr.bf16.mxu1 %v6082_v53  ;;  %v6138_v53 = vcombine.high %v1152_v48, %v1156_v49  ;;  %v6177_v36 = vcombine.low %v1192_v28, %v1196_v14 }
 0x458   :  { %2817 = vmatpush1.bf16.msra.mxu0 %v6207_v42  ;;  %v6263_v42 = vcombine.low %v1279_v45, %v1283_v46  ;;  %v6926_v45 = vld [vmem:[#allocation21] ss:$24 sps:$4 sm:$0xff]   ;;  %v6185_v46 = vcombine.low %v1200_v31, %v1204_v33 }
 0x459   :  { %2858 = vmatpush1.bf16.msra.mxu1 %v6081_v18  ;;  %2818 = vmatprep.subr.bf16.mxu0 %v6216_v43  ;;  %v6137_v18 = vcombine.low %v1152_v48, %v1156_v49  ;;  %v6272_v43 = vcombine.high %v1287_v54, %v1291_v55  ;;  %v6931_v49 = vld [vmem:[#allocation21 + $0x34] ss:$24 sps:$4 sm:$0xff]  }
 0x45a   :  { %2859 = vmatprep.subr.bf16.mxu1 %v6090_v47  ;;  %v6146_v47 = vcombine.high %v1160_v38, %v1164_v56 }
 0x45c   :  { %2819 = vmatpush1.bf16.msra.mxu0 %v6215_v19  ;;  %v6271_v19 = vcombine.low %v1287_v54, %v1291_v55  ;;  %v6934_v54 = vld [vmem:[#allocation21 + $0x64] ss:$24 sps:$4 sm:$0xff]  }
 0x45d   :  { %2860 = vmatpush1.bf16.msra.mxu1 %v6089_v61  ;;  %2820 = vmatprep.subr.bf16.mxu0 %v6224_v62  ;;  %v6145_v61 = vcombine.low %v1160_v38, %v1164_v56  ;;  %v6280_v62 = vcombine.high %v1295_v57, %v1299_v58  ;;  %v1224_v38 = vld [vmem:[#allocation16 + $0x4d8] sm:$0xff] }
 0x45e   :  { %2861 = vmatprep.subr.bf16.mxu1 %v6098_v63  ;;  %v6154_v63 = vcombine.high %v1168_v59, %v1172_v60  ;;  %v1228_v56 = vld [vmem:[#allocation16 + $0x4f8] sm:$0xff] }
 0x460   :  { %2821 = vmatpush1.bf16.msra.mxu0 %v6223_v6  ;;  %v6279_v6 = vcombine.low %v1295_v57, %v1299_v58  ;;  %v1236_v57 = vld [vmem:[#allocation16 + $0x538] sm:$0xff] }
 0x461   :  { %2862 = vmatpush1.bf16.msra.mxu1 %v6097_v7  ;;  %2822 = vmatprep.subr.bf16.mxu0 %v6232_v10  ;;  %v6153_v7 = vcombine.low %v1168_v59, %v1172_v60  ;;  %v6288_v10 = vcombine.high %v1303_v0, %v1307_v1  ;;  %v6935_v58 = vld [vmem:[#allocation21 + $0x90] ss:$24 sps:$4 sm:$0xff]   ;;  %v6940_v59 = vld [vmem:[#allocation21 + $0xc4] ss:$24 sps:$4 sm:$0xff]  }
 0x462   :  { %2863 = vmatprep.subr.bf16.mxu1 %v6106_v12  ;;  %v6162_v12 = vcombine.high %v1176_v2, %v1180_v4 }
 0x464   :  { %2823 = vmatpush1.bf16.msra.mxu0 %v6231_v22  ;;  %v6287_v22 = vcombine.low %v1303_v0, %v1307_v1  ;;  %v6943_v0 = vld [vmem:[#allocation21 + $0xf4] ss:$24 sps:$4 sm:$0xff]  }
 0x465   :  { %2864 = vmatpush1.bf16.msra.mxu1 %v6105_v23  ;;  %2824 = vmatprep.subr.bf16.mxu0 %v6240_v24  ;;  %v6161_v23 = vcombine.low %v1176_v2, %v1180_v4  ;;  %v6296_v24 = vcombine.high %v1311_v13, %v1315_v16  ;;  %v1248_v2 = vld [vmem:[#allocation16 + $0x598] sm:$0xff] }
 0x466   :  { %2865 = vmatprep.subr.bf16.mxu1 %v6114_v25  ;;  %v6170_v25 = vcombine.high %v1184_v20, %v1188_v21  ;;  %v1252_v4 = vld [vmem:[#allocation16 + $0x5b8] sm:$0xff] }
 0x468   :  { %2825 = vmatpush1.bf16.msra.mxu0 %v6239_v15  ;;  %v6295_v15 = vcombine.low %v1311_v13, %v1315_v16  ;;  %v6234_v13 = vcombine.high %v1248_v2, %v1252_v4 }
 0x469   :  { %2866 = vmatpush1.bf16.msra.mxu1 %v6113_v17  ;;  %2826 = vmatprep.subr.bf16.mxu0 %v6248_v29  ;;  %v6169_v17 = vcombine.low %v1184_v20, %v1188_v21  ;;  %v6304_v29 = vcombine.high %v1319_v26, %v1323_v27  ;;  %v1256_v20 = vld [vmem:[#allocation16 + $0x5d8] sm:$0xff] }
 0x46a   :  { %2867 = vmatprep.subr.bf16.mxu1 %v6122_v30  ;;  %v6178_v30 = vcombine.high %v1192_v28, %v1196_v14  ;;  %v1260_v21 = vld [vmem:[#allocation16 + $0x5f8] sm:$0xff] }
 0x46b   :  { %v6949_v26 = vld [vmem:[#allocation21 + $0x154] ss:$24 sps:$4 sm:$0xff]   ;;  %v6242_v27 = vcombine.high %v1256_v20, %v1260_v21 }
 0x46c   :  { %2827 = vmatpush1.bf16.msra.mxu0 %v6247_v37  ;;  %v6928_v37 = vld [vmem:[#allocation21 + $0x4] ss:$24 sps:$4 sm:$0xff]   ;;  %v1264_v28 = vld [vmem:[#allocation16 + $0x618] sm:$0xff] }
 0x46d   :  { %2868 = vmatpush1.bf16.msra.mxu1 %v6121_v40  ;;  %2828 = vmatprep.subr.bf16.mxu0 %v6256_v41  ;;  %v6186_v40 = vcombine.high %v1200_v31, %v1204_v33  ;;  %v1208_v41 = vld [vmem:[#allocation16 + $0x458] sm:$0xff] }
 0x46e   :  { %2869 = vmatprep.subr.bf16.mxu1 %v6130_v44  ;;  %v1212_v44 = vld [vmem:[#allocation16 + $0x478] sm:$0xff] }
 0x46f   :  { %v6194_v48 = vcombine.high %v1208_v41, %v1212_v44  ;;  %v1268_v14 = vld [vmem:[#allocation16 + $0x638] sm:$0xff] }
 0x470   :  { %2829 = vmatpush1.bf16.msra.mxu0 %v6255_v50  ;;  %v1216_v50 = vld [vmem:[#allocation16 + $0x498] sm:$0xff] }
 0x471   :  { %2870 = vmatpush1.bf16.msra.mxu1 %v6129_v51  ;;  %2830 = vmatprep.subr.bf16.mxu0 %v6264_v52  ;;  %v1220_v51 = vld [vmem:[#allocation16 + $0x4b8] sm:$0xff] }
 0x472   :  { %2871 = vmatprep.subr.bf16.mxu1 %v6138_v53  ;;  %v6929_v52 = vld [vmem:[#allocation21 + $0x30] ss:$24 sps:$4 sm:$0xff]   ;;  %v6193_v53 = vcombine.low %v1208_v41, %v1212_v44  ;;  %v6202_v55 = vcombine.high %v1216_v50, %v1220_v51 }
 0x473   :  { %v1272_v31 = vld [vmem:[#allocation16 + $0x658] sm:$0xff] }
 0x474   :  { %2831 = vmatpush1.bf16.msra.mxu0 %v6263_v42  ;;  %v6932_v42 = vld [vmem:[#allocation21 + $0x60] ss:$24 sps:$4 sm:$0xff]   ;;  %v1276_v33 = vld [vmem:[#allocation16 + $0x678] sm:$0xff] }
 0x475   :  { %2872 = vmatpush1.bf16.msra.mxu1 %v6137_v18  ;;  %2832 = vmatprep.subr.bf16.mxu0 %v6272_v43  ;;  %v6201_v18 = vcombine.low %v1216_v50, %v1220_v51  ;;  %v6937_v43 = vld [vmem:[#allocation21 + $0x94] ss:$24 sps:$4 sm:$0xff]  }
 0x476   :  { %2873 = vmatprep.subr.bf16.mxu1 %v6146_v47  ;;  %v1232_v47 = vld [vmem:[#allocation16 + $0x518] sm:$0xff] }
 0x477   :  { %v6218_v60 = vcombine.high %v1232_v47, %v1236_v57  ;;  %v1280_v41 = vld [vmem:[#allocation16 + $0x698] sm:$0xff] }
 0x478   :  { %2833 = vmatpush1.bf16.msra.mxu0 %v6271_v19  ;;  %v1240_v19 = vld [vmem:[#allocation16 + $0x558] sm:$0xff] }
 0x479   :  { %2874 = vmatpush1.bf16.msra.mxu1 %v6145_v61  ;;  %2834 = vmatprep.subr.bf16.mxu0 %v6280_v62  ;;  %v1244_v61 = vld [vmem:[#allocation16 + $0x578] sm:$0xff]  ;;  %v6938_v62 = vld [vmem:[#allocation21 + $0xc0] ss:$24 sps:$4 sm:$0xff]  }
 0x47a   :  { %2875 = vmatprep.subr.bf16.mxu1 %v6154_v63  ;;  %v6217_v63 = vcombine.low %v1232_v47, %v1236_v57  ;;  %v6226_v1 = vcombine.high %v1240_v19, %v1244_v61  ;;  %v1284_v44 = vld [vmem:[#allocation16 + $0x6b8] sm:$0xff] }
 0x47b   :  { %v1288_v50 = vld [vmem:[#allocation16 + $0x6d8] sm:$0xff] }
 0x47c   :  { %2835 = vmatpush1.bf16.msra.mxu0 %v6279_v6  ;;  %v6941_v6 = vld [vmem:[#allocation21 + $0xf0] ss:$24 sps:$4 sm:$0xff]  }
 0x47d   :  { %2876 = vmatpush1.bf16.msra.mxu1 %v6153_v7  ;;  %2836 = vmatprep.subr.bf16.mxu0 %v6288_v10  ;;  %v6225_v7 = vcombine.low %v1240_v19, %v1244_v61  ;;  %v6946_v10 = vld [vmem:[#allocation21 + $0x124] ss:$24 sps:$4 sm:$0xff]   ;;  %v1292_v51 = vld [vmem:[#allocation16 + $0x6f8] sm:$0xff] }
 0x47e   :  { %2877 = vmatprep.subr.bf16.mxu1 %v6162_v12  ;;  %v1304_v47 = vld [vmem:[#allocation16 + $0x758] sm:$0xff] }
 0x47f   :  { %v1308_v57 = vld [vmem:[#allocation16 + $0x778] sm:$0xff] }
 0x480   :  { %2837 = vmatpush1.bf16.msra.mxu0 %v6287_v22  ;;  %v1312_v19 = vld [vmem:[#allocation16 + $0x798] sm:$0xff] }
 0x481   :  { %2878 = vmatpush1.bf16.msra.mxu1 %v6161_v23  ;;  %2838 = vmatprep.subr.bf16.mxu0 %v6296_v24  ;;  %v6944_v23 = vld [vmem:[#allocation21 + $0x120] ss:$24 sps:$4 sm:$0xff]   ;;  %v1316_v61 = vld [vmem:[#allocation16 + $0x7b8] sm:$0xff] }
 0x482   :  { %2879 = vmatprep.subr.bf16.mxu1 %v6170_v25  ;;  %v6233_v25 = vcombine.low %v1248_v2, %v1252_v4  ;;  %v1320_v2 = vld [vmem:[#allocation16 + $0x7d8] sm:$0xff] }
 0x483   :  { %v1324_v4 = vld [vmem:[#allocation16 + $0x7f8] sm:$0xff] }
 0x484   :  { %2839 = vmatpush1.bf16.msra.mxu0 %v6295_v15  ;;  %v6947_v15 = vld [vmem:[#allocation21 + $0x150] ss:$24 sps:$4 sm:$0xff]  }
 0x485   :  { %2880 = vmatpush1.bf16.msra.mxu1 %v6169_v17  ;;  %2840 = vmatprep.subr.bf16.mxu0 %v6304_v29  ;;  %v6241_v17 = vcombine.low %v1256_v20, %v1260_v21  ;;  %v6952_v29 = vld [vmem:[#allocation21 + $0x184] ss:$24 sps:$4 sm:$0xff]   ;;  %v6992_v20 = vld [vmem:[#allocation21 + $0x2d0] ss:$24 sps:$4 sm:$0xff]   ;;  %v6305_v21 = vcombine.low %v1320_v2, %v1324_v4 }
 0x486   :  { %2881 = vmatprep.subr.bf16.mxu1 %v6178_v30  ;;  %v6250_v30 = vcombine.high %v1264_v28, %v1268_v14 }
 0x488   :  { %2841 = vmatpush1.bf16.msra.mxu0 %v6303_v35  ;;  %v6950_v35 = vld [vmem:[#allocation21 + $0x180] ss:$24 sps:$4 sm:$0xff]  }
 0x489   :  { %2882 = vmatpush1.bf16.msra.mxu1 %v6177_v36  ;;  %5369 = vmatprep.subr.bf16.mxu0 %v6928_v37  ;;  %v6249_v36 = vcombine.low %v1264_v28, %v1268_v14  ;;  %v6958_v37 = vld [vmem:[#allocation21 + $0x1b4] ss:$24 sps:$4 sm:$0xff]   ;;  %v6965_v28 = vld [vmem:[#allocation21 + $0x68] ss:$24 sps:$4 sm:$0xff]  }
 0x48a   :  { %2892 = vmatprep.subr.bf16.mxu1 %v6186_v40  ;;  %v6258_v40 = vcombine.high %v1272_v31, %v1276_v33  ;;  %v6973_v14 = vld [vmem:[#allocation21 + $0x9c] ss:$24 sps:$4 sm:$0xff]  }
 0x48b   :  { %2843 = vmatmul.mubr.bf16.vlgmr.msra.gmra.mrb[8].mxu0 %v8233_v5 }
 0x48c   :  { %2884 = vmatmul.mubr.bf16.vlgmr.msra.gmra.mrb[20].mxu1 %v8209_v39  ;;  %5370 = vmatpush1.bf16.msra.mxu0 %v6926_v45  ;;  %v6210_v39 = vcombine.high %v1224_v38, %v1228_v56  ;;  %v6956_v45 = vld [vmem:[#allocation21 + $0x1b0] ss:$24 sps:$4 sm:$0xff]  }
 0x48d   :  { %2893 = vmatpush1.bf16.msra.mxu1 %v6185_v46  ;;  %2924 = vmatprep.mubr.bf16.mxu1 %v8231_v3  ;;  %v6209_v3 = vcombine.low %v1224_v38, %v1228_v56  ;;  %v6257_v46 = vcombine.low %v1272_v31, %v1276_v33  ;;  %v1296_v38 = vld [vmem:[#allocation16 + $0x718] sm:$0xff]  ;;  %v6985_v31 = vld [vmem:[#allocation21 + $0xfc] ss:$24 sps:$4 sm:$0xff]  }
 0x48e   :  { %2894 = vmatprep.subr.bf16.mxu1 %v6194_v48  ;;  %5371 = vmatprep.subr.bf16.mxu0 %v6931_v49  ;;  %v6964_v48 = vld [vmem:[#allocation21 + $0x1e4] ss:$24 sps:$4 sm:$0xff]   ;;  %v6266_v49 = vcombine.high %v1280_v41, %v1284_v44  ;;  %v1300_v56 = vld [vmem:[#allocation16 + $0x738] sm:$0xff] }
 0x48f   :  { %v8257_v33 = vld [vmem:[#allocation19] sm:$0xff] }
 0x490   :  { %5372 = vmatpush1.bf16.msra.mxu0 %v6929_v52  ;;  %v6962_v52 = vld [vmem:[#allocation21 + $0x1e0] ss:$24 sps:$4 sm:$0xff]  }
 0x491   :  { %2895 = vmatpush1.bf16.msra.mxu1 %v6193_v53  ;;  %5373 = vmatprep.subr.bf16.mxu0 %v6934_v54  ;;  %v6265_v53 = vcombine.low %v1280_v41, %v1284_v44  ;;  %v6970_v54 = vld [vmem:[#allocation21 + $0x214] ss:$24 sps:$4 sm:$0xff]   ;;  %v2988_v44 = vrot.slane %v8257_v33, %v8166_v9 }
 0x492   :  { %2896 = vmatprep.subr.bf16.mxu1 %v6202_v55  ;;  %v6274_v55 = vcombine.high %v1288_v50, %v1292_v51 }
 0x494   :  { %5374 = vmatpush1.bf16.msra.mxu0 %v6932_v42  ;;  %v6968_v42 = vld [vmem:[#allocation21 + $0x210] ss:$24 sps:$4 sm:$0xff]  }
 0x495   :  { %2897 = vmatpush1.bf16.msra.mxu1 %v6201_v18  ;;  %5375 = vmatprep.subr.bf16.mxu0 %v6937_v43  ;;  %v6273_v18 = vcombine.low %v1288_v50, %v1292_v51  ;;  %v6976_v43 = vld [vmem:[#allocation21 + $0x244] ss:$24 sps:$4 sm:$0xff]  }
 0x496   :  { %2898 = vmatprep.subr.bf16.mxu1 %v6210_v39  ;;  %v6282_v39 = vcombine.high %v1296_v38, %v1300_v56 }
 0x498   :  { %5376 = vmatpush1.bf16.msra.mxu0 %v6935_v58  ;;  %v6974_v58 = vld [vmem:[#allocation21 + $0x240] ss:$24 sps:$4 sm:$0xff]  }
 0x499   :  { %2899 = vmatpush1.bf16.msra.mxu1 %v6209_v3  ;;  %5377 = vmatprep.subr.bf16.mxu0 %v6940_v59  ;;  %v6281_v3 = vcombine.low %v1296_v38, %v1300_v56  ;;  %v6982_v59 = vld [vmem:[#allocation21 + $0x274] ss:$24 sps:$4 sm:$0xff]   ;;  %v6995_v56 = vld [vmem:[#allocation21 + $0x158] ss:$24 sps:$4 sm:$0xff]  }
 0x49a   :  { %2900 = vmatprep.subr.bf16.mxu1 %v6218_v60  ;;  %v6290_v60 = vcombine.high %v1304_v47, %v1308_v57 }
 0x49c   :  { %5378 = vmatpush1.bf16.msra.mxu0 %v6938_v62  ;;  %v6980_v62 = vld [vmem:[#allocation21 + $0x270] ss:$24 sps:$4 sm:$0xff]  }
 0x49d   :  { %2901 = vmatpush1.bf16.msra.mxu1 %v6217_v63  ;;  %5379 = vmatprep.subr.bf16.mxu0 %v6943_v0  ;;  %v6289_v63 = vcombine.low %v1304_v47, %v1308_v57  ;;  %v6988_v0 = vld [vmem:[#allocation21 + $0x2a4] ss:$24 sps:$4 sm:$0xff]   ;;  %v6998_v47 = vld [vmem:[#allocation21 + $0x300] ss:$24 sps:$4 sm:$0xff]  }
 0x49e   :  { %v8250_v12 = vpop.f32.mrb[12].mxu1  ;;  %2902 = vmatprep.subr.bf16.mxu1 %v6226_v1  ;;  %v6298_v1 = vcombine.high %v1312_v19, %v1316_v61  ;;  %v7001_v57 = vld [vmem:[#allocation21 + $0x188] ss:$24 sps:$4 sm:$0xff]  }
 0x49f   :  { %v8252_v16 = vpop.f32.mrb[13].mxu1 }
 0x4a0   :  { %v2643_v22 = vpop.f32.mrb[14].mxu1  ;;  %5380 = vmatpush1.bf16.msra.mxu0 %v6941_v6  ;;  %v6986_v6 = vld [vmem:[#allocation21 + $0x2a0] ss:$24 sps:$4 sm:$0xff]  }
 0x4a1   :  { %2903 = vmatpush1.bf16.msra.mxu1 %v6225_v7  ;;  %v2644_v24 = vpop.f32.mrb[15].mxu1  ;;  %5381 = vmatprep.subr.bf16.mxu0 %v6946_v10  ;;  %v6297_v7 = vcombine.low %v1312_v19, %v1316_v61  ;;  %v6994_v10 = vld [vmem:[#allocation21 + $0x2d4] ss:$24 sps:$4 sm:$0xff]   ;;  %v7000_v22 = vld [vmem:[#allocation21 + $0x304] ss:$24 sps:$4 sm:$0xff]  }
 0x4a2   :  { %2904 = vmatprep.subr.bf16.mxu1 %v6234_v13  ;;  %v6306_v13 = vcombine.high %v1320_v2, %v1324_v4  ;;  %v6953_v24 = vld [vmem:[#allocation21 + $0x8] ss:$24 sps:$4 sm:$0xff]   ;;  %v7007_v19 = vld [vmem:[#allocation21 + $0x1b8] ss:$24 sps:$4 sm:$0xff]   ;;  %v7012_v61 = vld [vmem:[#allocation21 + $0x364] ss:$24 sps:$4 sm:$0xff]  }
 0x4a3   :  { %v7021_v2 = vld [vmem:[#allocation21 + $0x21c] ss:$24 sps:$4 sm:$0xff]   ;;  %v7016_v4 = vld [vmem:[#allocation21 + $0x390] ss:$24 sps:$4 sm:$0xff]  }
 0x4a4   :  { %5382 = vmatpush1.bf16.msra.mxu0 %v6944_v23  ;;  %v6955_v23 = vld [vmem:[#allocation21 + $0xc] ss:$24 sps:$4 sm:$0xff]  }
 0x4a5   :  { %2905 = vmatpush1.bf16.msra.mxu1 %v6233_v25  ;;  %5383 = vmatprep.subr.bf16.mxu0 %v6949_v26  ;;  %v6961_v25 = vld [vmem:[#allocation21 + $0x3c] ss:$24 sps:$4 sm:$0xff]   ;;  %v6959_v26 = vld [vmem:[#allocation21 + $0x38] ss:$24 sps:$4 sm:$0xff]  }
 0x4a6   :  { %2906 = vmatprep.subr.bf16.mxu1 %v6242_v27  ;;  %v6967_v27 = vld [vmem:[#allocation21 + $0x6c] ss:$24 sps:$4 sm:$0xff]  }
 0x4a8   :  { %5384 = vmatpush1.bf16.msra.mxu0 %v6947_v15  ;;  %v6971_v15 = vld [vmem:[#allocation21 + $0x98] ss:$24 sps:$4 sm:$0xff]  }
 0x4a9   :  { %2907 = vmatpush1.bf16.msra.mxu1 %v6241_v17  ;;  %5385 = vmatprep.subr.bf16.mxu0 %v6952_v29  ;;  %v6979_v17 = vld [vmem:[#allocation21 + $0xcc] ss:$24 sps:$4 sm:$0xff]   ;;  %v6977_v29 = vld [vmem:[#allocation21 + $0xc8] ss:$24 sps:$4 sm:$0xff]  }
 0x4aa   :  { %2908 = vmatprep.subr.bf16.mxu1 %v6250_v30  ;;  %v8255_v30 = vld [vmem:[#allocation18] sm:$0xff] }
 0x4ac   :  { %5386 = vmatpush1.bf16.msra.mxu0 %v6950_v35  ;;  %v6983_v35 = vld [vmem:[#allocation21 + $0xf8] ss:$24 sps:$4 sm:$0xff]  }
 0x4ad   :  { %2909 = vmatpush1.bf16.msra.mxu1 %v6249_v36  ;;  %5387 = vmatprep.subr.bf16.mxu0 %v6958_v37  ;;  %v2942_v37 = vrot.slane %v8255_v30, %v8169_v11 }
 0x4ae   :  { %2910 = vmatprep.subr.bf16.mxu1 %v6258_v40  ;;  %v6991_v40 = vld [vmem:[#allocation21 + $0x12c] ss:$24 sps:$4 sm:$0xff]  }
 0x4b0   :  { %5388 = vmatpush1.bf16.msra.mxu0 %v6956_v45 }
 0x4b1   :  { %2911 = vmatpush1.bf16.msra.mxu1 %v6257_v46  ;;  %5389 = vmatprep.subr.bf16.mxu0 %v6964_v48  ;;  %v2992_v48 = vrot.slane %v8257_v33, %v8169_v11 }
 0x4b2   :  { %2912 = vmatprep.subr.bf16.mxu1 %v6266_v49 }
 0x4b4   :  { %5390 = vmatpush1.bf16.msra.mxu0 %v6962_v52  ;;  %v6989_v52 = vld [vmem:[#allocation21 + $0x128] ss:$24 sps:$4 sm:$0xff]  }
 0x4b5   :  { %2913 = vmatpush1.bf16.msra.mxu1 %v6265_v53  ;;  %5391 = vmatprep.subr.bf16.mxu0 %v6970_v54  ;;  %v6997_v54 = vld [vmem:[#allocation21 + $0x15c] ss:$24 sps:$4 sm:$0xff]  }
 0x4b6   :  { %2914 = vmatprep.subr.bf16.mxu1 %v6274_v55 }
 0x4b8   :  { %5392 = vmatpush1.bf16.msra.mxu0 %v6968_v42  ;;  %v7003_v42 = vld [vmem:[#allocation21 + $0x18c] ss:$24 sps:$4 sm:$0xff]  }
 0x4b9   :  { %2915 = vmatpush1.bf16.msra.mxu1 %v6273_v18  ;;  %5393 = vmatprep.subr.bf16.mxu0 %v6976_v43 }
 0x4ba   :  { %2916 = vmatprep.subr.bf16.mxu1 %v6282_v39 }
 0x4bc   :  { %5394 = vmatpush1.bf16.msra.mxu0 %v6974_v58 }
 0x4bd   :  { %2917 = vmatpush1.bf16.msra.mxu1 %v6281_v3  ;;  %5395 = vmatprep.subr.bf16.mxu0 %v6982_v59  ;;  %v7006_v3 = vld [vmem:[#allocation21 + $0x334] ss:$24 sps:$4 sm:$0xff]  }
 0x4be   :  { %2918 = vmatprep.subr.bf16.mxu1 %v6290_v60  ;;  %v7009_v59 = vld [vmem:[#allocation21 + $0x1bc] ss:$24 sps:$4 sm:$0xff]   ;;  %v7004_v60 = vld [vmem:[#allocation21 + $0x330] ss:$24 sps:$4 sm:$0xff]  }
 0x4c0   :  { %5396 = vmatpush1.bf16.msra.mxu0 %v6980_v62  ;;  %v7015_v62 = vld [vmem:[#allocation21 + $0x1ec] ss:$24 sps:$4 sm:$0xff]  }
 0x4c1   :  { %2919 = vmatpush1.bf16.msra.mxu1 %v6289_v63  ;;  %5397 = vmatprep.subr.bf16.mxu0 %v6988_v0  ;;  %v7010_v63 = vld [vmem:[#allocation21 + $0x360] ss:$24 sps:$4 sm:$0xff]  }
 0x4c2   :  { %2920 = vmatprep.subr.bf16.mxu1 %v6298_v1  ;;  %v7013_v0 = vld [vmem:[#allocation21 + $0x1e8] ss:$24 sps:$4 sm:$0xff]   ;;  %v7018_v1 = vld [vmem:[#allocation21 + $0x394] ss:$24 sps:$4 sm:$0xff]  }
 0x4c4   :  { %5398 = vmatpush1.bf16.msra.mxu0 %v6986_v6  ;;  %v7019_v6 = vld [vmem:[#allocation21 + $0x218] ss:$24 sps:$4 sm:$0xff]  }
 0x4c5   :  { %2921 = vmatpush1.bf16.msra.mxu1 %v6297_v7  ;;  %5399 = vmatprep.subr.bf16.mxu0 %v6994_v10  ;;  %v7024_v7 = vld [vmem:[#allocation21 + $0x3c4] ss:$24 sps:$4 sm:$0xff]  }
 0x4c6   :  { %2922 = vmatprep.subr.bf16.mxu1 %v6306_v13  ;;  %v7027_v10 = vld [vmem:[#allocation21 + $0x24c] ss:$24 sps:$4 sm:$0xff]   ;;  %v7022_v13 = vld [vmem:[#allocation21 + $0x3c0] ss:$24 sps:$4 sm:$0xff]  }
 0x4c8   :  { %5400 = vmatpush1.bf16.msra.mxu0 %v6992_v20  ;;  %v7025_v20 = vld [vmem:[#allocation21 + $0x248] ss:$24 sps:$4 sm:$0xff]  }
 0x4c9   :  { %2923 = vmatpush1.bf16.msra.mxu1 %v6305_v21  ;;  %5410 = vmatprep.subr.bf16.mxu0 %v7000_v22  ;;  %v7030_v21 = vld [vmem:[#allocation21 + $0x3f4] ss:$24 sps:$4 sm:$0xff]  }
 0x4ca   :  { %5533 = vmatprep.subr.bf16.mxu1 %v6955_v23  ;;  %v7033_v22 = vld [vmem:[#allocation21 + $0x27c] ss:$24 sps:$4 sm:$0xff]   ;;  %v7028_v23 = vld [vmem:[#allocation21 + $0x3f0] ss:$24 sps:$4 sm:$0xff]  }
 0x4cc   :  { %2925 = vmatmul.mubr.bf16.vlgmr.msra.gmra.mrb[20].mxu1 %v8233_v5  ;;  %v2938_v5 = vrot.slane %v8255_v30, %v8166_v9 }
 0x4cd   :  { %5534 = vmatpush1.bf16.msra.mxu1 %v6953_v24  ;;  %v7031_v24 = vld [vmem:[#allocation21 + $0x278] ss:$24 sps:$4 sm:$0xff]  }
 0x4ce   :  { %5535 = vmatprep.subr.bf16.mxu1 %v6961_v25  ;;  %v7036_v25 = vld [vmem:[#allocation21 + $0x424] ss:$24 sps:$4 sm:$0xff]  }
 0x4d1   :  { %5536 = vmatpush1.bf16.msra.mxu1 %v6959_v26  ;;  %v7039_v26 = vld [vmem:[#allocation21 + $0x2ac] ss:$24 sps:$4 sm:$0xff]  }
 0x4d2   :  { %5537 = vmatprep.subr.bf16.mxu1 %v6967_v27  ;;  %v7034_v27 = vld [vmem:[#allocation21 + $0x420] ss:$24 sps:$4 sm:$0xff]  }
 0x4d5   :  { %5538 = vmatpush1.bf16.msra.mxu1 %v6965_v28  ;;  %v7037_v28 = vld [vmem:[#allocation21 + $0x2a8] ss:$24 sps:$4 sm:$0xff]  }
 0x4d6   :  { %5539 = vmatprep.subr.bf16.mxu1 %v6973_v14  ;;  %v7042_v14 = vld [vmem:[#allocation21 + $0x454] ss:$24 sps:$4 sm:$0xff]  }
 0x4d9   :  { %5540 = vmatpush1.bf16.msra.mxu1 %v6971_v15  ;;  %v7045_v15 = vld [vmem:[#allocation21 + $0x2dc] ss:$24 sps:$4 sm:$0xff]  }
 0x4da   :  { %5541 = vmatprep.subr.bf16.mxu1 %v6979_v17  ;;  %v7040_v17 = vld [vmem:[#allocation21 + $0x450] ss:$24 sps:$4 sm:$0xff]  }
 0x4dd   :  { %5542 = vmatpush1.bf16.msra.mxu1 %v6977_v29  ;;  %v7043_v29 = vld [vmem:[#allocation21 + $0x2d8] ss:$24 sps:$4 sm:$0xff]  }
 0x4de   :  { %v2680_v36 = vpop.f32.mrb[4].mxu0  ;;  %5543 = vmatprep.subr.bf16.mxu1 %v6985_v31  ;;  %v7048_v31 = vld [vmem:[#allocation21 + $0x484] ss:$24 sps:$4 sm:$0xff]  }
 0x4df   :  { %v2681_v41 = vadd.f32 %v2680_v36, %v8250_v12  ;;  %v2682_v45 = vpop.f32.mrb[5].mxu0  ;;  %v7049_v36 = vld [vmem:[#allocation21 + $0x308] ss:$24 sps:$4 sm:$0xff]  }
 0x4e0   :  { %v2683_v46 = vadd.f32 %v2682_v45, %v8252_v16  ;;  %v2684_v49 = vpop.f32.mrb[6].mxu0  ;;  %v7060_v45 = vld [vmem:[#allocation21 + $0x4e4] ss:$24 sps:$4 sm:$0xff]  }
 0x4e1   :  { %v2975_v50 = vmul.f32 %v2938_v5, %v2681_v41  ;;  %5544 = vmatpush1.bf16.msra.mxu1 %v6983_v35  ;;  %v2685_v51 = vpop.f32.mrb[7].mxu0  ;;  %v7051_v5 = vld [vmem:[#allocation21 + $0x30c] ss:$24 sps:$4 sm:$0xff]   ;;  %v7046_v35 = vld [vmem:[#allocation21 + $0x480] ss:$24 sps:$4 sm:$0xff]  }
 0x4e2   :  { %v2976_v53 = vmul.f32 %v2942_v37, %v2683_v46  ;;  %5545 = vmatprep.subr.bf16.mxu1 %v6991_v40  ;;  %v7054_v37 = vld [vmem:[#allocation21 + $0x4b4] ss:$24 sps:$4 sm:$0xff]   ;;  %v7052_v41 = vld [vmem:[#allocation21 + $0x4b0] ss:$24 sps:$4 sm:$0xff]  }
 0x4e3   :  { %v3025_v55 = vadd.f32 %v2988_v44, %v2975_v50  ;;  %v7057_v40 = vld [vmem:[#allocation21 + $0x33c] ss:$24 sps:$4 sm:$0xff]   ;;  %v7055_v44 = vld [vmem:[#allocation21 + $0x338] ss:$24 sps:$4 sm:$0xff]   ;;  %v7063_v46 = vld [vmem:[#allocation21 + $0x36c] ss:$24 sps:$4 sm:$0xff]  }
 0x4e4   :  { %v3026_v38 = vadd.f32 %v2992_v48, %v2976_v53  ;;  %v7058_v48 = vld [vmem:[#allocation21 + $0x4e0] ss:$24 sps:$4 sm:$0xff]   ;;  %v7066_v50 = vld [vmem:[#allocation21 + $0x514] ss:$24 sps:$4 sm:$0xff]  }
 0x4e5   :  { %vm3033_vm8 = vcmp.ge.f32.partialorder %v3025_v55, 0.0  ;;  %v3041_v12 = vmul.f32 0.2, %v3025_v55  ;;  %5546 = vmatpush1.bf16.msra.mxu1 %v6989_v52  ;;  %v7061_v49 = vld [vmem:[#allocation21 + $0x368] ss:$24 sps:$4 sm:$0xff]  }
 0x4e6   :  { %5547 = vmatprep.subr.bf16.mxu1 %v6997_v54  ;;  %vm3034_vm9 = vcmp.ge.f32.partialorder %v3026_v38, 0.0  ;;  %v3042_v16 = vmul.f32 0.2, %v3026_v38  ;;  %v7069_v51 = vld [vmem:[#allocation21 + $0x39c] ss:$24 sps:$4 sm:$0xff]  }
 0x4e7   :  { %v3049_v18 = vsel %vm3033_vm8, %v3025_v55, %v3041_v12  ;;  %v7064_v52 = vld [vmem:[#allocation21 + $0x510] ss:$24 sps:$4 sm:$0xff]   ;;  %v7072_v54 = vld [vmem:[#allocation21 + $0x544] ss:$24 sps:$4 sm:$0xff]  }
 0x4e8   :  { %v3050_v43 = vsel %vm3034_vm9, %v3026_v38, %v3042_v16  ;;  %v8271_v58 = vpack.c.bf16 %v3049_v18, %v3049_v18  ;;  %v7067_v53 = vld [vmem:[#allocation21 + $0x398] ss:$24 sps:$4 sm:$0xff]   ;;  %v7075_v55 = vld [vmem:[#allocation21 + $0x3cc] ss:$24 sps:$4 sm:$0xff]   ;;  %v7073_v12 = vld [vmem:[#allocation21 + $0x3c8] ss:$24 sps:$4 sm:$0xff]   ;;  %v2950_v18 = vrot.slane %v8255_v30, %v8221_v34 }
 0x4e9   :  { %5548 = vmatpush1.bf16.msra.mxu1 %v6995_v56  ;;  %v8269_v39 = vpack.c.bf16 %v3050_v43, %v3050_v43  ;;  %v7070_v38 = vld [vmem:[#allocation21 + $0x540] ss:$24 sps:$4 sm:$0xff]   ;;  %v7078_v56 = vld [vmem:[#allocation21 + $0x574] ss:$24 sps:$4 sm:$0xff]   ;;  %v2996_v43 = vrot.slane %v8257_v33, %v8218_v32 }
 0x4ea   :  { %5549 = vmatprep.subr.bf16.mxu1 %v7003_v42  ;;  %v7081_v16 = vld [vmem:[#allocation21 + $0x3fc] ss:$24 sps:$4 sm:$0xff]   ;;  %v2946_v42 = vrot.slane %v8255_v30, %v8218_v32 }
 0x4eb   :  { %5401 = vmatprep.mubr.bf16.mxu0 %v8269_v39  ;;  %5565 = vmatprep.mubr.bf16.mxu1 %v8269_v39 }
 0x4ec   :  { %5402 = vmatmul.mubr.bf16.vlgmr.msra.gmra.mrb[12].mxu0 %v8271_v58 }
 0x4ed   :  { %5411 = vmatpush1.bf16.msra.mxu0 %v6998_v47  ;;  %5550 = vmatpush1.bf16.msra.mxu1 %v7001_v57  ;;  %v7076_v47 = vld [vmem:[#allocation21 + $0x570] ss:$24 sps:$4 sm:$0xff]  }
 0x4ee   :  { %5412 = vmatprep.subr.bf16.mxu0 %v7006_v3  ;;  %5551 = vmatprep.subr.bf16.mxu1 %v7009_v59  ;;  %v7079_v57 = vld [vmem:[#allocation21 + $0x3f8] ss:$24 sps:$4 sm:$0xff]   ;;  %v3000_v59 = vrot.slane %v8257_v33, %v8221_v34 }
 0x4f1   :  { %5413 = vmatpush1.bf16.msra.mxu0 %v7004_v60  ;;  %5552 = vmatpush1.bf16.msra.mxu1 %v7007_v19  ;;  %v7084_v60 = vld [vmem:[#allocation21 + $0x5a4] ss:$24 sps:$4 sm:$0xff]  }
 0x4f2   :  { %5414 = vmatprep.subr.bf16.mxu0 %v7012_v61  ;;  %5553 = vmatprep.subr.bf16.mxu1 %v7015_v62  ;;  %v7087_v19 = vld [vmem:[#allocation21 + $0x42c] ss:$24 sps:$4 sm:$0xff]  }
 0x4f5   :  { %5415 = vmatpush1.bf16.msra.mxu0 %v7010_v63  ;;  %5554 = vmatpush1.bf16.msra.mxu1 %v7013_v0 }
 0x4f6   :  { %5416 = vmatprep.subr.bf16.mxu0 %v7018_v1  ;;  %5555 = vmatprep.subr.bf16.mxu1 %v7021_v2 }
 0x4f9   :  { %5417 = vmatpush1.bf16.msra.mxu0 %v7016_v4  ;;  %5556 = vmatpush1.bf16.msra.mxu1 %v7019_v6  ;;  %v7082_v4 = vld [vmem:[#allocation21 + $0x5a0] ss:$24 sps:$4 sm:$0xff]  }
 0x4fa   :  { %5418 = vmatprep.subr.bf16.mxu0 %v7024_v7  ;;  %5557 = vmatprep.subr.bf16.mxu1 %v7027_v10  ;;  %v7085_v6 = vld [vmem:[#allocation21 + $0x428] ss:$24 sps:$4 sm:$0xff]   ;;  %v7090_v10 = vld [vmem:[#allocation21 + $0x5d4] ss:$24 sps:$4 sm:$0xff]  }
 0x4fd   :  { %5419 = vmatpush1.bf16.msra.mxu0 %v7022_v13  ;;  %5558 = vmatpush1.bf16.msra.mxu1 %v7025_v20  ;;  %v7093_v13 = vld [vmem:[#allocation21 + $0x45c] ss:$24 sps:$4 sm:$0xff]  }
 0x4fe   :  { %5420 = vmatprep.subr.bf16.mxu0 %v7030_v21  ;;  %5559 = vmatprep.subr.bf16.mxu1 %v7033_v22  ;;  %v7088_v22 = vld [vmem:[#allocation21 + $0x5d0] ss:$24 sps:$4 sm:$0xff]  }
 0x501   :  { %5421 = vmatpush1.bf16.msra.mxu0 %v7028_v23  ;;  %5560 = vmatpush1.bf16.msra.mxu1 %v7031_v24  ;;  %v7091_v23 = vld [vmem:[#allocation21 + $0x458] ss:$24 sps:$4 sm:$0xff]  }
 0x502   :  { %5422 = vmatprep.subr.bf16.mxu0 %v7036_v25  ;;  %5561 = vmatprep.subr.bf16.mxu1 %v7039_v26 }
 0x505   :  { %5423 = vmatpush1.bf16.msra.mxu0 %v7034_v27  ;;  %5562 = vmatpush1.bf16.msra.mxu1 %v7037_v28  ;;  %v7096_v27 = vld [vmem:[#allocation21 + $0x604] ss:$24 sps:$4 sm:$0xff]  }
 0x506   :  { %5424 = vmatprep.subr.bf16.mxu0 %v7042_v14  ;;  %5563 = vmatprep.subr.bf16.mxu1 %v7045_v15  ;;  %v7099_v28 = vld [vmem:[#allocation21 + $0x48c] ss:$24 sps:$4 sm:$0xff]   ;;  %v7094_v14 = vld [vmem:[#allocation21 + $0x600] ss:$24 sps:$4 sm:$0xff]  }
 0x507   :  { %v7097_v15 = vld [vmem:[#allocation21 + $0x488] ss:$24 sps:$4 sm:$0xff]  }
 0x509   :  { %5425 = vmatpush1.bf16.msra.mxu0 %v7040_v17  ;;  %5564 = vmatpush1.bf16.msra.mxu1 %v7043_v29  ;;  %v7102_v29 = vld [vmem:[#allocation21 + $0x634] ss:$24 sps:$4 sm:$0xff]  }
 0x50a   :  { %5426 = vmatprep.subr.bf16.mxu0 %v7048_v31  ;;  %5574 = vmatprep.subr.bf16.mxu1 %v7051_v5  ;;  %v7105_v31 = vld [vmem:[#allocation21 + $0x4bc] ss:$24 sps:$4 sm:$0xff]   ;;  %v7100_v5 = vld [vmem:[#allocation21 + $0x630] ss:$24 sps:$4 sm:$0xff]  }
 0x50c   :  { %5566 = vmatmul.mubr.bf16.vlgmr.msra.gmra.mrb[24].mxu1 %v8271_v58 }
 0x50d   :  { %5427 = vmatpush1.bf16.msra.mxu0 %v7046_v35  ;;  %5575 = vmatpush1.bf16.msra.mxu1 %v7049_v36  ;;  %v7103_v35 = vld [vmem:[#allocation21 + $0x4b8] ss:$24 sps:$4 sm:$0xff]   ;;  %v7108_v36 = vld [vmem:[#allocation21 + $0x664] ss:$24 sps:$4 sm:$0xff]  }
 0x50e   :  { %5428 = vmatprep.subr.bf16.mxu0 %v7054_v37  ;;  %5576 = vmatprep.subr.bf16.mxu1 %v7057_v40  ;;  %v7111_v37 = vld [vmem:[#allocation21 + $0x4ec] ss:$24 sps:$4 sm:$0xff]   ;;  %v7106_v40 = vld [vmem:[#allocation21 + $0x660] ss:$24 sps:$4 sm:$0xff]  }
 0x511   :  { %5429 = vmatpush1.bf16.msra.mxu0 %v7052_v41  ;;  %5577 = vmatpush1.bf16.msra.mxu1 %v7055_v44  ;;  %v7109_v41 = vld [vmem:[#allocation21 + $0x4e8] ss:$24 sps:$4 sm:$0xff]   ;;  %v7114_v44 = vld [vmem:[#allocation21 + $0x694] ss:$24 sps:$4 sm:$0xff]  }
 0x512   :  { %5430 = vmatprep.subr.bf16.mxu0 %v7060_v45  ;;  %5578 = vmatprep.subr.bf16.mxu1 %v7063_v46  ;;  %v7117_v45 = vld [vmem:[#allocation21 + $0x51c] ss:$24 sps:$4 sm:$0xff]   ;;  %v7112_v46 = vld [vmem:[#allocation21 + $0x690] ss:$24 sps:$4 sm:$0xff]  }
 0x515   :  { %5431 = vmatpush1.bf16.msra.mxu0 %v7058_v48  ;;  %5579 = vmatpush1.bf16.msra.mxu1 %v7061_v49  ;;  %v7115_v48 = vld [vmem:[#allocation21 + $0x518] ss:$24 sps:$4 sm:$0xff]   ;;  %v7120_v49 = vld [vmem:[#allocation21 + $0x6c4] ss:$24 sps:$4 sm:$0xff]  }
 0x516   :  { %5432 = vmatprep.subr.bf16.mxu0 %v7066_v50  ;;  %5580 = vmatprep.subr.bf16.mxu1 %v7069_v51  ;;  %v7123_v50 = vld [vmem:[#allocation21 + $0x54c] ss:$24 sps:$4 sm:$0xff]   ;;  %v7118_v51 = vld [vmem:[#allocation21 + $0x6c0] ss:$24 sps:$4 sm:$0xff]  }
 0x519   :  { %5433 = vmatpush1.bf16.msra.mxu0 %v7064_v52  ;;  %5581 = vmatpush1.bf16.msra.mxu1 %v7067_v53  ;;  %v7121_v52 = vld [vmem:[#allocation21 + $0x548] ss:$24 sps:$4 sm:$0xff]   ;;  %v7126_v53 = vld [vmem:[#allocation21 + $0x6f4] ss:$24 sps:$4 sm:$0xff]  }
 0x51a   :  { %5434 = vmatprep.subr.bf16.mxu0 %v7072_v54  ;;  %5582 = vmatprep.subr.bf16.mxu1 %v7075_v55  ;;  %v7129_v54 = vld [vmem:[#allocation21 + $0x57c] ss:$24 sps:$4 sm:$0xff]   ;;  %v7124_v55 = vld [vmem:[#allocation21 + $0x6f0] ss:$24 sps:$4 sm:$0xff]  }
 0x51d   :  { %5435 = vmatpush1.bf16.msra.mxu0 %v7070_v38  ;;  %5583 = vmatpush1.bf16.msra.mxu1 %v7073_v12  ;;  %v7127_v38 = vld [vmem:[#allocation21 + $0x578] ss:$24 sps:$4 sm:$0xff]   ;;  %v7132_v12 = vld [vmem:[#allocation21 + $0x724] ss:$24 sps:$4 sm:$0xff]  }
 0x51e   :  { %v2762_v3 = vpop.f32.mrb[16].mxu1  ;;  %5436 = vmatprep.subr.bf16.mxu0 %v7078_v56  ;;  %5584 = vmatprep.subr.bf16.mxu1 %v7081_v16  ;;  %v7135_v56 = vld [vmem:[#allocation21 + $0x5ac] ss:$24 sps:$4 sm:$0xff]   ;;  %v7130_v16 = vld [vmem:[#allocation21 + $0x720] ss:$24 sps:$4 sm:$0xff]  }
 0x51f   :  { %v2977_v61 = vmul.f32 %v2946_v42, %v2762_v3  ;;  %v2764_v62 = vpop.f32.mrb[17].mxu1  ;;  %v7133_v42 = vld [vmem:[#allocation21 + $0x5a8] ss:$24 sps:$4 sm:$0xff]   ;;  %v7144_v3 = vld [vmem:[#allocation21 + $0x784] ss:$24 sps:$4 sm:$0xff]  }
 0x520   :  { %v2978_v63 = vmul.f32 %v2950_v18, %v2764_v62  ;;  %v2766_v0 = vpop.f32.mrb[18].mxu1  ;;  %v7138_v18 = vld [vmem:[#allocation21 + $0x754] ss:$24 sps:$4 sm:$0xff]  }
 0x521   :  { %v3027_v1 = vadd.f32 %v2996_v43, %v2977_v61  ;;  %5437 = vmatpush1.bf16.msra.mxu0 %v7076_v47  ;;  %5585 = vmatpush1.bf16.msra.mxu1 %v7079_v57  ;;  %v2767_v2 = vpop.f32.mrb[19].mxu1  ;;  %v7141_v43 = vld [vmem:[#allocation21 + $0x5dc] ss:$24 sps:$4 sm:$0xff]   ;;  %v7136_v47 = vld [vmem:[#allocation21 + $0x750] ss:$24 sps:$4 sm:$0xff]  }
 0x522   :  { %v3028_v7 = vadd.f32 %v3000_v59, %v2978_v63  ;;  %5438 = vmatprep.subr.bf16.mxu0 %v7084_v60  ;;  %5586 = vmatprep.subr.bf16.mxu1 %v7087_v19  ;;  %v7139_v57 = vld [vmem:[#allocation21 + $0x5d8] ss:$24 sps:$4 sm:$0xff]   ;;  %v7147_v59 = vld [vmem:[#allocation21 + $0x60c] ss:$24 sps:$4 sm:$0xff]   ;;  %v7145_v19 = vld [vmem:[#allocation21 + $0x608] ss:$24 sps:$4 sm:$0xff]  }
 0x523   :  { %v3043_v20 = vmul.f32 0.2, %v3027_v1  ;;  %vm3035_vm10 = vcmp.ge.f32.partialorder %v3027_v1, 0.0  ;;  %v7142_v60 = vld [vmem:[#allocation21 + $0x780] ss:$24 sps:$4 sm:$0xff]  }
 0x524   :  { %v3044_v21 = vmul.f32 0.2, %v3028_v7  ;;  %vm3036_vm11 = vcmp.ge.f32.partialorder %v3028_v7, 0.0  ;;  %v7150_v61 = vld [vmem:[#allocation21 + $0x7b4] ss:$24 sps:$4 sm:$0xff]  }
 0x525   :  { %5439 = vmatpush1.bf16.msra.mxu0 %v7082_v4  ;;  %5587 = vmatpush1.bf16.msra.mxu1 %v7085_v6  ;;  %v3051_v25 = vsel %vm3035_vm10, %v3027_v1, %v3043_v20  ;;  %v7153_v62 = vld [vmem:[#allocation21 + $0x63c] ss:$24 sps:$4 sm:$0xff]   ;;  %v7148_v63 = vld [vmem:[#allocation21 + $0x7b0] ss:$24 sps:$4 sm:$0xff]   ;;  %v7159_v2 = vld [vmem:[#allocation21 + $0x66c] ss:$24 sps:$4 sm:$0xff]  }
 0x526   :  { %5440 = vmatprep.subr.bf16.mxu0 %v7090_v10  ;;  %5588 = vmatprep.subr.bf16.mxu1 %v7093_v13  ;;  %v3052_v24 = vsel %vm3036_vm11, %v3028_v7, %v3044_v21  ;;  %v8287_v17 = vpack.c.bf16 %v3051_v25, %v3051_v25  ;;  %v7151_v0 = vld [vmem:[#allocation21 + $0x638] ss:$24 sps:$4 sm:$0xff]   ;;  %v7156_v1 = vld [vmem:[#allocation21 + $0x7e4] ss:$24 sps:$4 sm:$0xff]   ;;  %v7157_v6 = vld [vmem:[#allocation21 + $0x668] ss:$24 sps:$4 sm:$0xff]  }
 0x527   :  { %v8285_v26 = vpack.c.bf16 %v3052_v24, %v3052_v24  ;;  %v7154_v4 = vld [vmem:[#allocation21 + $0x7e0] ss:$24 sps:$4 sm:$0xff]   ;;  %v7162_v7 = vld [vmem:[#allocation21 + $0x814] ss:$24 sps:$4 sm:$0xff]   ;;  %v7160_v13 = vld [vmem:[#allocation21 + $0x810] ss:$24 sps:$4 sm:$0xff]  }
 0x528   :  { %v7165_v10 = vld [vmem:[#allocation21 + $0x69c] ss:$24 sps:$4 sm:$0xff]   ;;  %v7163_v20 = vld [vmem:[#allocation21 + $0x698] ss:$24 sps:$4 sm:$0xff]   ;;  %v8297_v24 = vsub.s32 5, %v8163_v8 }
 0x529   :  { %5441 = vmatpush1.bf16.msra.mxu0 %v7088_v22  ;;  %5589 = vmatpush1.bf16.msra.mxu1 %v7091_v23  ;;  %v7168_v21 = vld [vmem:[#allocation21 + $0x844] ss:$24 sps:$4 sm:$0xff]   ;;  %v8294_v23 = vsub.s32 4, %v8163_v8  ;;  %v7166_v25 = vld [vmem:[#allocation21 + $0x840] ss:$24 sps:$4 sm:$0xff]  }
 0x52a   :  { %5442 = vmatprep.mubr.bf16.mxu0 %v8285_v26  ;;  %5606 = vmatprep.mubr.bf16.mxu1 %v8285_v26  ;;  %v7171_v22 = vld [vmem:[#allocation21 + $0x6cc] ss:$24 sps:$4 sm:$0xff]  }
 0x52b   :  { %5451 = vmatprep.subr.bf16.mxu0 %v7096_v27  ;;  %5590 = vmatprep.subr.bf16.mxu1 %v7099_v28  ;;  %v7169_v27 = vld [vmem:[#allocation21 + $0x6c8] ss:$24 sps:$4 sm:$0xff]   ;;  %v7174_v28 = vld [vmem:[#allocation21 + $0x874] ss:$24 sps:$4 sm:$0xff]  }
 0x52c   :  { %5443 = vmatmul.mubr.bf16.vlgmr.msra.gmra.mrb[12].mxu0 %v8287_v17 }
 0x52d   :  { %5452 = vmatpush1.bf16.msra.mxu0 %v7094_v14  ;;  %5591 = vmatpush1.bf16.msra.mxu1 %v7097_v15  ;;  %v7177_v14 = vld [vmem:[#allocation21 + $0x6fc] ss:$24 sps:$4 sm:$0xff]   ;;  %v2954_v15 = vrot.slane %v8255_v30, %v8294_v23 }
 0x52e   :  { %5453 = vmatprep.subr.bf16.mxu0 %v7102_v29  ;;  %5592 = vmatprep.subr.bf16.mxu1 %v7105_v31  ;;  %v2958_v29 = vrot.slane %v8255_v30, %v8297_v24  ;;  %v3004_v31 = vrot.slane %v8257_v33, %v8294_v23 }
 0x531   :  { %5454 = vmatpush1.bf16.msra.mxu0 %v7100_v5  ;;  %5593 = vmatpush1.bf16.msra.mxu1 %v7103_v35  ;;  %v7172_v5 = vld [vmem:[#allocation21 + $0x870] ss:$24 sps:$4 sm:$0xff]  }
 0x532   :  { %5455 = vmatprep.subr.bf16.mxu0 %v7108_v36  ;;  %5594 = vmatprep.subr.bf16.mxu1 %v7111_v37  ;;  %v7175_v35 = vld [vmem:[#allocation21 + $0x6f8] ss:$24 sps:$4 sm:$0xff]   ;;  %v3008_v37 = vrot.slane %v8257_v33, %v8297_v24 }
 0x535   :  { %5456 = vmatpush1.bf16.msra.mxu0 %v7106_v40  ;;  %5595 = vmatpush1.bf16.msra.mxu1 %v7109_v41  ;;  %v7180_v40 = vld [vmem:[#allocation21 + $0x8a4] ss:$24 sps:$4 sm:$0xff]  }
 0x536   :  { %5457 = vmatprep.subr.bf16.mxu0 %v7114_v44  ;;  %5596 = vmatprep.subr.bf16.mxu1 %v7117_v45  ;;  %v7183_v41 = vld [vmem:[#allocation21 + $0x72c] ss:$24 sps:$4 sm:$0xff]  }
 0x539   :  { %5458 = vmatpush1.bf16.msra.mxu0 %v7112_v46  ;;  %5597 = vmatpush1.bf16.msra.mxu1 %v7115_v48 }
 0x53a   :  { %5459 = vmatprep.subr.bf16.mxu0 %v7120_v49  ;;  %5598 = vmatprep.subr.bf16.mxu1 %v7123_v50 }
 0x53d   :  { %5460 = vmatpush1.bf16.msra.mxu0 %v7118_v51  ;;  %5599 = vmatpush1.bf16.msra.mxu1 %v7121_v52  ;;  %v7178_v51 = vld [vmem:[#allocation21 + $0x8a0] ss:$24 sps:$4 sm:$0xff]  }
 0x53e   :  { %5461 = vmatprep.subr.bf16.mxu0 %v7126_v53  ;;  %5600 = vmatprep.subr.bf16.mxu1 %v7129_v54  ;;  %v7181_v52 = vld [vmem:[#allocation21 + $0x728] ss:$24 sps:$4 sm:$0xff]   ;;  %v7186_v54 = vld [vmem:[#allocation21 + $0x8d4] ss:$24 sps:$4 sm:$0xff]  }
 0x541   :  { %5462 = vmatpush1.bf16.msra.mxu0 %v7124_v55  ;;  %5601 = vmatpush1.bf16.msra.mxu1 %v7127_v38  ;;  %v7189_v55 = vld [vmem:[#allocation21 + $0x75c] ss:$24 sps:$4 sm:$0xff]  }
 0x542   :  { %5463 = vmatprep.subr.bf16.mxu0 %v7132_v12  ;;  %5602 = vmatprep.subr.bf16.mxu1 %v7135_v56  ;;  %v7184_v56 = vld [vmem:[#allocation21 + $0x8d0] ss:$24 sps:$4 sm:$0xff]  }
 0x545   :  { %5464 = vmatpush1.bf16.msra.mxu0 %v7130_v16  ;;  %5603 = vmatpush1.bf16.msra.mxu1 %v7133_v42  ;;  %v7187_v16 = vld [vmem:[#allocation21 + $0x758] ss:$24 sps:$4 sm:$0xff]  }
 0x546   :  { %5465 = vmatprep.subr.bf16.mxu0 %v7138_v18  ;;  %5604 = vmatprep.subr.bf16.mxu1 %v7141_v43 }
 0x549   :  { %5466 = vmatpush1.bf16.msra.mxu0 %v7136_v47  ;;  %5605 = vmatpush1.bf16.msra.mxu1 %v7139_v57  ;;  %v7192_v47 = vld [vmem:[#allocation21 + $0x904] ss:$24 sps:$4 sm:$0xff]  }
 0x54a   :  { %5467 = vmatprep.subr.bf16.mxu0 %v7144_v3  ;;  %5615 = vmatprep.subr.bf16.mxu1 %v7147_v59  ;;  %v7195_v57 = vld [vmem:[#allocation21 + $0x78c] ss:$24 sps:$4 sm:$0xff]   ;;  %v7190_v3 = vld [vmem:[#allocation21 + $0x900] ss:$24 sps:$4 sm:$0xff]  }
 0x54c   :  { %5607 = vmatmul.mubr.bf16.vlgmr.msra.gmra.mrb[24].mxu1 %v8287_v17 }
 0x54d   :  { %5468 = vmatpush1.bf16.msra.mxu0 %v7142_v60  ;;  %5616 = vmatpush1.bf16.msra.mxu1 %v7145_v19  ;;  %v7193_v60 = vld [vmem:[#allocation21 + $0x788] ss:$24 sps:$4 sm:$0xff]   ;;  %v7198_v19 = vld [vmem:[#allocation21 + $0x934] ss:$24 sps:$4 sm:$0xff]  }
 0x54e   :  { %5469 = vmatprep.subr.bf16.mxu0 %v7150_v61  ;;  %5617 = vmatprep.subr.bf16.mxu1 %v7153_v62  ;;  %v7201_v61 = vld [vmem:[#allocation21 + $0x7bc] ss:$24 sps:$4 sm:$0xff]   ;;  %v7196_v62 = vld [vmem:[#allocation21 + $0x930] ss:$24 sps:$4 sm:$0xff]  }
 0x551   :  { %5470 = vmatpush1.bf16.msra.mxu0 %v7148_v63  ;;  %5618 = vmatpush1.bf16.msra.mxu1 %v7151_v0  ;;  %v7199_v63 = vld [vmem:[#allocation21 + $0x7b8] ss:$24 sps:$4 sm:$0xff]   ;;  %v7204_v0 = vld [vmem:[#allocation21 + $0x964] ss:$24 sps:$4 sm:$0xff]  }
 0x552   :  { %5471 = vmatprep.subr.bf16.mxu0 %v7156_v1  ;;  %5619 = vmatprep.subr.bf16.mxu1 %v7159_v2  ;;  %v7207_v1 = vld [vmem:[#allocation21 + $0x7ec] ss:$24 sps:$4 sm:$0xff]   ;;  %v7202_v2 = vld [vmem:[#allocation21 + $0x960] ss:$24 sps:$4 sm:$0xff]  }
 0x555   :  { %5472 = vmatpush1.bf16.msra.mxu0 %v7154_v4  ;;  %5620 = vmatpush1.bf16.msra.mxu1 %v7157_v6  ;;  %v7205_v4 = vld [vmem:[#allocation21 + $0x7e8] ss:$24 sps:$4 sm:$0xff]   ;;  %v7210_v6 = vld [vmem:[#allocation21 + $0x994] ss:$24 sps:$4 sm:$0xff]  }
 0x556   :  { %5473 = vmatprep.subr.bf16.mxu0 %v7162_v7  ;;  %5621 = vmatprep.subr.bf16.mxu1 %v7165_v10  ;;  %v7213_v7 = vld [vmem:[#allocation21 + $0x81c] ss:$24 sps:$4 sm:$0xff]   ;;  %v7208_v10 = vld [vmem:[#allocation21 + $0x990] ss:$24 sps:$4 sm:$0xff]  }
 0x559   :  { %5474 = vmatpush1.bf16.msra.mxu0 %v7160_v13  ;;  %5622 = vmatpush1.bf16.msra.mxu1 %v7163_v20  ;;  %v7211_v13 = vld [vmem:[#allocation21 + $0x818] ss:$24 sps:$4 sm:$0xff]   ;;  %v7216_v20 = vld [vmem:[#allocation21 + $0x9c4] ss:$24 sps:$4 sm:$0xff]  }
 0x55a   :  { %5475 = vmatprep.subr.bf16.mxu0 %v7168_v21  ;;  %5623 = vmatprep.subr.bf16.mxu1 %v7171_v22  ;;  %v7219_v21 = vld [vmem:[#allocation21 + $0x84c] ss:$24 sps:$4 sm:$0xff]   ;;  %v7214_v22 = vld [vmem:[#allocation21 + $0x9c0] ss:$24 sps:$4 sm:$0xff]  }
 0x55d   :  { %5476 = vmatpush1.bf16.msra.mxu0 %v7166_v25  ;;  %5624 = vmatpush1.bf16.msra.mxu1 %v7169_v27  ;;  %v7217_v25 = vld [vmem:[#allocation21 + $0x848] ss:$24 sps:$4 sm:$0xff]   ;;  %v7222_v27 = vld [vmem:[#allocation21 + $0x9f4] ss:$24 sps:$4 sm:$0xff]  }
 0x55e   :  { %v2844_v36 = vpop.f32.mrb[8].mxu0  ;;  %5477 = vmatprep.subr.bf16.mxu0 %v7174_v28  ;;  %5625 = vmatprep.subr.bf16.mxu1 %v7177_v14  ;;  %v7225_v28 = vld [vmem:[#allocation21 + $0x87c] ss:$24 sps:$4 sm:$0xff]   ;;  %v7220_v14 = vld [vmem:[#allocation21 + $0x9f0] ss:$24 sps:$4 sm:$0xff]  }
 0x55f   :  { %v2979_v44 = vmul.f32 %v2954_v15, %v2844_v36  ;;  %v2846_v45 = vpop.f32.mrb[9].mxu0  ;;  %v7223_v15 = vld [vmem:[#allocation21 + $0x878] ss:$24 sps:$4 sm:$0xff]   ;;  %v7234_v36 = vld [vmem:[#allocation21 + $0xa54] ss:$24 sps:$4 sm:$0xff]  }
 0x560   :  { %v2980_v46 = vmul.f32 %v2958_v29, %v2846_v45  ;;  %v2848_v48 = vpop.f32.mrb[10].mxu0  ;;  %v7228_v29 = vld [vmem:[#allocation21 + $0xa24] ss:$24 sps:$4 sm:$0xff]  }
 0x561   :  { %v3029_v49 = vadd.f32 %v3004_v31, %v2979_v44  ;;  %v2849_v50 = vpop.f32.mrb[11].mxu0  ;;  %5478 = vmatpush1.bf16.msra.mxu0 %v7172_v5  ;;  %5626 = vmatpush1.bf16.msra.mxu1 %v7175_v35  ;;  %v7231_v31 = vld [vmem:[#allocation21 + $0x8ac] ss:$24 sps:$4 sm:$0xff]   ;;  %v7226_v5 = vld [vmem:[#allocation21 + $0xa20] ss:$24 sps:$4 sm:$0xff]  }
 0x562   :  { %v3030_v53 = vadd.f32 %v3008_v37, %v2980_v46  ;;  %5479 = vmatprep.subr.bf16.mxu0 %v7180_v40  ;;  %5627 = vmatprep.subr.bf16.mxu1 %v7183_v41  ;;  %v7229_v35 = vld [vmem:[#allocation21 + $0x8a8] ss:$24 sps:$4 sm:$0xff]   ;;  %v7237_v37 = vld [vmem:[#allocation21 + $0x8dc] ss:$24 sps:$4 sm:$0xff]   ;;  %v7235_v41 = vld [vmem:[#allocation21 + $0x8d8] ss:$24 sps:$4 sm:$0xff]  }
 0x563   :  { %v3045_v38 = vmul.f32 0.2, %v3029_v49  ;;  %vm3037_vm12 = vcmp.ge.f32.partialorder %v3029_v49, 0.0  ;;  %v7232_v40 = vld [vmem:[#allocation21 + $0xa50] ss:$24 sps:$4 sm:$0xff]  }
 0x564   :  { %v3046_v12 = vmul.f32 0.2, %v3030_v53  ;;  %vm3038_vm13 = vcmp.ge.f32.partialorder %v3030_v53, 0.0  ;;  %v7240_v44 = vld [vmem:[#allocation21 + $0xa84] ss:$24 sps:$4 sm:$0xff]  }
 0x565   :  { %5480 = vmatpush1.bf16.msra.mxu0 %v7178_v51  ;;  %5628 = vmatpush1.bf16.msra.mxu1 %v7181_v52  ;;  %v3053_v18 = vsel %vm3037_vm12, %v3029_v49, %v3045_v38  ;;  %v7243_v45 = vld [vmem:[#allocation21 + $0x90c] ss:$24 sps:$4 sm:$0xff]   ;;  %v7238_v46 = vld [vmem:[#allocation21 + $0xa80] ss:$24 sps:$4 sm:$0xff]   ;;  %v7249_v50 = vld [vmem:[#allocation21 + $0x93c] ss:$24 sps:$4 sm:$0xff]  }
 0x566   :  { %5481 = vmatprep.subr.bf16.mxu0 %v7186_v54  ;;  %5629 = vmatprep.subr.bf16.mxu1 %v7189_v55  ;;  %v3054_v42 = vsel %vm3038_vm13, %v3030_v53, %v3046_v12  ;;  %v8310_v59 = vpack.c.bf16 %v3053_v18, %v3053_v18  ;;  %v7241_v48 = vld [vmem:[#allocation21 + $0x908] ss:$24 sps:$4 sm:$0xff]   ;;  %v7246_v49 = vld [vmem:[#allocation21 + $0xab4] ss:$24 sps:$4 sm:$0xff]   ;;  %v7247_v52 = vld [vmem:[#allocation21 + $0x938] ss:$24 sps:$4 sm:$0xff]  }
 0x567   :  { %v8307_v43 = vpack.c.bf16 %v3054_v42, %v3054_v42  ;;  %v7244_v51 = vld [vmem:[#allocation21 + $0xab0] ss:$24 sps:$4 sm:$0xff]   ;;  %v7252_v53 = vld [vmem:[#allocation21 + $0xae4] ss:$24 sps:$4 sm:$0xff]   ;;  %v7250_v55 = vld [vmem:[#allocation21 + $0xae0] ss:$24 sps:$4 sm:$0xff]  }
 0x568   :  { %v7255_v54 = vld [vmem:[#allocation21 + $0x96c] ss:$24 sps:$4 sm:$0xff]   ;;  %v7253_v38 = vld [vmem:[#allocation21 + $0x968] ss:$24 sps:$4 sm:$0xff]   ;;  %v7259_v42 = vld [vmem:[#allocation21 + $0x998] ss:$24 sps:$4 sm:$0xff]  }
 0x569   :  { %5482 = vmatpush1.bf16.msra.mxu0 %v7184_v56  ;;  %5483 = vmatprep.mubr.bf16.mxu0 %v8307_v43  ;;  %v7258_v12 = vld [vmem:[#allocation21 + $0xb14] ss:$24 sps:$4 sm:$0xff]   ;;  %v7264_v18 = vld [vmem:[#allocation21 + $0xb44] ss:$24 sps:$4 sm:$0xff]  }
 0x56a   :  { %5630 = vmatpush1.bf16.msra.mxu1 %v7187_v16  ;;  %5647 = vmatprep.mubr.bf16.mxu1 %v8307_v43  ;;  %v7261_v56 = vld [vmem:[#allocation21 + $0x99c] ss:$24 sps:$4 sm:$0xff]   ;;  %v7256_v16 = vld [vmem:[#allocation21 + $0xb10] ss:$24 sps:$4 sm:$0xff]  }
 0x56b   :  { %5492 = vmatprep.subr.bf16.mxu0 %v7192_v47  ;;  %5631 = vmatprep.subr.bf16.mxu1 %v7195_v57  ;;  %v7267_v47 = vld [vmem:[#allocation21 + $0x9cc] ss:$24 sps:$4 sm:$0xff]   ;;  %v2961_v57 = vsub.s32 6, %v8163_v8 }
 0x56c   :  { %5484 = vmatmul.mubr.bf16.vlgmr.msra.gmra.mrb[12].mxu0 %v8310_v59 }
 0x56d   :  { %5493 = vmatpush1.bf16.msra.mxu0 %v7190_v3  ;;  %v7262_v3 = vld [vmem:[#allocation21 + $0xb40] ss:$24 sps:$4 sm:$0xff]  }
 0x56e   :  { %5632 = vmatpush1.bf16.msra.mxu1 %v7193_v60  ;;  %5494 = vmatprep.subr.bf16.mxu0 %v7198_v19  ;;  %v2965_v60 = vsub.s32 7, %v8163_v8  ;;  %v7265_v19 = vld [vmem:[#allocation21 + $0x9c8] ss:$24 sps:$4 sm:$0xff]  }
 0x56f   :  { %5633 = vmatprep.subr.bf16.mxu1 %v7201_v61  ;;  %v7270_v61 = vld [vmem:[#allocation21 + $0xb74] ss:$24 sps:$4 sm:$0xff]  }
 0x570   :  { %v3016_v8 = vrot.slane %v8257_v33, %v2965_v60 }
 0x571   :  { %5495 = vmatpush1.bf16.msra.mxu0 %v7196_v62  ;;  %v7273_v62 = vld [vmem:[#allocation21 + $0x9fc] ss:$24 sps:$4 sm:$0xff]  }
 0x572   :  { %5634 = vmatpush1.bf16.msra.mxu1 %v7199_v63  ;;  %5496 = vmatprep.subr.bf16.mxu0 %v7204_v0  ;;  %v2962_v63 = vrot.slane %v8255_v30, %v2961_v57  ;;  %v2966_v0 = vrot.slane %v8255_v30, %v2965_v60  ;;  %v7318_v60 = vld [vmem:[#allocation21 + $0xb7c] ss:$24 sps:$4 sm:$0xff]  }
 0x573   :  { %5635 = vmatprep.subr.bf16.mxu1 %v7207_v1  ;;  %v7268_v1 = vld [vmem:[#allocation21 + $0xb70] ss:$24 sps:$4 sm:$0xff]  }
 0x575   :  { %5497 = vmatpush1.bf16.msra.mxu0 %v7202_v2  ;;  %v3012_v2 = vrot.slane %v8257_v33, %v2961_v57  ;;  %v7310_v57 = vld [vmem:[#allocation21 + $0xb48] ss:$24 sps:$4 sm:$0xff]  }
 0x576   :  { %5636 = vmatpush1.bf16.msra.mxu1 %v7205_v4  ;;  %5498 = vmatprep.subr.bf16.mxu0 %v7210_v6  ;;  %v7271_v4 = vld [vmem:[#allocation21 + $0x9f8] ss:$24 sps:$4 sm:$0xff]   ;;  %v7276_v6 = vld [vmem:[#allocation21 + $0xba4] ss:$24 sps:$4 sm:$0xff]  }
 0x577   :  { %5637 = vmatprep.subr.bf16.mxu1 %v7213_v7 }
 0x579   :  { %5499 = vmatpush1.bf16.msra.mxu0 %v7208_v10  ;;  %v7279_v10 = vld [vmem:[#allocation21 + $0xa2c] ss:$24 sps:$4 sm:$0xff]  }
 0x57a   :  { %5638 = vmatpush1.bf16.msra.mxu1 %v7211_v13  ;;  %5500 = vmatprep.subr.bf16.mxu0 %v7216_v20 }
 0x57b   :  { %5639 = vmatprep.subr.bf16.mxu1 %v7219_v21 }
 0x57d   :  { %5501 = vmatpush1.bf16.msra.mxu0 %v7214_v22 }
 0x57e   :  { %5640 = vmatpush1.bf16.msra.mxu1 %v7217_v25  ;;  %5502 = vmatprep.subr.bf16.mxu0 %v7222_v27  ;;  %v7274_v25 = vld [vmem:[#allocation21 + $0xba0] ss:$24 sps:$4 sm:$0xff]  }
 0x57f   :  { %5641 = vmatprep.subr.bf16.mxu1 %v7225_v28  ;;  %v7277_v28 = vld [vmem:[#allocation21 + $0xa28] ss:$24 sps:$4 sm:$0xff]  }
 0x581   :  { %5503 = vmatpush1.bf16.msra.mxu0 %v7220_v14  ;;  %v7282_v14 = vld [vmem:[#allocation21 + $0xbd4] ss:$24 sps:$4 sm:$0xff]  }
 0x582   :  { %5642 = vmatpush1.bf16.msra.mxu1 %v7223_v15  ;;  %5504 = vmatprep.subr.bf16.mxu0 %v7228_v29  ;;  %v7285_v29 = vld [vmem:[#allocation21 + $0xa5c] ss:$24 sps:$4 sm:$0xff]  }
 0x583   :  { %5643 = vmatprep.subr.bf16.mxu1 %v7231_v31 }
 0x585   :  { %5505 = vmatpush1.bf16.msra.mxu0 %v7226_v5  ;;  %v7280_v5 = vld [vmem:[#allocation21 + $0xbd0] ss:$24 sps:$4 sm:$0xff]  }
 0x586   :  { %5644 = vmatpush1.bf16.msra.mxu1 %v7229_v35  ;;  %5506 = vmatprep.subr.bf16.mxu0 %v7234_v36  ;;  %v7283_v35 = vld [vmem:[#allocation21 + $0xa58] ss:$24 sps:$4 sm:$0xff]  }
 0x587   :  { %5645 = vmatprep.subr.bf16.mxu1 %v7237_v37 }
 0x589   :  { %5507 = vmatpush1.bf16.msra.mxu0 %v7232_v40  ;;  %v7288_v40 = vld [vmem:[#allocation21 + $0xa8c] ss:$24 sps:$4 sm:$0xff]  }
 0x58a   :  { %5646 = vmatpush1.bf16.msra.mxu1 %v7235_v41  ;;  %5508 = vmatprep.subr.bf16.mxu0 %v7240_v44  ;;  %v7291_v44 = vld [vmem:[#allocation21 + $0x14] ss:$24 sps:$4 sm:$0xff]  }
 0x58b   :  { %5656 = vmatprep.subr.bf16.mxu1 %v7243_v45  ;;  %v7289_v45 = vld [vmem:[#allocation21 + $0x10] ss:$24 sps:$4 sm:$0xff]  }
 0x58d   :  { %5648 = vmatmul.mubr.bf16.vlgmr.msra.gmra.mrb[24].mxu1 %v8310_v59  ;;  %5509 = vmatpush1.bf16.msra.mxu0 %v7238_v46 }
 0x58e   :  { %5657 = vmatpush1.bf16.msra.mxu1 %v7241_v48  ;;  %5510 = vmatprep.subr.bf16.mxu0 %v7246_v49  ;;  %v7286_v48 = vld [vmem:[#allocation21 + $0xa88] ss:$24 sps:$4 sm:$0xff]   ;;  %v7297_v49 = vld [vmem:[#allocation21 + $0x44] ss:$24 sps:$4 sm:$0xff]  }
 0x58f   :  { %5658 = vmatprep.subr.bf16.mxu1 %v7249_v50  ;;  %v7294_v50 = vld [vmem:[#allocation21 + $0xabc] ss:$24 sps:$4 sm:$0xff]  }
 0x591   :  { %5511 = vmatpush1.bf16.msra.mxu0 %v7244_v51  ;;  %v7295_v51 = vld [vmem:[#allocation21 + $0x40] ss:$24 sps:$4 sm:$0xff]  }
 0x592   :  { %5659 = vmatpush1.bf16.msra.mxu1 %v7247_v52  ;;  %5512 = vmatprep.subr.bf16.mxu0 %v7252_v53  ;;  %v7292_v52 = vld [vmem:[#allocation21 + $0xab8] ss:$24 sps:$4 sm:$0xff]   ;;  %v7303_v53 = vld [vmem:[#allocation21 + $0x74] ss:$24 sps:$4 sm:$0xff]  }
 0x593   :  { %5660 = vmatprep.subr.bf16.mxu1 %v7255_v54  ;;  %v7300_v54 = vld [vmem:[#allocation21 + $0xaec] ss:$24 sps:$4 sm:$0xff]  }
 0x595   :  { %5513 = vmatpush1.bf16.msra.mxu0 %v7250_v55  ;;  %v7301_v55 = vld [vmem:[#allocation21 + $0x70] ss:$24 sps:$4 sm:$0xff]  }
 0x596   :  { %5661 = vmatpush1.bf16.msra.mxu1 %v7253_v38  ;;  %5514 = vmatprep.subr.bf16.mxu0 %v7258_v12  ;;  %v7298_v38 = vld [vmem:[#allocation21 + $0xae8] ss:$24 sps:$4 sm:$0xff]   ;;  %v7309_v12 = vld [vmem:[#allocation21 + $0xa4] ss:$24 sps:$4 sm:$0xff]  }
 0x597   :  { %5662 = vmatprep.subr.bf16.mxu1 %v7261_v56  ;;  %v7306_v56 = vld [vmem:[#allocation21 + $0xb1c] ss:$24 sps:$4 sm:$0xff]  }
 0x599   :  { %5515 = vmatpush1.bf16.msra.mxu0 %v7256_v16  ;;  %v7307_v16 = vld [vmem:[#allocation21 + $0xa0] ss:$24 sps:$4 sm:$0xff]  }
 0x59a   :  { %5663 = vmatpush1.bf16.msra.mxu1 %v7259_v42  ;;  %5516 = vmatprep.subr.bf16.mxu0 %v7264_v18  ;;  %v7304_v42 = vld [vmem:[#allocation21 + $0xb18] ss:$24 sps:$4 sm:$0xff]   ;;  %v7312_v18 = vld [vmem:[#allocation21 + $0xb4c] ss:$24 sps:$4 sm:$0xff]  }
 0x59b   :  { %5664 = vmatprep.subr.bf16.mxu1 %v7267_v47  ;;  %v7313_v47 = vld [vmem:[#allocation21 + $0xd0] ss:$24 sps:$4 sm:$0xff]  }
 0x59d   :  { %5517 = vmatpush1.bf16.msra.mxu0 %v7262_v3  ;;  %v7321_v3 = vld [vmem:[#allocation21 + $0x104] ss:$24 sps:$4 sm:$0xff]  }
 0x59e   :  { %5665 = vmatpush1.bf16.msra.mxu1 %v7265_v19  ;;  %5518 = vmatprep.subr.bf16.mxu0 %v7270_v61  ;;  %v7319_v19 = vld [vmem:[#allocation21 + $0x100] ss:$24 sps:$4 sm:$0xff]  }
 0x59f   :  { %v2926_v7 = vpop.f32.mrb[20].mxu1  ;;  %5666 = vmatprep.subr.bf16.mxu1 %v7273_v62  ;;  %v7316_v61 = vld [vmem:[#allocation21 + $0xb78] ss:$24 sps:$4 sm:$0xff]   ;;  %v7327_v62 = vld [vmem:[#allocation21 + $0x134] ss:$24 sps:$4 sm:$0xff]  }
 0x5a0   :  { %v2981_v13 = vmul.f32 %v2962_v63, %v2926_v7  ;;  %v2928_v20 = vpop.f32.mrb[21].mxu1  ;;  %v7324_v63 = vld [vmem:[#allocation21 + $0xbac] ss:$24 sps:$4 sm:$0xff]   ;;  %v7328_v7 = vld [vmem:[#allocation21 + $0xbd8] ss:$24 sps:$4 sm:$0xff]  }
 0x5a1   :  { %v2982_v21 = vmul.f32 %v2966_v0, %v2928_v20  ;;  %v2930_v22 = vpop.f32.mrb[22].mxu1  ;;  %5519 = vmatpush1.bf16.msra.mxu0 %v7268_v1  ;;  %v7325_v0 = vld [vmem:[#allocation21 + $0x130] ss:$24 sps:$4 sm:$0xff]   ;;  %v7337_v20 = vld [vmem:[#allocation21 + $0x1c0] ss:$24 sps:$4 sm:$0xff]  }
 0x5a2   :  { %v3031_v27 = vadd.f32 %v3012_v2, %v2981_v13  ;;  %5667 = vmatpush1.bf16.msra.mxu1 %v7271_v4  ;;  %v2931_v30 = vpop.f32.mrb[23].mxu1  ;;  %5520 = vmatprep.subr.bf16.mxu0 %v7276_v6  ;;  %v7322_v1 = vld [vmem:[#allocation21 + $0xba8] ss:$24 sps:$4 sm:$0xff]   ;;  %v7333_v2 = vld [vmem:[#allocation21 + $0x164] ss:$24 sps:$4 sm:$0xff]  }
 0x5a3   :  { %v3032_v15 = vadd.f32 %v3016_v8, %v2982_v21  ;;  %5668 = vmatprep.subr.bf16.mxu1 %v7279_v10  ;;  %v7330_v4 = vld [vmem:[#allocation21 + $0xbdc] ss:$24 sps:$4 sm:$0xff]   ;;  %v7331_v6 = vld [vmem:[#allocation21 + $0x160] ss:$24 sps:$4 sm:$0xff]   ;;  %v7334_v10 = vld [vmem:[#allocation21 + $0x190] ss:$24 sps:$4 sm:$0xff]  }
 0x5a4   :  { %vm3039_vm14 = vcmp.ge.f32.partialorder %v3031_v27, 0.0  ;;  %v3047_v31 = vmul.f32 0.2, %v3031_v27  ;;  %v7336_v8 = vld [vmem:[#allocation21 + $0x194] ss:$24 sps:$4 sm:$0xff]  }
 0x5a5   :  { %v3048_v33 = vmul.f32 0.2, %v3032_v15  ;;  %5521 = vmatpush1.bf16.msra.mxu0 %v7274_v25  ;;  %vm3040_vm15 = vcmp.ge.f32.partialorder %v3032_v15, 0.0  ;;  %v7339_v13 = vld [vmem:[#allocation21 + $0x1c4] ss:$24 sps:$4 sm:$0xff]  }
 0x5a6   :  { %5669 = vmatpush1.bf16.msra.mxu1 %v7277_v28  ;;  %5522 = vmatprep.subr.bf16.mxu0 %v7282_v14  ;;  %v3055_v36 = vsel %vm3039_vm14, %v3031_v27, %v3047_v31  ;;  %v7342_v21 = vld [vmem:[#allocation21 + $0x1f4] ss:$24 sps:$4 sm:$0xff]   ;;  %v7340_v22 = vld [vmem:[#allocation21 + $0x1f0] ss:$24 sps:$4 sm:$0xff]   ;;  %v7345_v25 = vld [vmem:[#allocation21 + $0x224] ss:$24 sps:$4 sm:$0xff]  }
 0x5a7   :  { %5670 = vmatprep.subr.bf16.mxu1 %v7285_v29  ;;  %v3056_v37 = vsel %vm3040_vm15, %v3032_v15, %v3048_v33  ;;  %v8323_v46 = vpack.c.bf16 %v3055_v36, %v3055_v36  ;;  %v7343_v27 = vld [vmem:[#allocation21 + $0x220] ss:$24 sps:$4 sm:$0xff]   ;;  %v7348_v30 = vld [vmem:[#allocation21 + $0x254] ss:$24 sps:$4 sm:$0xff]   ;;  %v7346_v28 = vld [vmem:[#allocation21 + $0x250] ss:$24 sps:$4 sm:$0xff]  }
 0x5a8   :  { %v8321_v41 = vpack.c.bf16 %v3056_v37, %v3056_v37  ;;  %v7351_v14 = vld [vmem:[#allocation21 + $0x284] ss:$24 sps:$4 sm:$0xff]   ;;  %v7349_v15 = vld [vmem:[#allocation21 + $0x280] ss:$24 sps:$4 sm:$0xff]   ;;  %v7354_v29 = vld [vmem:[#allocation21 + $0x2b4] ss:$24 sps:$4 sm:$0xff]  }
 0x5a9   :  { %5523 = vmatpush1.bf16.msra.mxu0 %v7280_v5  ;;  %v7352_v31 = vld [vmem:[#allocation21 + $0x2b0] ss:$24 sps:$4 sm:$0xff]   ;;  %v7357_v33 = vld [vmem:[#allocation21 + $0x2e4] ss:$24 sps:$4 sm:$0xff]   ;;  %v7355_v5 = vld [vmem:[#allocation21 + $0x2e0] ss:$24 sps:$4 sm:$0xff]  }
 0x5aa   :  { %5671 = vmatpush1.bf16.msra.mxu1 %v7283_v35  ;;  %5524 = vmatprep.mubr.bf16.mxu0 %v8321_v41  ;;  %v7360_v35 = vld [vmem:[#allocation21 + $0x314] ss:$24 sps:$4 sm:$0xff]   ;;  %v7358_v36 = vld [vmem:[#allocation21 + $0x310] ss:$24 sps:$4 sm:$0xff]   ;;  %v7363_v37 = vld [vmem:[#allocation21 + $0x344] ss:$24 sps:$4 sm:$0xff]  }
 0x5ab   :  { %5688 = vmatprep.mubr.bf16.mxu1 %v8321_v41  ;;  %5672 = vmatprep.subr.bf16.mxu1 %v7288_v40  ;;  %v7361_v40 = vld [vmem:[#allocation21 + $0x340] ss:$24 sps:$4 sm:$0xff]  }
 0x5ac   :  { %5525 = vmatmul.mubr.bf16.vlgmr.msra.gmra.mrb[12].mxu0 %v8323_v46  ;;  %5697 = vmatprep.subr.bf16.mxu0 %v7291_v44  ;;  %v7366_v44 = vld [vmem:[#allocation21 + $0x374] ss:$24 sps:$4 sm:$0xff]  }
 0x5ad   :  { %5698 = vmatpush1.bf16.msra.mxu0 %v7289_v45  ;;  %5729 = vmatprep.mubr.bf16.mxu0 %v8269_v39  ;;  %v7315_v39 = vld [vmem:[#allocation21 + $0xd4] ss:$24 sps:$4 sm:$0xff]   ;;  %v7364_v45 = vld [vmem:[#allocation21 + $0x370] ss:$24 sps:$4 sm:$0xff]  }
 0x5ae   :  { %5673 = vmatpush1.bf16.msra.mxu1 %v7286_v48  ;;  %5699 = vmatprep.subr.bf16.mxu0 %v7297_v49  ;;  %v7369_v48 = vld [vmem:[#allocation21 + $0x3a4] ss:$24 sps:$4 sm:$0xff]   ;;  %v7367_v49 = vld [vmem:[#allocation21 + $0x3a0] ss:$24 sps:$4 sm:$0xff]  }
 0x5af   :  { %5674 = vmatprep.subr.bf16.mxu1 %v7294_v50  ;;  %v7372_v50 = vld [vmem:[#allocation21 + $0x3d4] ss:$24 sps:$4 sm:$0xff]  }
 0x5b1   :  { %5700 = vmatpush1.bf16.msra.mxu0 %v7295_v51  ;;  %v7370_v51 = vld [vmem:[#allocation21 + $0x3d0] ss:$24 sps:$4 sm:$0xff]  }
 0x5b2   :  { %5675 = vmatpush1.bf16.msra.mxu1 %v7292_v52  ;;  %5701 = vmatprep.subr.bf16.mxu0 %v7303_v53  ;;  %v7375_v52 = vld [vmem:[#allocation21 + $0x404] ss:$24 sps:$4 sm:$0xff]   ;;  %v7378_v53 = vld [vmem:[#allocation21 + $0x434] ss:$24 sps:$4 sm:$0xff]  }
 0x5b3   :  { %5676 = vmatprep.subr.bf16.mxu1 %v7300_v54  ;;  %v7381_v54 = vld [vmem:[#allocation21 + $0x464] ss:$24 sps:$4 sm:$0xff]  }
 0x5b5   :  { %5702 = vmatpush1.bf16.msra.mxu0 %v7301_v55  ;;  %v7379_v55 = vld [vmem:[#allocation21 + $0x460] ss:$24 sps:$4 sm:$0xff]  }
 0x5b6   :  { %5677 = vmatpush1.bf16.msra.mxu1 %v7298_v38  ;;  %5703 = vmatprep.subr.bf16.mxu0 %v7309_v12  ;;  %v7384_v38 = vld [vmem:[#allocation21 + $0x494] ss:$24 sps:$4 sm:$0xff]   ;;  %v7382_v12 = vld [vmem:[#allocation21 + $0x490] ss:$24 sps:$4 sm:$0xff]  }
 0x5b7   :  { %5678 = vmatprep.subr.bf16.mxu1 %v7306_v56  ;;  %v7387_v56 = vld [vmem:[#allocation21 + $0x4c4] ss:$24 sps:$4 sm:$0xff]  }
 0x5b9   :  { %5704 = vmatpush1.bf16.msra.mxu0 %v7307_v16  ;;  %v7385_v16 = vld [vmem:[#allocation21 + $0x4c0] ss:$24 sps:$4 sm:$0xff]  }
 0x5ba   :  { %5679 = vmatpush1.bf16.msra.mxu1 %v7304_v42  ;;  %5705 = vmatprep.subr.bf16.mxu0 %v7315_v39  ;;  %v7390_v42 = vld [vmem:[#allocation21 + $0x4f4] ss:$24 sps:$4 sm:$0xff]   ;;  %v7388_v39 = vld [vmem:[#allocation21 + $0x4f0] ss:$24 sps:$4 sm:$0xff]  }
 0x5bb   :  { %5680 = vmatprep.subr.bf16.mxu1 %v7312_v18  ;;  %v7393_v18 = vld [vmem:[#allocation21 + $0x524] ss:$24 sps:$4 sm:$0xff]  }
 0x5bd   :  { %5706 = vmatpush1.bf16.msra.mxu0 %v7313_v47  ;;  %v7391_v47 = vld [vmem:[#allocation21 + $0x520] ss:$24 sps:$4 sm:$0xff]  }
 0x5be   :  { %5681 = vmatpush1.bf16.msra.mxu1 %v7310_v57  ;;  %5707 = vmatprep.subr.bf16.mxu0 %v7321_v3  ;;  %v7396_v57 = vld [vmem:[#allocation21 + $0x554] ss:$24 sps:$4 sm:$0xff]   ;;  %v7394_v3 = vld [vmem:[#allocation21 + $0x550] ss:$24 sps:$4 sm:$0xff]  }
 0x5bf   :  { %5682 = vmatprep.subr.bf16.mxu1 %v7318_v60  ;;  %v7399_v60 = vld [vmem:[#allocation21 + $0x584] ss:$24 sps:$4 sm:$0xff]  }
 0x5c1   :  { %5708 = vmatpush1.bf16.msra.mxu0 %v7319_v19  ;;  %v7397_v19 = vld [vmem:[#allocation21 + $0x580] ss:$24 sps:$4 sm:$0xff]  }
 0x5c2   :  { %5683 = vmatpush1.bf16.msra.mxu1 %v7316_v61  ;;  %5709 = vmatprep.subr.bf16.mxu0 %v7327_v62  ;;  %v7402_v61 = vld [vmem:[#allocation21 + $0x5b4] ss:$24 sps:$4 sm:$0xff]   ;;  %v7400_v62 = vld [vmem:[#allocation21 + $0x5b0] ss:$24 sps:$4 sm:$0xff]  }
 0x5c3   :  { %5684 = vmatprep.subr.bf16.mxu1 %v7324_v63  ;;  %v7405_v63 = vld [vmem:[#allocation21 + $0x5e4] ss:$24 sps:$4 sm:$0xff]  }
 0x5c5   :  { %5710 = vmatpush1.bf16.msra.mxu0 %v7325_v0  ;;  %v7403_v0 = vld [vmem:[#allocation21 + $0x5e0] ss:$24 sps:$4 sm:$0xff]  }
 0x5c6   :  { %5685 = vmatpush1.bf16.msra.mxu1 %v7322_v1  ;;  %5711 = vmatprep.subr.bf16.mxu0 %v7333_v2  ;;  %v7408_v1 = vld [vmem:[#allocation21 + $0x614] ss:$24 sps:$4 sm:$0xff]   ;;  %v7406_v2 = vld [vmem:[#allocation21 + $0x610] ss:$24 sps:$4 sm:$0xff]  }
 0x5c7   :  { %5686 = vmatprep.subr.bf16.mxu1 %v7330_v4  ;;  %v7411_v4 = vld [vmem:[#allocation21 + $0x644] ss:$24 sps:$4 sm:$0xff]  }
 0x5c9   :  { %5712 = vmatpush1.bf16.msra.mxu0 %v7331_v6  ;;  %v7409_v6 = vld [vmem:[#allocation21 + $0x640] ss:$24 sps:$4 sm:$0xff]  }
 0x5ca   :  { %5687 = vmatpush1.bf16.msra.mxu1 %v7328_v7  ;;  %5713 = vmatprep.subr.bf16.mxu0 %v7336_v8  ;;  %v7414_v7 = vld [vmem:[#allocation21 + $0x674] ss:$24 sps:$4 sm:$0xff]   ;;  %v7412_v8 = vld [vmem:[#allocation21 + $0x670] ss:$24 sps:$4 sm:$0xff]  }
 0x5cd   :  { %5689 = vmatmul.mubr.bf16.vlgmr.msra.gmra.mrb[24].mxu1 %v8323_v46  ;;  %5714 = vmatpush1.bf16.msra.mxu0 %v7334_v10  ;;  %v7417_v10 = vld [vmem:[#allocation21 + $0x6a4] ss:$24 sps:$4 sm:$0xff]  }
 0x5ce   :  { %5715 = vmatprep.subr.bf16.mxu0 %v7339_v13  ;;  %v7415_v13 = vld [vmem:[#allocation21 + $0x6a0] ss:$24 sps:$4 sm:$0xff]  }
 0x5d1   :  { %5716 = vmatpush1.bf16.msra.mxu0 %v7337_v20  ;;  %v7420_v20 = vld [vmem:[#allocation21 + $0x6d4] ss:$24 sps:$4 sm:$0xff]  }
 0x5d2   :  { %5717 = vmatprep.subr.bf16.mxu0 %v7342_v21  ;;  %v7418_v21 = vld [vmem:[#allocation21 + $0x6d0] ss:$24 sps:$4 sm:$0xff]  }
 0x5d5   :  { %5718 = vmatpush1.bf16.msra.mxu0 %v7340_v22  ;;  %v7423_v22 = vld [vmem:[#allocation21 + $0x704] ss:$24 sps:$4 sm:$0xff]  }
 0x5d6   :  { %5719 = vmatprep.subr.bf16.mxu0 %v7345_v25  ;;  %v7426_v25 = vld [vmem:[#allocation21 + $0x734] ss:$24 sps:$4 sm:$0xff]  }
 0x5d9   :  { %5720 = vmatpush1.bf16.msra.mxu0 %v7343_v27  ;;  %v7429_v27 = vld [vmem:[#allocation21 + $0x764] ss:$24 sps:$4 sm:$0xff]  }
 0x5da   :  { %5721 = vmatprep.subr.bf16.mxu0 %v7348_v30  ;;  %v7427_v30 = vld [vmem:[#allocation21 + $0x760] ss:$24 sps:$4 sm:$0xff]  }
 0x5dd   :  { %5722 = vmatpush1.bf16.msra.mxu0 %v7346_v28  ;;  %v7432_v28 = vld [vmem:[#allocation21 + $0x794] ss:$24 sps:$4 sm:$0xff]  }
 0x5de   :  { %5723 = vmatprep.subr.bf16.mxu0 %v7351_v14  ;;  %v7430_v14 = vld [vmem:[#allocation21 + $0x790] ss:$24 sps:$4 sm:$0xff]  }
 0x5e1   :  { %5724 = vmatpush1.bf16.msra.mxu0 %v7349_v15  ;;  %v7435_v15 = vld [vmem:[#allocation21 + $0x7c4] ss:$24 sps:$4 sm:$0xff]  }
 0x5e2   :  { %5725 = vmatprep.subr.bf16.mxu0 %v7354_v29  ;;  %v7433_v29 = vld [vmem:[#allocation21 + $0x7c0] ss:$24 sps:$4 sm:$0xff]  }
 0x5e5   :  { %5726 = vmatpush1.bf16.msra.mxu0 %v7352_v31  ;;  %v7438_v31 = vld [vmem:[#allocation21 + $0x7f4] ss:$24 sps:$4 sm:$0xff]  }
 0x5e6   :  { %5727 = vmatprep.subr.bf16.mxu0 %v7357_v33  ;;  %v7436_v33 = vld [vmem:[#allocation21 + $0x7f0] ss:$24 sps:$4 sm:$0xff]  }
 0x5e9   :  { %5728 = vmatpush1.bf16.msra.mxu0 %v7355_v5  ;;  %v7441_v5 = vld [vmem:[#allocation21 + $0x824] ss:$24 sps:$4 sm:$0xff]  }
 0x5ea   :  { %5738 = vmatprep.subr.bf16.mxu0 %v7360_v35  ;;  %v7439_v35 = vld [vmem:[#allocation21 + $0x820] ss:$24 sps:$4 sm:$0xff]  }
 0x5ec   :  { %5730 = vmatmul.mubr.bf16.vlgmr.msra.gmra.mrb[16].mxu0 %v8271_v58  ;;  %v7373_v58 = vld [vmem:[#allocation21 + $0x400] ss:$24 sps:$4 sm:$0xff]  }
 0x5ed   :  { %5739 = vmatpush1.bf16.msra.mxu0 %v7358_v36  ;;  %5770 = vmatprep.mubr.bf16.mxu0 %v8285_v26  ;;  %v7376_v26 = vld [vmem:[#allocation21 + $0x430] ss:$24 sps:$4 sm:$0xff]   ;;  %v7444_v36 = vld [vmem:[#allocation21 + $0x854] ss:$24 sps:$4 sm:$0xff]  }
 0x5ee   :  { %5740 = vmatprep.subr.bf16.mxu0 %v7363_v37  ;;  %v7442_v37 = vld [vmem:[#allocation21 + $0x850] ss:$24 sps:$4 sm:$0xff]  }
 0x5f1   :  { %5741 = vmatpush1.bf16.msra.mxu0 %v7361_v40  ;;  %v7447_v40 = vld [vmem:[#allocation21 + $0x884] ss:$24 sps:$4 sm:$0xff]  }
 0x5f2   :  { %5742 = vmatprep.subr.bf16.mxu0 %v7366_v44  ;;  %v7445_v44 = vld [vmem:[#allocation21 + $0x880] ss:$24 sps:$4 sm:$0xff]  }
 0x5f5   :  { %5743 = vmatpush1.bf16.msra.mxu0 %v7364_v45  ;;  %v7450_v45 = vld [vmem:[#allocation21 + $0x8b4] ss:$24 sps:$4 sm:$0xff]  }
 0x5f6   :  { %5744 = vmatprep.subr.bf16.mxu0 %v7369_v48  ;;  %v7448_v48 = vld [vmem:[#allocation21 + $0x8b0] ss:$24 sps:$4 sm:$0xff]  }
 0x5f9   :  { %5745 = vmatpush1.bf16.msra.mxu0 %v7367_v49  ;;  %v7453_v49 = vld [vmem:[#allocation21 + $0x8e4] ss:$24 sps:$4 sm:$0xff]  }
 0x5fa   :  { %5746 = vmatprep.subr.bf16.mxu0 %v7372_v50  ;;  %v7451_v50 = vld [vmem:[#allocation21 + $0x8e0] ss:$24 sps:$4 sm:$0xff]  }
 0x5fd   :  { %5747 = vmatpush1.bf16.msra.mxu0 %v7370_v51  ;;  %v7456_v51 = vld [vmem:[#allocation21 + $0x914] ss:$24 sps:$4 sm:$0xff]  }
 0x5fe   :  { %5748 = vmatprep.subr.bf16.mxu0 %v7375_v52  ;;  %v7454_v52 = vld [vmem:[#allocation21 + $0x910] ss:$24 sps:$4 sm:$0xff]  }
 0x601   :  { %5749 = vmatpush1.bf16.msra.mxu0 %v7373_v58  ;;  %v7459_v58 = vld [vmem:[#allocation21 + $0x944] ss:$24 sps:$4 sm:$0xff]  }
 0x602   :  { %5750 = vmatprep.subr.bf16.mxu0 %v7378_v53  ;;  %v7457_v53 = vld [vmem:[#allocation21 + $0x940] ss:$24 sps:$4 sm:$0xff]  }
 0x605   :  { %5751 = vmatpush1.bf16.msra.mxu0 %v7376_v26  ;;  %v7462_v26 = vld [vmem:[#allocation21 + $0x974] ss:$24 sps:$4 sm:$0xff]  }
 0x606   :  { %5752 = vmatprep.subr.bf16.mxu0 %v7381_v54  ;;  %v7460_v54 = vld [vmem:[#allocation21 + $0x970] ss:$24 sps:$4 sm:$0xff]  }
 0x609   :  { %5753 = vmatpush1.bf16.msra.mxu0 %v7379_v55  ;;  %v7465_v55 = vld [vmem:[#allocation21 + $0x9a4] ss:$24 sps:$4 sm:$0xff]  }
 0x60a   :  { %5754 = vmatprep.subr.bf16.mxu0 %v7384_v38  ;;  %v7463_v38 = vld [vmem:[#allocation21 + $0x9a0] ss:$24 sps:$4 sm:$0xff]  }
 0x60d   :  { %5755 = vmatpush1.bf16.msra.mxu0 %v7382_v12  ;;  %v7468_v12 = vld [vmem:[#allocation21 + $0x9d4] ss:$24 sps:$4 sm:$0xff]  }
 0x60e   :  { %5756 = vmatprep.subr.bf16.mxu0 %v7387_v56  ;;  %v7466_v56 = vld [vmem:[#allocation21 + $0x9d0] ss:$24 sps:$4 sm:$0xff]  }
 0x611   :  { %5757 = vmatpush1.bf16.msra.mxu0 %v7385_v16  ;;  %v8336_v16 = vld [vmem:[#allocation22] sm:$0x3f] }
 0x612   :  { %5758 = vmatprep.subr.bf16.mxu0 %v7390_v42  ;;  %v8338_v42 = vld [vmem:[#allocation24] sm:$0x3f] }
 0x615   :  { %5759 = vmatpush1.bf16.msra.mxu0 %v7388_v39  ;;  %v5870_v39 = vrot.slane %v8336_v16, %v8169_v11 }
 0x616   :  { %5760 = vmatprep.subr.bf16.mxu0 %v7393_v18  ;;  %v7469_v18 = vld [vmem:[#allocation21 + $0xa00] ss:$24 sps:$4 sm:$0xff]  }
 0x619   :  { %5761 = vmatpush1.bf16.msra.mxu0 %v7391_v47  ;;  %v5904_v47 = vrot.slane %v8338_v42, %v8166_v9 }
 0x61a   :  { %5762 = vmatprep.subr.bf16.mxu0 %v7396_v57  ;;  %v7474_v57 = vld [vmem:[#allocation21 + $0xa34] ss:$24 sps:$4 sm:$0xff]  }
 0x61d   :  { %5763 = vmatpush1.bf16.msra.mxu0 %v7394_v3 }
 0x61e   :  { %5764 = vmatprep.subr.bf16.mxu0 %v7399_v60  ;;  %v5908_v60 = vrot.slane %v8338_v42, %v8169_v11  ;;  %v7483_v11 = vld [vmem:[#allocation21 + $0xac4] ss:$24 sps:$4 sm:$0xff]  }
 0x621   :  { %5765 = vmatpush1.bf16.msra.mxu0 %v7397_v19 }
 0x622   :  { %5766 = vmatprep.subr.bf16.mxu0 %v7402_v61 }
 0x625   :  { %5767 = vmatpush1.bf16.msra.mxu0 %v7400_v62 }
 0x626   :  { %5768 = vmatprep.subr.bf16.mxu0 %v7405_v63 }
 0x629   :  { %5769 = vmatpush1.bf16.msra.mxu0 %v7403_v0  ;;  %v7472_v0 = vld [vmem:[#allocation21 + $0xa30] ss:$24 sps:$4 sm:$0xff]  }
 0x62a   :  { %5779 = vmatprep.subr.bf16.mxu0 %v7408_v1 }
 0x62c   :  { %5771 = vmatmul.mubr.bf16.vlgmr.msra.gmra.mrb[16].mxu0 %v8287_v17  ;;  %v7421_v17 = vld [vmem:[#allocation21 + $0x700] ss:$24 sps:$4 sm:$0xff]  }
 0x62d   :  { %5780 = vmatpush1.bf16.msra.mxu0 %v7406_v2  ;;  %5811 = vmatprep.mubr.bf16.mxu0 %v8307_v43  ;;  %v7424_v43 = vld [vmem:[#allocation21 + $0x730] ss:$24 sps:$4 sm:$0xff]  }
 0x62e   :  { %5781 = vmatprep.subr.bf16.mxu0 %v7411_v4  ;;  %v7477_v4 = vld [vmem:[#allocation21 + $0xa64] ss:$24 sps:$4 sm:$0xff]  }
 0x631   :  { %5782 = vmatpush1.bf16.msra.mxu0 %v7409_v6 }
 0x632   :  { %5783 = vmatprep.subr.bf16.mxu0 %v7414_v7  ;;  %v7480_v7 = vld [vmem:[#allocation21 + $0xa94] ss:$24 sps:$4 sm:$0xff]  }
 0x635   :  { %5784 = vmatpush1.bf16.msra.mxu0 %v7412_v8  ;;  %v7478_v8 = vld [vmem:[#allocation21 + $0xa90] ss:$24 sps:$4 sm:$0xff]  }
 0x636   :  { %5785 = vmatprep.subr.bf16.mxu0 %v7417_v10  ;;  %v7481_v10 = vld [vmem:[#allocation21 + $0xac0] ss:$24 sps:$4 sm:$0xff]  }
 0x639   :  { %5786 = vmatpush1.bf16.msra.mxu0 %v7415_v13 }
 0x63a   :  { %5787 = vmatprep.subr.bf16.mxu0 %v7420_v20  ;;  %v7486_v20 = vld [vmem:[#allocation21 + $0xaf4] ss:$24 sps:$4 sm:$0xff]  }
 0x63d   :  { %5788 = vmatpush1.bf16.msra.mxu0 %v7418_v21 }
 0x63e   :  { %5789 = vmatprep.subr.bf16.mxu0 %v7423_v22  ;;  %v7484_v22 = vld [vmem:[#allocation21 + $0xaf0] ss:$24 sps:$4 sm:$0xff]  }
 0x641   :  { %5790 = vmatpush1.bf16.msra.mxu0 %v7421_v17  ;;  %v7489_v17 = vld [vmem:[#allocation21 + $0xb24] ss:$24 sps:$4 sm:$0xff]  }
 0x642   :  { %5791 = vmatprep.subr.bf16.mxu0 %v7426_v25  ;;  %v7487_v25 = vld [vmem:[#allocation21 + $0xb20] ss:$24 sps:$4 sm:$0xff]  }
 0x645   :  { %5792 = vmatpush1.bf16.msra.mxu0 %v7424_v43  ;;  %v7492_v43 = vld [vmem:[#allocation21 + $0xb54] ss:$24 sps:$4 sm:$0xff]  }
 0x646   :  { %5793 = vmatprep.subr.bf16.mxu0 %v7429_v27  ;;  %v7490_v27 = vld [vmem:[#allocation21 + $0xb50] ss:$24 sps:$4 sm:$0xff]  }
 0x649   :  { %5794 = vmatpush1.bf16.msra.mxu0 %v7427_v30  ;;  %v7495_v30 = vld [vmem:[#allocation21 + $0xb84] ss:$24 sps:$4 sm:$0xff]  }
 0x64a   :  { %5795 = vmatprep.subr.bf16.mxu0 %v7432_v28  ;;  %v5874_v28 = vrot.slane %v8336_v16, %v8218_v32 }
 0x64d   :  { %5796 = vmatpush1.bf16.msra.mxu0 %v7430_v14  ;;  %v7493_v14 = vld [vmem:[#allocation21 + $0xb80] ss:$24 sps:$4 sm:$0xff]  }
 0x64e   :  { %5797 = vmatprep.subr.bf16.mxu0 %v7435_v15  ;;  %v5878_v15 = vrot.slane %v8336_v16, %v8221_v34 }
 0x651   :  { %5798 = vmatpush1.bf16.msra.mxu0 %v7433_v29  ;;  %v7498_v29 = vld [vmem:[#allocation21 + $0xbb4] ss:$24 sps:$4 sm:$0xff]  }
 0x652   :  { %5799 = vmatprep.subr.bf16.mxu0 %v7438_v31  ;;  %v5912_v31 = vrot.slane %v8338_v42, %v8218_v32 }
 0x655   :  { %5800 = vmatpush1.bf16.msra.mxu0 %v7436_v33 }
 0x656   :  { %5801 = vmatprep.subr.bf16.mxu0 %v7441_v5  ;;  %v5916_v5 = vrot.slane %v8338_v42, %v8221_v34 }
 0x659   :  { %5802 = vmatpush1.bf16.msra.mxu0 %v7439_v35 }
 0x65a   :  { %5803 = vmatprep.subr.bf16.mxu0 %v7444_v36 }
 0x65d   :  { %5804 = vmatpush1.bf16.msra.mxu0 %v7442_v37  ;;  %v7496_v37 = vld [vmem:[#allocation21 + $0xbb0] ss:$24 sps:$4 sm:$0xff]  }
 0x65e   :  { %5805 = vmatprep.subr.bf16.mxu0 %v7447_v40 }
 0x661   :  { %5806 = vmatpush1.bf16.msra.mxu0 %v7445_v44 }
 0x662   :  { %5807 = vmatprep.subr.bf16.mxu0 %v7450_v45  ;;  %v7501_v45 = vld [vmem:[#allocation21 + $0xbe4] ss:$24 sps:$4 sm:$0xff]  }
 0x665   :  { %5808 = vmatpush1.bf16.msra.mxu0 %v7448_v48 }
 0x666   :  { %5809 = vmatprep.subr.bf16.mxu0 %v7453_v49 }
 0x669   :  { %5810 = vmatpush1.bf16.msra.mxu0 %v7451_v50 }
 0x66a   :  { %5820 = vmatprep.subr.bf16.mxu0 %v7456_v51  ;;  %v7499_v51 = vld [vmem:[#allocation21 + $0xbe0] ss:$24 sps:$4 sm:$0xff]  }
 0x66c   :  { %5812 = vmatmul.mubr.bf16.vlgmr.msra.gmra.mrb[16].mxu0 %v8310_v59  ;;  %v7471_v59 = vld [vmem:[#allocation21 + $0xa04] ss:$24 sps:$4 sm:$0xff]  }
 0x66d   :  { %5821 = vmatpush1.bf16.msra.mxu0 %v7454_v52  ;;  %5852 = vmatprep.mubr.bf16.mxu0 %v8321_v41  ;;  %v5866_v41 = vrot.slane %v8336_v16, %v8166_v9  ;;  %v7475_v9 = vld [vmem:[#allocation21 + $0xa60] ss:$24 sps:$4 sm:$0xff]   ;;  %v5882_v52 = vrot.slane %v8336_v16, %v8294_v23 }
 0x66e   :  { %5822 = vmatprep.subr.bf16.mxu0 %v7459_v58  ;;  %v5886_v58 = vrot.slane %v8336_v16, %v8297_v24 }
 0x671   :  { %5823 = vmatpush1.bf16.msra.mxu0 %v7457_v53  ;;  %v5920_v53 = vrot.slane %v8338_v42, %v8294_v23 }
 0x672   :  { %5824 = vmatprep.subr.bf16.mxu0 %v7462_v26  ;;  %v5924_v26 = vrot.slane %v8338_v42, %v8297_v24 }
 0x675   :  { %5825 = vmatpush1.bf16.msra.mxu0 %v7460_v54 }
 0x676   :  { %5826 = vmatprep.subr.bf16.mxu0 %v7465_v55 }
 0x679   :  { %5827 = vmatpush1.bf16.msra.mxu0 %v7463_v38 }
 0x67a   :  { %5828 = vmatprep.subr.bf16.mxu0 %v7468_v12 }
 0x67d   :  { %5829 = vmatpush1.bf16.msra.mxu0 %v7466_v56 }
 0x67e   :  { %5830 = vmatprep.subr.bf16.mxu0 %v7471_v59 }
 0x67f   :  { %v5526_v3 = vpop.f32.mrb[12].mxu0 }
 0x680   :  { %v5893_v19 = vmul.f32 %v5866_v41, %v5526_v3  ;;  %v5528_v61 = vpop.f32.mrb[13].mxu0 }
 0x681   :  { %v5894_v62 = vmul.f32 %v5870_v39, %v5528_v61  ;;  %v5530_v63 = vpop.f32.mrb[14].mxu0  ;;  %5831 = vmatpush1.bf16.msra.mxu0 %v7469_v18 }
 0x682   :  { %v5931_v1 = vadd.f32 %v5904_v47, %v5893_v19  ;;  %v5531_v2 = vpop.f32.mrb[15].mxu0  ;;  %5832 = vmatprep.subr.bf16.mxu0 %v7474_v57 }
 0x683   :  { %v5932_v6 = vadd.f32 %v5908_v60, %v5894_v62 }
 0x684   :  { %7502 = vtanh.f32 %v5931_v1 }
 0x685   :  { %7504 = vtanh.f32 %v5932_v6  ;;  %5833 = vmatpush1.bf16.msra.mxu0 %v7472_v0 }
 0x686   :  { %5834 = vmatprep.subr.bf16.mxu0 %v7477_v4 }
 0x689   :  { %5835 = vmatpush1.bf16.msra.mxu0 %v7475_v9 }
 0x68a   :  { %5836 = vmatprep.subr.bf16.mxu0 %v7480_v7 }
 0x68d   :  { %5837 = vmatpush1.bf16.msra.mxu0 %v7478_v8 }
 0x68e   :  { %v7503_v13 = vpop.eup %7502  ;;  %5838 = vmatprep.subr.bf16.mxu0 %v7483_v11 }
 0x68f   :  { %v7505_v21 = vpop.eup %7504  ;;  %5943 = vst [vmem:[%s8399_s16] sm:$0xff] %v7503_v13 }
 0x690   :  { %5944 = vst [vmem:[%s8399_s16 + $0x8] sm:$0xff] %v7505_v21 }
 0x691   :  { %5839 = vmatpush1.bf16.msra.mxu0 %v7481_v10 }
 0x692   :  { %5840 = vmatprep.subr.bf16.mxu0 %v7486_v20 }
 0x695   :  { %5841 = vmatpush1.bf16.msra.mxu0 %v7484_v22 }
 0x696   :  { %5842 = vmatprep.subr.bf16.mxu0 %v7489_v17 }
 0x699   :  { %5843 = vmatpush1.bf16.msra.mxu0 %v7487_v25 }
 0x69a   :  { %5844 = vmatprep.subr.bf16.mxu0 %v7492_v43 }
 0x69d   :  { %5845 = vmatpush1.bf16.msra.mxu0 %v7490_v27 }
 0x69e   :  { %5846 = vmatprep.subr.bf16.mxu0 %v7495_v30 }
 0x6a0   :  { %v5690_v33 = vpop.f32.mrb[24].mxu1 }
 0x6a1   :  { %v5895_v35 = vmul.f32 %v5874_v28, %v5690_v33  ;;  %v5692_v36 = vpop.f32.mrb[25].mxu1  ;;  %5847 = vmatpush1.bf16.msra.mxu0 %v7493_v14 }
 0x6a2   :  { %v5896_v40 = vmul.f32 %v5878_v15, %v5692_v36  ;;  %v5694_v44 = vpop.f32.mrb[26].mxu1  ;;  %5848 = vmatprep.subr.bf16.mxu0 %v7498_v29 }
 0x6a3   :  { %v5933_v48 = vadd.f32 %v5912_v31, %v5895_v35  ;;  %v5695_v49 = vpop.f32.mrb[27].mxu1 }
 0x6a4   :  { %v5934_v50 = vadd.f32 %v5916_v5, %v5896_v40 }
 0x6a5   :  { %7506 = vtanh.f32 %v5933_v48  ;;  %5849 = vmatpush1.bf16.msra.mxu0 %v7496_v37 }
 0x6a6   :  { %7508 = vtanh.f32 %v5934_v50  ;;  %5850 = vmatprep.subr.bf16.mxu0 %v7501_v45 }
 0x6a9   :  { %5851 = vmatpush1.bf16.msra.mxu0 %v7499_v51 }
 0x6ac   :  { %5853 = vmatmul.mubr.bf16.vlgmr.msra.gmra.mrb[16].mxu0 %v8323_v46 }
 0x6af   :  { %v7507_v32 = vpop.eup %7506 }
 0x6b0   :  { %v7509_v34 = vpop.eup %7508  ;;  %5945 = vst [vmem:[%s8399_s16 + $0x10] sm:$0xff] %v7507_v32 }
 0x6b1   :  { %5946 = vst [vmem:[%s8399_s16 + $0x18] sm:$0xff] %v7509_v34 }
 0x77f   :  { %v5854_v46 = vpop.f32.mrb[16].mxu0 }
 0x780   :  { %v5897_v54 = vmul.f32 %v5882_v52, %v5854_v46  ;;  %v5856_v55 = vpop.f32.mrb[17].mxu0 }
 0x781   :  { %v5898_v38 = vmul.f32 %v5886_v58, %v5856_v55  ;;  %v5858_v12 = vpop.f32.mrb[18].mxu0 }
 0x782   :  { %v5935_v56 = vadd.f32 %v5920_v53, %v5897_v54  ;;  %v5859_v59 = vpop.f32.mrb[19].mxu0 }
 0x783   :  { %v5936_v41 = vadd.f32 %v5924_v26, %v5898_v38 }
 0x784   :  { %7510 = vtanh.f32 %v5935_v56 }
 0x785   :  { %7512 = vtanh.f32 %v5936_v41 }
 0x78e   :  { %v7511_v39 = vpop.eup %7510 }
 0x78f   :  { %v7513_v18 = vpop.eup %7512  ;;  %5947 = vst [vmem:[%s8399_s16 + $0x20] sm:$0xff] %v7511_v39 }
 0x790   :  { %5948 = vst [vmem:[%s8399_s16 + $0x28] sm:$0xff] %v7513_v18 }
 0x791   :  { %5953 = vsyncpa [#allocation3], 1 }
 0x792   :  { %5954 = vsyncpa [#allocation5], 1 }
 0x793   :  { %5955 = vsyncpa [#allocation8], 1 }
 0x794   :  { %5956 = vsyncpa [#allocation11], 1 }
 0x795   :  { %5957 = vsyncpa [#allocation14], 1 }
 0x796   :  { %5958 = vsyncpa [#allocation17], 1 }
 0x797   :  { %5959 = vsyncpa [#allocation20], 1 }
 0x798   :  { %5960 = vsyncpa [#allocation23], 1 }

</bundles_post_ra>
